<compile_context>
chip_gen: v7x
topology: tpu7x:2x2x1
jax: 0.10.0
libtpu: 0.0.40
codegen_flags: <defaults>
</compile_context>

<pallas_src>
import functools

import jax
import jax.numpy as jnp
import numpy as np
from jax.experimental import pallas as pl
from jax.experimental.pallas import tpu as pltpu

EPS = 1e-5


# ----------------------------- in-kernel helpers -----------------------------

def _bn_relu(parts, sel, sel_t, gamma, beta_l, count):
    """Training-mode BatchNorm2d (+ReLU) on lane-grouped channels.

    parts:  list of (rows, L) tensors that jointly form ONE BN batch
            (lanes ordered (column-group, channel), L = groups * C).
    sel:    (L, C) one-hot lane->channel summing matrix; sel_t: (C, L).
    gamma:  (1, C); beta_l: (1, L) beta pre-broadcast to lanes.
    count:  number of elements per channel in the batch (biased variance).
    Returns the normalized + ReLU'd parts.
    """
    inv = 1.0 / count
    cs = parts[0].sum(axis=0, keepdims=True)
    for p in parts[1:]:
        cs = cs + p.sum(axis=0, keepdims=True)
    mu_c = jnp.dot(cs, sel, preferred_element_type=jnp.float32) * inv      # (1,C)
    mu_l = jnp.dot(mu_c, sel_t, preferred_element_type=jnp.float32)        # (1,L)
    cens = [p - mu_l for p in parts]
    vs = (cens[0] * cens[0]).sum(axis=0, keepdims=True)
    for c in cens[1:]:
        vs = vs + (c * c).sum(axis=0, keepdims=True)
    var_c = jnp.dot(vs, sel, preferred_element_type=jnp.float32) * inv     # (1,C)
    scale_l = jnp.dot(gamma * jax.lax.rsqrt(var_c + EPS), sel_t,
                      preferred_element_type=jnp.float32)                  # (1,L)
    return [jnp.maximum(c * scale_l + beta_l, 0.0) for c in cens]


def _bn_batch_relu(h, gamma, beta, n):
    """BatchNorm1d (training mode, biased var) over the batch axis + ReLU."""
    inv = 1.0 / n
    mu = jnp.sum(h, axis=0, keepdims=True) * inv
    cen = h - mu
    var = jnp.sum(cen * cen, axis=0, keepdims=True) * inv
    return jnp.maximum(cen * (gamma * jax.lax.rsqrt(var + EPS)) + beta, 0.0)


# --------------------------------- kernel ------------------------------------

def _net4_kernel(n,
                 a_ref,
                 w1t_ref, b1r_ref, g1_ref, be1_ref, s1_ref, s1t_ref,
                 w2te_ref, w2to_ref, b2_ref, g2_ref, be2_ref, s2_ref, s2t_ref,
                 w1blk_ref, fc1b_ref, g3_ref, be3_ref,
                 fc2w_ref, fc2b_ref, g4_ref, be4_ref,
                 fc3w_ref, fc3b_ref, g5_ref, be5_ref,
                 w45_ref, b45_ref,
                 out_ref,
                 h1_scr):
    # Rows of `a` / h1 are ordered (branch, out-row, sample); each branch is a
    # contiguous 12n-row block, so BN stats are plain slices and conv2's
    # row-shifted reads are contiguous `pl.ds(di*n, 10n)` windows.
    z = jnp.zeros((n, 32), jnp.float32)

    for br in range(2):
        base = br * 12 * n

        # ---- conv1 (row-Toeplitz matmul) + BN1 (per-branch stats) + ReLU ----
        y1 = jnp.dot(a_ref[pl.ds(base, 12 * n), :], w1t_ref[...],
                     preferred_element_type=jnp.float32) + b1r_ref[...]
        (h1,) = _bn_relu([y1], s1_ref[...], s1t_ref[...],
                         g1_ref[...], be1_ref[...], 144.0 * n)   # (12n, 192)
        h1_scr[...] = h1

        # ---- conv2 = 3 row-shifted matmuls; even/odd output columns kept in
        #      separate N=160 accumulators (no materialized im2col) ----------
        y2e = b2_ref[...]
        y2o = b2_ref[...]
        for di in range(3):
            h1d = h1_scr[pl.ds(di * n, 10 * n), :]
            y2e = y2e + jnp.dot(h1d, w2te_ref[di],
                                preferred_element_type=jnp.float32)
            y2o = y2o + jnp.dot(h1d, w2to_ref[di],
                                preferred_element_type=jnp.float32)
        h2e, h2o = _bn_relu([y2e, y2o], s2_ref[...], s2t_ref[...],
                            g2_ref[...], be2_ref[...], 100.0 * n)

        # ---- 2x2 max-pool: columns via even/odd halves, rows via contiguous
        #      (n, 160) slices folded straight into the fc1 block matmuls ----
        hp = jnp.maximum(h2e, h2o)                     # (10n, 160) = (pc, ch)
        for pr in range(5):
            top = hp[2 * pr * n:(2 * pr + 1) * n, :]
            bot = hp[(2 * pr + 1) * n:(2 * pr + 2) * n, :]
            z = z + jnp.dot(jnp.maximum(top, bot), w1blk_ref[br * 5 + pr],
                            preferred_element_type=jnp.float32)

    # ---- MLP head (BatchNorm1d over the full batch, as in PyTorch) ----------
    z = z + fc1b_ref[...]
    z = _bn_batch_relu(z, g3_ref[...], be3_ref[...], n)
    z = jnp.dot(z, fc2w_ref[...],
                preferred_element_type=jnp.float32) + fc2b_ref[...]
    z = _bn_batch_relu(z, g4_ref[...], be4_ref[...], n)
    z = jnp.dot(z, fc3w_ref[...],
                preferred_element_type=jnp.float32) + fc3b_ref[...]
    z = _bn_batch_relu(z, g5_ref[...], be5_ref[...], n)

    # fused fc4|fc5 head: col 0 -> sigmoid, cols 1..10 -> log-softmax (shared)
    head = jnp.dot(z, w45_ref[...],
                   preferred_element_type=jnp.float32) + b45_ref[...]
    pred = pl.reciprocal(1.0 + jnp.exp(-head[:, 0:1]), approx=False)
    lg = head[:, 1:11]
    s = lg - jnp.max(lg, axis=1, keepdims=True)
    logp = s - jnp.log(jnp.sum(jnp.exp(s), axis=1, keepdims=True))
    out_ref[...] = jnp.concatenate([pred, logp], axis=1)       # (n, 11)


# --------------------------------- wrapper -----------------------------------

def _vmem_limit_bytes():
    """Per-generation VMEM limit: v5e/v6e have 128 MiB physical, v7x only 64."""
    try:
        kind = jax.devices()[0].device_kind.lower()
    except Exception:
        kind = ""
    if "v5" in kind or "v6" in kind:
        return 100 * 1024 * 1024
    return 48 * 1024 * 1024


def net4_forward(x, pp):
    """x: (n, 2, 14, 14) float32 (PyTorch NCHW pair of digits) -> (n, 21)."""
    n = x.shape[0]
    R = 2 * 12 * n

    # tiny input prep (XLA glue): (branch, out-row, sample)-ordered 3-row
    # conv1 windows -> (R, 42) rows
    imgs = jnp.transpose(x, (1, 0, 2, 3)).astype(jnp.float32)   # (2, n, 14, 14)
    win = jnp.concatenate([imgs[:, :, di:di + 12, :] for di in range(3)],
                          axis=-1)                              # (2, n, 12, 42)
    a = jnp.transpose(win, (0, 2, 1, 3)).reshape(R, 42)

    args = (a,
            pp['w1t'], pp['b1r'], pp['g1'], pp['be1'], pp['s1'], pp['s1t'],
            pp['w2te'], pp['w2to'], pp['b2'], pp['g2'], pp['be2'],
            pp['s2'], pp['s2t'],
            pp['w1blk'], pp['fc1_b'], pp['g3'], pp['be3'],
            pp['fc2_w'], pp['fc2_b'], pp['g4'], pp['be4'],
            pp['fc3_w'], pp['fc3_b'], pp['g5'], pp['be5'],
            pp['w45'], pp['b45'])

    out11 = pl.pallas_call(
        functools.partial(_net4_kernel, n),
        in_specs=[pl.BlockSpec(memory_space=pltpu.MemorySpace.VMEM)
                  for _ in args],
        out_specs=pl.BlockSpec(memory_space=pltpu.MemorySpace.VMEM),
        out_shape=jax.ShapeDtypeStruct((n, 11), jnp.float32),
        scratch_shapes=[pltpu.VMEM((12 * n, 192), jnp.float32)],  # conv1 out
        compiler_params=pltpu.CompilerParams(
            vmem_limit_bytes=_vmem_limit_bytes()),
    )(*args)

    # PyTorch output layout: [pred | digit1 logp | digit2 logp] (shared fc5)
    return jnp.concatenate([out11[:, 0:1], out11[:, 1:11], out11[:, 1:11]],
                           axis=1)


# ------------------------------ parameters -----------------------------------

def init_params(key):
    """Parameters in the native PyTorch layouts."""
    ks = jax.random.split(key, 14)

    def u(k, shape, fan_in):
        b = 1.0 / np.sqrt(fan_in)
        return jax.random.uniform(k, shape, jnp.float32, -b, b)

    p = {}
    p['conv1_w'] = u(ks[0], (16, 1, 3, 3), 9)
    p['conv1_b'] = u(ks[1], (16,), 9)
    p['bn1_g'] = jnp.ones((16,), jnp.float32)
    p['bn1_b'] = jnp.zeros((16,), jnp.float32)
    p['conv2_w'] = u(ks[2], (32, 16, 3, 3), 144)
    p['conv2_b'] = u(ks[3], (32,), 144)
    p['bn2_g'] = jnp.ones((32,), jnp.float32)
    p['bn2_b'] = jnp.zeros((32,), jnp.float32)
    p['fc1_w'] = u(ks[4], (32, 1600), 1600)
    p['fc1_b'] = u(ks[5], (32,), 1600)
    p['bn3_g'] = jnp.ones((32,), jnp.float32)
    p['bn3_b'] = jnp.zeros((32,), jnp.float32)
    p['fc2_w'] = u(ks[6], (64, 32), 32)
    p['fc2_b'] = u(ks[7], (64,), 32)
    p['bn4_g'] = jnp.ones((64,), jnp.float32)
    p['bn4_b'] = jnp.zeros((64,), jnp.float32)
    p['fc3_w'] = u(ks[8], (128, 64), 64)
    p['fc3_b'] = u(ks[9], (128,), 64)
    p['bn5_g'] = jnp.ones((128,), jnp.float32)
    p['bn5_b'] = jnp.zeros((128,), jnp.float32)
    p['fc4_w'] = u(ks[10], (1, 128), 128)
    p['fc4_b'] = u(ks[11], (1,), 128)
    p['fc5_w'] = u(ks[12], (10, 128), 128)
    p['fc5_b'] = u(ks[13], (10,), 128)
    return p


def pack_params(p):
    """One-time repack of PyTorch-layout weights into kernel-friendly forms."""
    f32 = np.float32
    w1 = np.asarray(p['conv1_w'], f32)           # (co=16, 1, 3, 3)
    w2 = np.asarray(p['conv2_w'], f32)           # (co=32, ci=16, 3, 3)

    # conv1 as a row-Toeplitz matmul: (3 in-rows x 14 cols) -> (12 cols x 16 ch)
    w1t = np.zeros((42, 192), f32)
    for di in range(3):
        for c in range(12):
            for dj in range(3):
                w1t[di * 14 + c + dj, c * 16:(c + 1) * 16] = w1[:, 0, di, dj]

    # conv2 as 3 row-shifted Toeplitz blocks, output lanes split into even /
    # odd output columns so the 2x2 column pool is max(even_half, odd_half).
    w2te = np.zeros((3, 192, 160), f32)
    w2to = np.zeros((3, 192, 160), f32)
    for di in range(3):
        for c in range(10):
            dst = w2te if c % 2 == 0 else w2to
            pc = c // 2
            for dj in range(3):
                cc = c + dj
                dst[di, cc * 16:(cc + 1) * 16, pc * 32:(pc + 1) * 32] = \
                    w2[:, :, di, dj].T

    # channel-summing selectors for BN statistics in the (col, ch) lane layout
    s1 = np.zeros((192, 16), f32)
    for c in range(12):
        s1[c * 16 + np.arange(16), np.arange(16)] = 1.0
    s2 = np.zeros((160, 32), f32)
    for c in range(5):
        s2[c * 32 + np.arange(32), np.arange(32)] = 1.0

    # fc1 weight re-blocked so the (branch, pool-row) gather AND the PyTorch
    # channel-major flatten + branch concat are folded into the weight.
    fc1 = np.asarray(p['fc1_w'], f32).reshape(32, 2, 32, 5, 5)  # (o,br,co,pr,pc)
    w1blk = fc1.transpose(1, 3, 4, 2, 0).reshape(10, 160, 32)

    # fc4 / fc5 fused into one (128, 11) head matmul
    w45 = np.concatenate([np.asarray(p['fc4_w'], f32).T,
                          np.asarray(p['fc5_w'], f32).T], axis=1)
    b45 = np.concatenate([np.asarray(p['fc4_b'], f32),
                          np.asarray(p['fc5_b'], f32)])[None, :]

    def row(v):
        return jnp.asarray(np.asarray(v, f32)[None, :])

    return {
        'w1t': jnp.asarray(w1t),
        'b1r': row(np.tile(np.asarray(p['conv1_b'], f32), 12)),
        'g1': row(p['bn1_g']),
        'be1': row(np.tile(np.asarray(p['bn1_b'], f32), 12)),
        's1': jnp.asarray(s1), 's1t': jnp.asarray(s1.T),
        'w2te': jnp.asarray(w2te), 'w2to': jnp.asarray(w2to),
        'b2': row(np.tile(np.asarray(p['conv2_b'], f32), 5)),
        'g2': row(p['bn2_g']),
        'be2': row(np.tile(np.asarray(p['bn2_b'], f32), 5)),
        's2': jnp.asarray(s2), 's2t': jnp.asarray(s2.T),
        'w1blk': jnp.asarray(w1blk), 'fc1_b': row(p['fc1_b']),
        'g3': row(p['bn3_g']), 'be3': row(p['bn3_b']),
        'fc2_w': jnp.asarray(np.asarray(p['fc2_w'], f32).T),
        'fc2_b': row(p['fc2_b']),
        'g4': row(p['bn4_g']), 'be4': row(p['bn4_b']),
        'fc3_w': jnp.asarray(np.asarray(p['fc3_w'], f32).T),
        'fc3_b': row(p['fc3_b']),
        'g5': row(p['bn5_g']), 'be5': row(p['bn5_b']),
        'w45': jnp.asarray(w45), 'b45': jnp.asarray(b45),
    }


if __name__ == "__main__":
    k_params, k_x = jax.random.split(jax.random.PRNGKey(0))
    params = init_params(k_params)
    packed = pack_params(params)

    x = jax.random.normal(k_x, (2, 2, 14, 14), jnp.float32)

    fwd = jax.jit(net4_forward)
    out = jax.block_until_ready(fwd(x, packed))

    assert out.shape == (2, 21), out.shape
    assert bool(jnp.all(jnp.isfinite(out)))
    # digit heads share fc5 -> identical log-softmax blocks, each normalised
    assert bool(jnp.allclose(out[:, 1:11], out[:, 11:21]))
    assert bool(jnp.allclose(jnp.sum(jnp.exp(out[:, 1:11]), axis=1), 1.0,
                             atol=1e-3))
    print("KERNEL_OK")
</pallas_src>

<mosaic_0001>
module attributes {stable_mosaic.version = 11 : i64} {
  func.func @_net4_kernel(%arg0: memref<48x42xf32, #tpu.memory_space<vmem>>, %arg1: memref<42x192xf32, #tpu.memory_space<vmem>>, %arg2: memref<1x192xf32, #tpu.memory_space<vmem>>, %arg3: memref<1x16xf32, #tpu.memory_space<vmem>>, %arg4: memref<1x192xf32, #tpu.memory_space<vmem>>, %arg5: memref<192x16xf32, #tpu.memory_space<vmem>>, %arg6: memref<16x192xf32, #tpu.memory_space<vmem>>, %arg7: memref<3x192x160xf32, #tpu.memory_space<vmem>>, %arg8: memref<3x192x160xf32, #tpu.memory_space<vmem>>, %arg9: memref<1x160xf32, #tpu.memory_space<vmem>>, %arg10: memref<1x32xf32, #tpu.memory_space<vmem>>, %arg11: memref<1x160xf32, #tpu.memory_space<vmem>>, %arg12: memref<160x32xf32, #tpu.memory_space<vmem>>, %arg13: memref<32x160xf32, #tpu.memory_space<vmem>>, %arg14: memref<10x160x32xf32, #tpu.memory_space<vmem>>, %arg15: memref<1x32xf32, #tpu.memory_space<vmem>>, %arg16: memref<1x32xf32, #tpu.memory_space<vmem>>, %arg17: memref<1x32xf32, #tpu.memory_space<vmem>>, %arg18: memref<32x64xf32, #tpu.memory_space<vmem>>, %arg19: memref<1x64xf32, #tpu.memory_space<vmem>>, %arg20: memref<1x64xf32, #tpu.memory_space<vmem>>, %arg21: memref<1x64xf32, #tpu.memory_space<vmem>>, %arg22: memref<64x128xf32, #tpu.memory_space<vmem>>, %arg23: memref<1x128xf32, #tpu.memory_space<vmem>>, %arg24: memref<1x128xf32, #tpu.memory_space<vmem>>, %arg25: memref<1x128xf32, #tpu.memory_space<vmem>>, %arg26: memref<128x11xf32, #tpu.memory_space<vmem>>, %arg27: memref<1x11xf32, #tpu.memory_space<vmem>>, %arg28: memref<2x11xf32, #tpu.memory_space<vmem>>, %arg29: memref<24x192xf32, #tpu.memory_space<vmem>>) attributes {dimension_semantics = [], scalar_prefetch = 0 : i64, scratch_operands = 1 : i64, tpu.core_type = #tpu.core_type<tc>} {
    %cst = arith.constant 0.000000e+00 : f32
    %0 = vector.broadcast %cst : f32 to vector<2x32xf32>
    %c0 = arith.constant 0 : index
    %c0_0 = arith.constant 0 : index
    %1 = vector.load %arg0[%c0, %c0_0] : memref<48x42xf32, #tpu.memory_space<vmem>>, vector<24x42xf32>
    %c0_1 = arith.constant 0 : index
    %c0_2 = arith.constant 0 : index
    %2 = vector.load %arg1[%c0_1, %c0_2] : memref<42x192xf32, #tpu.memory_space<vmem>>, vector<42x192xf32>
    %cst_3 = arith.constant dense<0.000000e+00> : vector<24x192xf32>
    %3 = tpu.matmul %1, %2, %cst_3 {dimension_numbers = #tpu.dot_dimension_numbers<[1], [0], [0], [1], [0, 0, 1, 1], [], []>} : vector<24x42xf32>, vector<42x192xf32>, vector<24x192xf32> -> vector<24x192xf32>
    %c0_4 = arith.constant 0 : index
    %c0_5 = arith.constant 0 : index
    %4 = vector.load %arg2[%c0_4, %c0_5] : memref<1x192xf32, #tpu.memory_space<vmem>>, vector<1x192xf32>
    %5 = vector.broadcast %4 : vector<1x192xf32> to vector<24x192xf32>
    %6 = arith.addf %3, %5 : vector<24x192xf32>
    %c0_6 = arith.constant 0 : index
    %c0_7 = arith.constant 0 : index
    %7 = vector.load %arg5[%c0_6, %c0_7] : memref<192x16xf32, #tpu.memory_space<vmem>>, vector<192x16xf32>
    %c0_8 = arith.constant 0 : index
    %c0_9 = arith.constant 0 : index
    %8 = vector.load %arg6[%c0_8, %c0_9] : memref<16x192xf32, #tpu.memory_space<vmem>>, vector<16x192xf32>
    %c0_10 = arith.constant 0 : index
    %c0_11 = arith.constant 0 : index
    %9 = vector.load %arg3[%c0_10, %c0_11] : memref<1x16xf32, #tpu.memory_space<vmem>>, vector<1x16xf32>
    %c0_12 = arith.constant 0 : index
    %c0_13 = arith.constant 0 : index
    %10 = vector.load %arg4[%c0_12, %c0_13] : memref<1x192xf32, #tpu.memory_space<vmem>>, vector<1x192xf32>
    %cst_14 = arith.constant dense<0.000000e+00> : vector<192xf32>
    %11 = vector.multi_reduction <add>, %6, %cst_14 [0] : vector<24x192xf32> to vector<192xf32>
    %12 = vector.shape_cast %11 : vector<192xf32> to vector<1x192xf32>
    %cst_15 = arith.constant dense<0.000000e+00> : vector<1x16xf32>
    %13 = tpu.matmul %12, %7, %cst_15 {dimension_numbers = #tpu.dot_dimension_numbers<[1], [0], [0], [1], [0, 0, 1, 1], [], []>} : vector<1x192xf32>, vector<192x16xf32>, vector<1x16xf32> -> vector<1x16xf32>
    %cst_16 = arith.constant 0.00347222225 : f32
    %14 = vector.broadcast %cst_16 : f32 to vector<1x16xf32>
    %15 = arith.mulf %13, %14 : vector<1x16xf32>
    %cst_17 = arith.constant dense<0.000000e+00> : vector<1x192xf32>
    %16 = tpu.matmul %15, %8, %cst_17 {dimension_numbers = #tpu.dot_dimension_numbers<[1], [0], [0], [1], [0, 0, 1, 1], [], []>} : vector<1x16xf32>, vector<16x192xf32>, vector<1x192xf32> -> vector<1x192xf32>
    %17 = vector.broadcast %16 : vector<1x192xf32> to vector<24x192xf32>
    %18 = arith.subf %6, %17 : vector<24x192xf32>
    %19 = arith.mulf %18, %18 : vector<24x192xf32>
    %cst_18 = arith.constant dense<0.000000e+00> : vector<192xf32>
    %20 = vector.multi_reduction <add>, %19, %cst_18 [0] : vector<24x192xf32> to vector<192xf32>
    %21 = vector.shape_cast %20 : vector<192xf32> to vector<1x192xf32>
    %cst_19 = arith.constant dense<0.000000e+00> : vector<1x16xf32>
    %22 = tpu.matmul %21, %7, %cst_19 {dimension_numbers = #tpu.dot_dimension_numbers<[1], [0], [0], [1], [0, 0, 1, 1], [], []>} : vector<1x192xf32>, vector<192x16xf32>, vector<1x16xf32> -> vector<1x16xf32>
    %cst_20 = arith.constant 0.00347222225 : f32
    %23 = vector.broadcast %cst_20 : f32 to vector<1x16xf32>
    %24 = arith.mulf %22, %23 : vector<1x16xf32>
    %cst_21 = arith.constant 9.99999974E-6 : f32
    %25 = vector.broadcast %cst_21 : f32 to vector<1x16xf32>
    %26 = arith.addf %24, %25 : vector<1x16xf32>
    %27 = math.rsqrt %26 : vector<1x16xf32>
    %28 = arith.mulf %9, %27 : vector<1x16xf32>
    %cst_22 = arith.constant dense<0.000000e+00> : vector<1x192xf32>
    %29 = tpu.matmul %28, %8, %cst_22 {dimension_numbers = #tpu.dot_dimension_numbers<[1], [0], [0], [1], [0, 0, 1, 1], [], []>} : vector<1x16xf32>, vector<16x192xf32>, vector<1x192xf32> -> vector<1x192xf32>
    %30 = vector.broadcast %29 : vector<1x192xf32> to vector<24x192xf32>
    %31 = arith.mulf %18, %30 : vector<24x192xf32>
    %32 = vector.broadcast %10 : vector<1x192xf32> to vector<24x192xf32>
    %33 = arith.addf %31, %32 : vector<24x192xf32>
    %cst_23 = arith.constant 0.000000e+00 : f32
    %34 = vector.broadcast %cst_23 : f32 to vector<24x192xf32>
    %35 = arith.maximumf %33, %34 : vector<24x192xf32>
    %c0_24 = arith.constant 0 : index
    %c0_25 = arith.constant 0 : index
    %36 = vector.load %arg29[%c0_24, %c0_25] : memref<24x192xf32, #tpu.memory_space<vmem>>, vector<24x192xf32>
    tpu.vector_store %arg29[%c0_24, %c0_25], %35 {strides = array<i32>} : memref<24x192xf32, #tpu.memory_space<vmem>>, vector<24x192xf32>,
    %c0_26 = arith.constant 0 : index
    %c0_27 = arith.constant 0 : index
    %37 = vector.load %arg9[%c0_26, %c0_27] : memref<1x160xf32, #tpu.memory_space<vmem>>, vector<1x160xf32>
    %c0_28 = arith.constant 0 : index
    %c0_29 = arith.constant 0 : index
    %38 = vector.load %arg9[%c0_28, %c0_29] : memref<1x160xf32, #tpu.memory_space<vmem>>, vector<1x160xf32>
    %c0_30 = arith.constant 0 : index
    %c0_31 = arith.constant 0 : index
    %39 = vector.load %arg29[%c0_30, %c0_31] : memref<24x192xf32, #tpu.memory_space<vmem>>, vector<20x192xf32>
    %c0_32 = arith.constant 0 : index
    %c0_33 = arith.constant 0 : index
    %c0_34 = arith.constant 0 : index
    %40 = vector.load %arg7[%c0_32, %c0_33, %c0_34] : memref<3x192x160xf32, #tpu.memory_space<vmem>>, vector<1x192x160xf32>
    %41 = vector.shape_cast %40 : vector<1x192x160xf32> to vector<192x160xf32>
    %cst_35 = arith.constant dense<0.000000e+00> : vector<20x160xf32>
    %42 = tpu.matmul %39, %41, %cst_35 {dimension_numbers = #tpu.dot_dimension_numbers<[1], [0], [0], [1], [0, 0, 1, 1], [], []>} : vector<20x192xf32>, vector<192x160xf32>, vector<20x160xf32> -> vector<20x160xf32>
    %43 = vector.broadcast %37 : vector<1x160xf32> to vector<20x160xf32>
    %44 = arith.addf %43, %42 : vector<20x160xf32>
    %c0_36 = arith.constant 0 : index
    %c0_37 = arith.constant 0 : index
    %c0_38 = arith.constant 0 : index
    %45 = vector.load %arg8[%c0_36, %c0_37, %c0_38] : memref<3x192x160xf32, #tpu.memory_space<vmem>>, vector<1x192x160xf32>
    %46 = vector.shape_cast %45 : vector<1x192x160xf32> to vector<192x160xf32>
    %cst_39 = arith.constant dense<0.000000e+00> : vector<20x160xf32>
    %47 = tpu.matmul %39, %46, %cst_39 {dimension_numbers = #tpu.dot_dimension_numbers<[1], [0], [0], [1], [0, 0, 1, 1], [], []>} : vector<20x192xf32>, vector<192x160xf32>, vector<20x160xf32> -> vector<20x160xf32>
    %48 = vector.broadcast %38 : vector<1x160xf32> to vector<20x160xf32>
    %49 = arith.addf %48, %47 : vector<20x160xf32>
    %c2 = arith.constant 2 : index
    %c0_40 = arith.constant 0 : index
    %50 = vector.load %arg29[%c2, %c0_40] : memref<24x192xf32, #tpu.memory_space<vmem>>, vector<20x192xf32>
    %c1 = arith.constant 1 : index
    %c0_41 = arith.constant 0 : index
    %c0_42 = arith.constant 0 : index
    %51 = vector.load %arg7[%c1, %c0_41, %c0_42] : memref<3x192x160xf32, #tpu.memory_space<vmem>>, vector<1x192x160xf32>
    %52 = vector.shape_cast %51 : vector<1x192x160xf32> to vector<192x160xf32>
    %cst_43 = arith.constant dense<0.000000e+00> : vector<20x160xf32>
    %53 = tpu.matmul %50, %52, %cst_43 {dimension_numbers = #tpu.dot_dimension_numbers<[1], [0], [0], [1], [0, 0, 1, 1], [], []>} : vector<20x192xf32>, vector<192x160xf32>, vector<20x160xf32> -> vector<20x160xf32>
    %54 = arith.addf %44, %53 : vector<20x160xf32>
    %c1_44 = arith.constant 1 : index
    %c0_45 = arith.constant 0 : index
    %c0_46 = arith.constant 0 : index
    %55 = vector.load %arg8[%c1_44, %c0_45, %c0_46] : memref<3x192x160xf32, #tpu.memory_space<vmem>>, vector<1x192x160xf32>
    %56 = vector.shape_cast %55 : vector<1x192x160xf32> to vector<192x160xf32>
    %cst_47 = arith.constant dense<0.000000e+00> : vector<20x160xf32>
    %57 = tpu.matmul %50, %56, %cst_47 {dimension_numbers = #tpu.dot_dimension_numbers<[1], [0], [0], [1], [0, 0, 1, 1], [], []>} : vector<20x192xf32>, vector<192x160xf32>, vector<20x160xf32> -> vector<20x160xf32>
    %58 = arith.addf %49, %57 : vector<20x160xf32>
    %c4 = arith.constant 4 : index
    %c0_48 = arith.constant 0 : index
    %59 = vector.load %arg29[%c4, %c0_48] : memref<24x192xf32, #tpu.memory_space<vmem>>, vector<20x192xf32>
    %c2_49 = arith.constant 2 : index
    %c0_50 = arith.constant 0 : index
    %c0_51 = arith.constant 0 : index
    %60 = vector.load %arg7[%c2_49, %c0_50, %c0_51] : memref<3x192x160xf32, #tpu.memory_space<vmem>>, vector<1x192x160xf32>
    %61 = vector.shape_cast %60 : vector<1x192x160xf32> to vector<192x160xf32>
    %cst_52 = arith.constant dense<0.000000e+00> : vector<20x160xf32>
    %62 = tpu.matmul %59, %61, %cst_52 {dimension_numbers = #tpu.dot_dimension_numbers<[1], [0], [0], [1], [0, 0, 1, 1], [], []>} : vector<20x192xf32>, vector<192x160xf32>, vector<20x160xf32> -> vector<20x160xf32>
    %63 = arith.addf %54, %62 : vector<20x160xf32>
    %c2_53 = arith.constant 2 : index
    %c0_54 = arith.constant 0 : index
    %c0_55 = arith.constant 0 : index
    %64 = vector.load %arg8[%c2_53, %c0_54, %c0_55] : memref<3x192x160xf32, #tpu.memory_space<vmem>>, vector<1x192x160xf32>
    %65 = vector.shape_cast %64 : vector<1x192x160xf32> to vector<192x160xf32>
    %cst_56 = arith.constant dense<0.000000e+00> : vector<20x160xf32>
    %66 = tpu.matmul %59, %65, %cst_56 {dimension_numbers = #tpu.dot_dimension_numbers<[1], [0], [0], [1], [0, 0, 1, 1], [], []>} : vector<20x192xf32>, vector<192x160xf32>, vector<20x160xf32> -> vector<20x160xf32>
    %67 = arith.addf %58, %66 : vector<20x160xf32>
    %c0_57 = arith.constant 0 : index
    %c0_58 = arith.constant 0 : index
    %68 = vector.load %arg12[%c0_57, %c0_58] : memref<160x32xf32, #tpu.memory_space<vmem>>, vector<160x32xf32>
    %c0_59 = arith.constant 0 : index
    %c0_60 = arith.constant 0 : index
    %69 = vector.load %arg13[%c0_59, %c0_60] : memref<32x160xf32, #tpu.memory_space<vmem>>, vector<32x160xf32>
    %c0_61 = arith.constant 0 : index
    %c0_62 = arith.constant 0 : index
    %70 = vector.load %arg10[%c0_61, %c0_62] : memref<1x32xf32, #tpu.memory_space<vmem>>, vector<1x32xf32>
    %c0_63 = arith.constant 0 : index
    %c0_64 = arith.constant 0 : index
    %71 = vector.load %arg11[%c0_63, %c0_64] : memref<1x160xf32, #tpu.memory_space<vmem>>, vector<1x160xf32>
    %cst_65 = arith.constant dense<0.000000e+00> : vector<160xf32>
    %72 = vector.multi_reduction <add>, %63, %cst_65 [0] : vector<20x160xf32> to vector<160xf32>
    %73 = vector.shape_cast %72 : vector<160xf32> to vector<1x160xf32>
    %cst_66 = arith.constant dense<0.000000e+00> : vector<160xf32>
    %74 = vector.multi_reduction <add>, %67, %cst_66 [0] : vector<20x160xf32> to vector<160xf32>
    %75 = vector.shape_cast %74 : vector<160xf32> to vector<1x160xf32>
    %76 = arith.addf %73, %75 : vector<1x160xf32>
    %cst_67 = arith.constant dense<0.000000e+00> : vector<1x32xf32>
    %77 = tpu.matmul %76, %68, %cst_67 {dimension_numbers = #tpu.dot_dimension_numbers<[1], [0], [0], [1], [0, 0, 1, 1], [], []>} : vector<1x160xf32>, vector<160x32xf32>, vector<1x32xf32> -> vector<1x32xf32>
    %cst_68 = arith.constant 5.000000e-03 : f32
    %78 = vector.broadcast %cst_68 : f32 to vector<1x32xf32>
    %79 = arith.mulf %77, %78 : vector<1x32xf32>
    %cst_69 = arith.constant dense<0.000000e+00> : vector<1x160xf32>
    %80 = tpu.matmul %79, %69, %cst_69 {dimension_numbers = #tpu.dot_dimension_numbers<[1], [0], [0], [1], [0, 0, 1, 1], [], []>} : vector<1x32xf32>, vector<32x160xf32>, vector<1x160xf32> -> vector<1x160xf32>
    %81 = vector.broadcast %80 : vector<1x160xf32> to vector<20x160xf32>
    %82 = arith.subf %63, %81 : vector<20x160xf32>
    %83 = vector.broadcast %80 : vector<1x160xf32> to vector<20x160xf32>
    %84 = arith.subf %67, %83 : vector<20x160xf32>
    %85 = arith.mulf %82, %82 : vector<20x160xf32>
    %cst_70 = arith.constant dense<0.000000e+00> : vector<160xf32>
    %86 = vector.multi_reduction <add>, %85, %cst_70 [0] : vector<20x160xf32> to vector<160xf32>
    %87 = vector.shape_cast %86 : vector<160xf32> to vector<1x160xf32>
    %88 = arith.mulf %84, %84 : vector<20x160xf32>
    %cst_71 = arith.constant dense<0.000000e+00> : vector<160xf32>
    %89 = vector.multi_reduction <add>, %88, %cst_71 [0] : vector<20x160xf32> to vector<160xf32>
    %90 = vector.shape_cast %89 : vector<160xf32> to vector<1x160xf32>
    %91 = arith.addf %87, %90 : vector<1x160xf32>
    %cst_72 = arith.constant dense<0.000000e+00> : vector<1x32xf32>
    %92 = tpu.matmul %91, %68, %cst_72 {dimension_numbers = #tpu.dot_dimension_numbers<[1], [0], [0], [1], [0, 0, 1, 1], [], []>} : vector<1x160xf32>, vector<160x32xf32>, vector<1x32xf32> -> vector<1x32xf32>
    %cst_73 = arith.constant 5.000000e-03 : f32
    %93 = vector.broadcast %cst_73 : f32 to vector<1x32xf32>
    %94 = arith.mulf %92, %93 : vector<1x32xf32>
    %cst_74 = arith.constant 9.99999974E-6 : f32
    %95 = vector.broadcast %cst_74 : f32 to vector<1x32xf32>
    %96 = arith.addf %94, %95 : vector<1x32xf32>
    %97 = math.rsqrt %96 : vector<1x32xf32>
    %98 = arith.mulf %70, %97 : vector<1x32xf32>
    %cst_75 = arith.constant dense<0.000000e+00> : vector<1x160xf32>
    %99 = tpu.matmul %98, %69, %cst_75 {dimension_numbers = #tpu.dot_dimension_numbers<[1], [0], [0], [1], [0, 0, 1, 1], [], []>} : vector<1x32xf32>, vector<32x160xf32>, vector<1x160xf32> -> vector<1x160xf32>
    %100 = vector.broadcast %99 : vector<1x160xf32> to vector<20x160xf32>
    %101 = arith.mulf %82, %100 : vector<20x160xf32>
    %102 = vector.broadcast %71 : vector<1x160xf32> to vector<20x160xf32>
    %103 = arith.addf %101, %102 : vector<20x160xf32>
    %cst_76 = arith.constant 0.000000e+00 : f32
    %104 = vector.broadcast %cst_76 : f32 to vector<20x160xf32>
    %105 = arith.maximumf %103, %104 : vector<20x160xf32>
    %106 = vector.broadcast %99 : vector<1x160xf32> to vector<20x160xf32>
    %107 = arith.mulf %84, %106 : vector<20x160xf32>
    %108 = vector.broadcast %71 : vector<1x160xf32> to vector<20x160xf32>
    %109 = arith.addf %107, %108 : vector<20x160xf32>
    %cst_77 = arith.constant 0.000000e+00 : f32
    %110 = vector.broadcast %cst_77 : f32 to vector<20x160xf32>
    %111 = arith.maximumf %109, %110 : vector<20x160xf32>
    %112 = arith.maximumf %105, %111 : vector<20x160xf32>
    %113 = vector.extract_strided_slice %112 {offsets = [0, 0], sizes = [2, 160], strides = [1, 1]} : vector<20x160xf32> to vector<2x160xf32>
    %114 = vector.extract_strided_slice %112 {offsets = [2, 0], sizes = [2, 160], strides = [1, 1]} : vector<20x160xf32> to vector<2x160xf32>
    %115 = arith.maximumf %113, %114 : vector<2x160xf32>
    %c0_78 = arith.constant 0 : index
    %c0_79 = arith.constant 0 : index
    %c0_80 = arith.constant 0 : index
    %116 = vector.load %arg14[%c0_78, %c0_79, %c0_80] : memref<10x160x32xf32, #tpu.memory_space<vmem>>, vector<1x160x32xf32>
    %117 = vector.shape_cast %116 : vector<1x160x32xf32> to vector<160x32xf32>
    %cst_81 = arith.constant dense<0.000000e+00> : vector<2x32xf32>
    %118 = tpu.matmul %115, %117, %cst_81 {dimension_numbers = #tpu.dot_dimension_numbers<[1], [0], [0], [1], [0, 0, 1, 1], [], []>} : vector<2x160xf32>, vector<160x32xf32>, vector<2x32xf32> -> vector<2x32xf32>
    %119 = arith.addf %0, %118 : vector<2x32xf32>
    %120 = vector.extract_strided_slice %112 {offsets = [4, 0], sizes = [2, 160], strides = [1, 1]} : vector<20x160xf32> to vector<2x160xf32>
    %121 = vector.extract_strided_slice %112 {offsets = [6, 0], sizes = [2, 160], strides = [1, 1]} : vector<20x160xf32> to vector<2x160xf32>
    %122 = arith.maximumf %120, %121 : vector<2x160xf32>
    %c1_82 = arith.constant 1 : index
    %c0_83 = arith.constant 0 : index
    %c0_84 = arith.constant 0 : index
    %123 = vector.load %arg14[%c1_82, %c0_83, %c0_84] : memref<10x160x32xf32, #tpu.memory_space<vmem>>, vector<1x160x32xf32>
    %124 = vector.shape_cast %123 : vector<1x160x32xf32> to vector<160x32xf32>
    %cst_85 = arith.constant dense<0.000000e+00> : vector<2x32xf32>
    %125 = tpu.matmul %122, %124, %cst_85 {dimension_numbers = #tpu.dot_dimension_numbers<[1], [0], [0], [1], [0, 0, 1, 1], [], []>} : vector<2x160xf32>, vector<160x32xf32>, vector<2x32xf32> -> vector<2x32xf32>
    %126 = arith.addf %119, %125 : vector<2x32xf32>
    %127 = vector.extract_strided_slice %112 {offsets = [8, 0], sizes = [2, 160], strides = [1, 1]} : vector<20x160xf32> to vector<2x160xf32>
    %128 = vector.extract_strided_slice %112 {offsets = [10, 0], sizes = [2, 160], strides = [1, 1]} : vector<20x160xf32> to vector<2x160xf32>
    %129 = arith.maximumf %127, %128 : vector<2x160xf32>
    %c2_86 = arith.constant 2 : index
    %c0_87 = arith.constant 0 : index
    %c0_88 = arith.constant 0 : index
    %130 = vector.load %arg14[%c2_86, %c0_87, %c0_88] : memref<10x160x32xf32, #tpu.memory_space<vmem>>, vector<1x160x32xf32>
    %131 = vector.shape_cast %130 : vector<1x160x32xf32> to vector<160x32xf32>
    %cst_89 = arith.constant dense<0.000000e+00> : vector<2x32xf32>
    %132 = tpu.matmul %129, %131, %cst_89 {dimension_numbers = #tpu.dot_dimension_numbers<[1], [0], [0], [1], [0, 0, 1, 1], [], []>} : vector<2x160xf32>, vector<160x32xf32>, vector<2x32xf32> -> vector<2x32xf32>
    %133 = arith.addf %126, %132 : vector<2x32xf32>
    %134 = vector.extract_strided_slice %112 {offsets = [12, 0], sizes = [2, 160], strides = [1, 1]} : vector<20x160xf32> to vector<2x160xf32>
    %135 = vector.extract_strided_slice %112 {offsets = [14, 0], sizes = [2, 160], strides = [1, 1]} : vector<20x160xf32> to vector<2x160xf32>
    %136 = arith.maximumf %134, %135 : vector<2x160xf32>
    %c3 = arith.constant 3 : index
    %c0_90 = arith.constant 0 : index
    %c0_91 = arith.constant 0 : index
    %137 = vector.load %arg14[%c3, %c0_90, %c0_91] : memref<10x160x32xf32, #tpu.memory_space<vmem>>, vector<1x160x32xf32>
    %138 = vector.shape_cast %137 : vector<1x160x32xf32> to vector<160x32xf32>
    %cst_92 = arith.constant dense<0.000000e+00> : vector<2x32xf32>
    %139 = tpu.matmul %136, %138, %cst_92 {dimension_numbers = #tpu.dot_dimension_numbers<[1], [0], [0], [1], [0, 0, 1, 1], [], []>} : vector<2x160xf32>, vector<160x32xf32>, vector<2x32xf32> -> vector<2x32xf32>
    %140 = arith.addf %133, %139 : vector<2x32xf32>
    %141 = vector.extract_strided_slice %112 {offsets = [16, 0], sizes = [2, 160], strides = [1, 1]} : vector<20x160xf32> to vector<2x160xf32>
    %142 = vector.extract_strided_slice %112 {offsets = [18, 0], sizes = [2, 160], strides = [1, 1]} : vector<20x160xf32> to vector<2x160xf32>
    %143 = arith.maximumf %141, %142 : vector<2x160xf32>
    %c4_93 = arith.constant 4 : index
    %c0_94 = arith.constant 0 : index
    %c0_95 = arith.constant 0 : index
    %144 = vector.load %arg14[%c4_93, %c0_94, %c0_95] : memref<10x160x32xf32, #tpu.memory_space<vmem>>, vector<1x160x32xf32>
    %145 = vector.shape_cast %144 : vector<1x160x32xf32> to vector<160x32xf32>
    %cst_96 = arith.constant dense<0.000000e+00> : vector<2x32xf32>
    %146 = tpu.matmul %143, %145, %cst_96 {dimension_numbers = #tpu.dot_dimension_numbers<[1], [0], [0], [1], [0, 0, 1, 1], [], []>} : vector<2x160xf32>, vector<160x32xf32>, vector<2x32xf32> -> vector<2x32xf32>
    %147 = arith.addf %140, %146 : vector<2x32xf32>
    %c24 = arith.constant 24 : index
    %c0_97 = arith.constant 0 : index
    %148 = vector.load %arg0[%c24, %c0_97] : memref<48x42xf32, #tpu.memory_space<vmem>>, vector<24x42xf32>
    %c0_98 = arith.constant 0 : index
    %c0_99 = arith.constant 0 : index
    %149 = vector.load %arg1[%c0_98, %c0_99] : memref<42x192xf32, #tpu.memory_space<vmem>>, vector<42x192xf32>
    %cst_100 = arith.constant dense<0.000000e+00> : vector<24x192xf32>
    %150 = tpu.matmul %148, %149, %cst_100 {dimension_numbers = #tpu.dot_dimension_numbers<[1], [0], [0], [1], [0, 0, 1, 1], [], []>} : vector<24x42xf32>, vector<42x192xf32>, vector<24x192xf32> -> vector<24x192xf32>
    %c0_101 = arith.constant 0 : index
    %c0_102 = arith.constant 0 : index
    %151 = vector.load %arg2[%c0_101, %c0_102] : memref<1x192xf32, #tpu.memory_space<vmem>>, vector<1x192xf32>
    %152 = vector.broadcast %151 : vector<1x192xf32> to vector<24x192xf32>
    %153 = arith.addf %150, %152 : vector<24x192xf32>
    %c0_103 = arith.constant 0 : index
    %c0_104 = arith.constant 0 : index
    %154 = vector.load %arg5[%c0_103, %c0_104] : memref<192x16xf32, #tpu.memory_space<vmem>>, vector<192x16xf32>
    %c0_105 = arith.constant 0 : index
    %c0_106 = arith.constant 0 : index
    %155 = vector.load %arg6[%c0_105, %c0_106] : memref<16x192xf32, #tpu.memory_space<vmem>>, vector<16x192xf32>
    %c0_107 = arith.constant 0 : index
    %c0_108 = arith.constant 0 : index
    %156 = vector.load %arg3[%c0_107, %c0_108] : memref<1x16xf32, #tpu.memory_space<vmem>>, vector<1x16xf32>
    %c0_109 = arith.constant 0 : index
    %c0_110 = arith.constant 0 : index
    %157 = vector.load %arg4[%c0_109, %c0_110] : memref<1x192xf32, #tpu.memory_space<vmem>>, vector<1x192xf32>
    %cst_111 = arith.constant dense<0.000000e+00> : vector<192xf32>
    %158 = vector.multi_reduction <add>, %153, %cst_111 [0] : vector<24x192xf32> to vector<192xf32>
    %159 = vector.shape_cast %158 : vector<192xf32> to vector<1x192xf32>
    %cst_112 = arith.constant dense<0.000000e+00> : vector<1x16xf32>
    %160 = tpu.matmul %159, %154, %cst_112 {dimension_numbers = #tpu.dot_dimension_numbers<[1], [0], [0], [1], [0, 0, 1, 1], [], []>} : vector<1x192xf32>, vector<192x16xf32>, vector<1x16xf32> -> vector<1x16xf32>
    %cst_113 = arith.constant 0.00347222225 : f32
    %161 = vector.broadcast %cst_113 : f32 to vector<1x16xf32>
    %162 = arith.mulf %160, %161 : vector<1x16xf32>
    %cst_114 = arith.constant dense<0.000000e+00> : vector<1x192xf32>
    %163 = tpu.matmul %162, %155, %cst_114 {dimension_numbers = #tpu.dot_dimension_numbers<[1], [0], [0], [1], [0, 0, 1, 1], [], []>} : vector<1x16xf32>, vector<16x192xf32>, vector<1x192xf32> -> vector<1x192xf32>
    %164 = vector.broadcast %163 : vector<1x192xf32> to vector<24x192xf32>
    %165 = arith.subf %153, %164 : vector<24x192xf32>
    %166 = arith.mulf %165, %165 : vector<24x192xf32>
    %cst_115 = arith.constant dense<0.000000e+00> : vector<192xf32>
    %167 = vector.multi_reduction <add>, %166, %cst_115 [0] : vector<24x192xf32> to vector<192xf32>
    %168 = vector.shape_cast %167 : vector<192xf32> to vector<1x192xf32>
    %cst_116 = arith.constant dense<0.000000e+00> : vector<1x16xf32>
    %169 = tpu.matmul %168, %154, %cst_116 {dimension_numbers = #tpu.dot_dimension_numbers<[1], [0], [0], [1], [0, 0, 1, 1], [], []>} : vector<1x192xf32>, vector<192x16xf32>, vector<1x16xf32> -> vector<1x16xf32>
    %cst_117 = arith.constant 0.00347222225 : f32
    %170 = vector.broadcast %cst_117 : f32 to vector<1x16xf32>
    %171 = arith.mulf %169, %170 : vector<1x16xf32>
    %cst_118 = arith.constant 9.99999974E-6 : f32
    %172 = vector.broadcast %cst_118 : f32 to vector<1x16xf32>
    %173 = arith.addf %171, %172 : vector<1x16xf32>
    %174 = math.rsqrt %173 : vector<1x16xf32>
    %175 = arith.mulf %156, %174 : vector<1x16xf32>
    %cst_119 = arith.constant dense<0.000000e+00> : vector<1x192xf32>
    %176 = tpu.matmul %175, %155, %cst_119 {dimension_numbers = #tpu.dot_dimension_numbers<[1], [0], [0], [1], [0, 0, 1, 1], [], []>} : vector<1x16xf32>, vector<16x192xf32>, vector<1x192xf32> -> vector<1x192xf32>
    %177 = vector.broadcast %176 : vector<1x192xf32> to vector<24x192xf32>
    %178 = arith.mulf %165, %177 : vector<24x192xf32>
    %179 = vector.broadcast %157 : vector<1x192xf32> to vector<24x192xf32>
    %180 = arith.addf %178, %179 : vector<24x192xf32>
    %cst_120 = arith.constant 0.000000e+00 : f32
    %181 = vector.broadcast %cst_120 : f32 to vector<24x192xf32>
    %182 = arith.maximumf %180, %181 : vector<24x192xf32>
    %c0_121 = arith.constant 0 : index
    %c0_122 = arith.constant 0 : index
    %183 = vector.load %arg29[%c0_121, %c0_122] : memref<24x192xf32, #tpu.memory_space<vmem>>, vector<24x192xf32>
    tpu.vector_store %arg29[%c0_121, %c0_122], %182 {strides = array<i32>} : memref<24x192xf32, #tpu.memory_space<vmem>>, vector<24x192xf32>,
    %c0_123 = arith.constant 0 : index
    %c0_124 = arith.constant 0 : index
    %184 = vector.load %arg9[%c0_123, %c0_124] : memref<1x160xf32, #tpu.memory_space<vmem>>, vector<1x160xf32>
    %c0_125 = arith.constant 0 : index
    %c0_126 = arith.constant 0 : index
    %185 = vector.load %arg9[%c0_125, %c0_126] : memref<1x160xf32, #tpu.memory_space<vmem>>, vector<1x160xf32>
    %c0_127 = arith.constant 0 : index
    %c0_128 = arith.constant 0 : index
    %186 = vector.load %arg29[%c0_127, %c0_128] : memref<24x192xf32, #tpu.memory_space<vmem>>, vector<20x192xf32>
    %c0_129 = arith.constant 0 : index
    %c0_130 = arith.constant 0 : index
    %c0_131 = arith.constant 0 : index
    %187 = vector.load %arg7[%c0_129, %c0_130, %c0_131] : memref<3x192x160xf32, #tpu.memory_space<vmem>>, vector<1x192x160xf32>
    %188 = vector.shape_cast %187 : vector<1x192x160xf32> to vector<192x160xf32>
    %cst_132 = arith.constant dense<0.000000e+00> : vector<20x160xf32>
    %189 = tpu.matmul %186, %188, %cst_132 {dimension_numbers = #tpu.dot_dimension_numbers<[1], [0], [0], [1], [0, 0, 1, 1], [], []>} : vector<20x192xf32>, vector<192x160xf32>, vector<20x160xf32> -> vector<20x160xf32>
    %190 = vector.broadcast %184 : vector<1x160xf32> to vector<20x160xf32>
    %191 = arith.addf %190, %189 : vector<20x160xf32>
    %c0_133 = arith.constant 0 : index
    %c0_134 = arith.constant 0 : index
    %c0_135 = arith.constant 0 : index
    %192 = vector.load %arg8[%c0_133, %c0_134, %c0_135] : memref<3x192x160xf32, #tpu.memory_space<vmem>>, vector<1x192x160xf32>
    %193 = vector.shape_cast %192 : vector<1x192x160xf32> to vector<192x160xf32>
    %cst_136 = arith.constant dense<0.000000e+00> : vector<20x160xf32>
    %194 = tpu.matmul %186, %193, %cst_136 {dimension_numbers = #tpu.dot_dimension_numbers<[1], [0], [0], [1], [0, 0, 1, 1], [], []>} : vector<20x192xf32>, vector<192x160xf32>, vector<20x160xf32> -> vector<20x160xf32>
    %195 = vector.broadcast %185 : vector<1x160xf32> to vector<20x160xf32>
    %196 = arith.addf %195, %194 : vector<20x160xf32>
    %c2_137 = arith.constant 2 : index
    %c0_138 = arith.constant 0 : index
    %197 = vector.load %arg29[%c2_137, %c0_138] : memref<24x192xf32, #tpu.memory_space<vmem>>, vector<20x192xf32>
    %c1_139 = arith.constant 1 : index
    %c0_140 = arith.constant 0 : index
    %c0_141 = arith.constant 0 : index
    %198 = vector.load %arg7[%c1_139, %c0_140, %c0_141] : memref<3x192x160xf32, #tpu.memory_space<vmem>>, vector<1x192x160xf32>
    %199 = vector.shape_cast %198 : vector<1x192x160xf32> to vector<192x160xf32>
    %cst_142 = arith.constant dense<0.000000e+00> : vector<20x160xf32>
    %200 = tpu.matmul %197, %199, %cst_142 {dimension_numbers = #tpu.dot_dimension_numbers<[1], [0], [0], [1], [0, 0, 1, 1], [], []>} : vector<20x192xf32>, vector<192x160xf32>, vector<20x160xf32> -> vector<20x160xf32>
    %201 = arith.addf %191, %200 : vector<20x160xf32>
    %c1_143 = arith.constant 1 : index
    %c0_144 = arith.constant 0 : index
    %c0_145 = arith.constant 0 : index
    %202 = vector.load %arg8[%c1_143, %c0_144, %c0_145] : memref<3x192x160xf32, #tpu.memory_space<vmem>>, vector<1x192x160xf32>
    %203 = vector.shape_cast %202 : vector<1x192x160xf32> to vector<192x160xf32>
    %cst_146 = arith.constant dense<0.000000e+00> : vector<20x160xf32>
    %204 = tpu.matmul %197, %203, %cst_146 {dimension_numbers = #tpu.dot_dimension_numbers<[1], [0], [0], [1], [0, 0, 1, 1], [], []>} : vector<20x192xf32>, vector<192x160xf32>, vector<20x160xf32> -> vector<20x160xf32>
    %205 = arith.addf %196, %204 : vector<20x160xf32>
    %c4_147 = arith.constant 4 : index
    %c0_148 = arith.constant 0 : index
    %206 = vector.load %arg29[%c4_147, %c0_148] : memref<24x192xf32, #tpu.memory_space<vmem>>, vector<20x192xf32>
    %c2_149 = arith.constant 2 : index
    %c0_150 = arith.constant 0 : index
    %c0_151 = arith.constant 0 : index
    %207 = vector.load %arg7[%c2_149, %c0_150, %c0_151] : memref<3x192x160xf32, #tpu.memory_space<vmem>>, vector<1x192x160xf32>
    %208 = vector.shape_cast %207 : vector<1x192x160xf32> to vector<192x160xf32>
    %cst_152 = arith.constant dense<0.000000e+00> : vector<20x160xf32>
    %209 = tpu.matmul %206, %208, %cst_152 {dimension_numbers = #tpu.dot_dimension_numbers<[1], [0], [0], [1], [0, 0, 1, 1], [], []>} : vector<20x192xf32>, vector<192x160xf32>, vector<20x160xf32> -> vector<20x160xf32>
    %210 = arith.addf %201, %209 : vector<20x160xf32>
    %c2_153 = arith.constant 2 : index
    %c0_154 = arith.constant 0 : index
    %c0_155 = arith.constant 0 : index
    %211 = vector.load %arg8[%c2_153, %c0_154, %c0_155] : memref<3x192x160xf32, #tpu.memory_space<vmem>>, vector<1x192x160xf32>
    %212 = vector.shape_cast %211 : vector<1x192x160xf32> to vector<192x160xf32>
    %cst_156 = arith.constant dense<0.000000e+00> : vector<20x160xf32>
    %213 = tpu.matmul %206, %212, %cst_156 {dimension_numbers = #tpu.dot_dimension_numbers<[1], [0], [0], [1], [0, 0, 1, 1], [], []>} : vector<20x192xf32>, vector<192x160xf32>, vector<20x160xf32> -> vector<20x160xf32>
    %214 = arith.addf %205, %213 : vector<20x160xf32>
    %c0_157 = arith.constant 0 : index
    %c0_158 = arith.constant 0 : index
    %215 = vector.load %arg12[%c0_157, %c0_158] : memref<160x32xf32, #tpu.memory_space<vmem>>, vector<160x32xf32>
    %c0_159 = arith.constant 0 : index
    %c0_160 = arith.constant 0 : index
    %216 = vector.load %arg13[%c0_159, %c0_160] : memref<32x160xf32, #tpu.memory_space<vmem>>, vector<32x160xf32>
    %c0_161 = arith.constant 0 : index
    %c0_162 = arith.constant 0 : index
    %217 = vector.load %arg10[%c0_161, %c0_162] : memref<1x32xf32, #tpu.memory_space<vmem>>, vector<1x32xf32>
    %c0_163 = arith.constant 0 : index
    %c0_164 = arith.constant 0 : index
    %218 = vector.load %arg11[%c0_163, %c0_164] : memref<1x160xf32, #tpu.memory_space<vmem>>, vector<1x160xf32>
    %cst_165 = arith.constant dense<0.000000e+00> : vector<160xf32>
    %219 = vector.multi_reduction <add>, %210, %cst_165 [0] : vector<20x160xf32> to vector<160xf32>
    %220 = vector.shape_cast %219 : vector<160xf32> to vector<1x160xf32>
    %cst_166 = arith.constant dense<0.000000e+00> : vector<160xf32>
    %221 = vector.multi_reduction <add>, %214, %cst_166 [0] : vector<20x160xf32> to vector<160xf32>
    %222 = vector.shape_cast %221 : vector<160xf32> to vector<1x160xf32>
    %223 = arith.addf %220, %222 : vector<1x160xf32>
    %cst_167 = arith.constant dense<0.000000e+00> : vector<1x32xf32>
    %224 = tpu.matmul %223, %215, %cst_167 {dimension_numbers = #tpu.dot_dimension_numbers<[1], [0], [0], [1], [0, 0, 1, 1], [], []>} : vector<1x160xf32>, vector<160x32xf32>, vector<1x32xf32> -> vector<1x32xf32>
    %cst_168 = arith.constant 5.000000e-03 : f32
    %225 = vector.broadcast %cst_168 : f32 to vector<1x32xf32>
    %226 = arith.mulf %224, %225 : vector<1x32xf32>
    %cst_169 = arith.constant dense<0.000000e+00> : vector<1x160xf32>
    %227 = tpu.matmul %226, %216, %cst_169 {dimension_numbers = #tpu.dot_dimension_numbers<[1], [0], [0], [1], [0, 0, 1, 1], [], []>} : vector<1x32xf32>, vector<32x160xf32>, vector<1x160xf32> -> vector<1x160xf32>
    %228 = vector.broadcast %227 : vector<1x160xf32> to vector<20x160xf32>
    %229 = arith.subf %210, %228 : vector<20x160xf32>
    %230 = vector.broadcast %227 : vector<1x160xf32> to vector<20x160xf32>
    %231 = arith.subf %214, %230 : vector<20x160xf32>
    %232 = arith.mulf %229, %229 : vector<20x160xf32>
    %cst_170 = arith.constant dense<0.000000e+00> : vector<160xf32>
    %233 = vector.multi_reduction <add>, %232, %cst_170 [0] : vector<20x160xf32> to vector<160xf32>
    %234 = vector.shape_cast %233 : vector<160xf32> to vector<1x160xf32>
    %235 = arith.mulf %231, %231 : vector<20x160xf32>
    %cst_171 = arith.constant dense<0.000000e+00> : vector<160xf32>
    %236 = vector.multi_reduction <add>, %235, %cst_171 [0] : vector<20x160xf32> to vector<160xf32>
    %237 = vector.shape_cast %236 : vector<160xf32> to vector<1x160xf32>
    %238 = arith.addf %234, %237 : vector<1x160xf32>
    %cst_172 = arith.constant dense<0.000000e+00> : vector<1x32xf32>
    %239 = tpu.matmul %238, %215, %cst_172 {dimension_numbers = #tpu.dot_dimension_numbers<[1], [0], [0], [1], [0, 0, 1, 1], [], []>} : vector<1x160xf32>, vector<160x32xf32>, vector<1x32xf32> -> vector<1x32xf32>
    %cst_173 = arith.constant 5.000000e-03 : f32
    %240 = vector.broadcast %cst_173 : f32 to vector<1x32xf32>
    %241 = arith.mulf %239, %240 : vector<1x32xf32>
    %cst_174 = arith.constant 9.99999974E-6 : f32
    %242 = vector.broadcast %cst_174 : f32 to vector<1x32xf32>
    %243 = arith.addf %241, %242 : vector<1x32xf32>
    %244 = math.rsqrt %243 : vector<1x32xf32>
    %245 = arith.mulf %217, %244 : vector<1x32xf32>
    %cst_175 = arith.constant dense<0.000000e+00> : vector<1x160xf32>
    %246 = tpu.matmul %245, %216, %cst_175 {dimension_numbers = #tpu.dot_dimension_numbers<[1], [0], [0], [1], [0, 0, 1, 1], [], []>} : vector<1x32xf32>, vector<32x160xf32>, vector<1x160xf32> -> vector<1x160xf32>
    %247 = vector.broadcast %246 : vector<1x160xf32> to vector<20x160xf32>
    %248 = arith.mulf %229, %247 : vector<20x160xf32>
    %249 = vector.broadcast %218 : vector<1x160xf32> to vector<20x160xf32>
    %250 = arith.addf %248, %249 : vector<20x160xf32>
    %cst_176 = arith.constant 0.000000e+00 : f32
    %251 = vector.broadcast %cst_176 : f32 to vector<20x160xf32>
    %252 = arith.maximumf %250, %251 : vector<20x160xf32>
    %253 = vector.broadcast %246 : vector<1x160xf32> to vector<20x160xf32>
    %254 = arith.mulf %231, %253 : vector<20x160xf32>
    %255 = vector.broadcast %218 : vector<1x160xf32> to vector<20x160xf32>
    %256 = arith.addf %254, %255 : vector<20x160xf32>
    %cst_177 = arith.constant 0.000000e+00 : f32
    %257 = vector.broadcast %cst_177 : f32 to vector<20x160xf32>
    %258 = arith.maximumf %256, %257 : vector<20x160xf32>
    %259 = arith.maximumf %252, %258 : vector<20x160xf32>
    %260 = vector.extract_strided_slice %259 {offsets = [0, 0], sizes = [2, 160], strides = [1, 1]} : vector<20x160xf32> to vector<2x160xf32>
    %261 = vector.extract_strided_slice %259 {offsets = [2, 0], sizes = [2, 160], strides = [1, 1]} : vector<20x160xf32> to vector<2x160xf32>
    %262 = arith.maximumf %260, %261 : vector<2x160xf32>
    %c5 = arith.constant 5 : index
    %c0_178 = arith.constant 0 : index
    %c0_179 = arith.constant 0 : index
    %263 = vector.load %arg14[%c5, %c0_178, %c0_179] : memref<10x160x32xf32, #tpu.memory_space<vmem>>, vector<1x160x32xf32>
    %264 = vector.shape_cast %263 : vector<1x160x32xf32> to vector<160x32xf32>
    %cst_180 = arith.constant dense<0.000000e+00> : vector<2x32xf32>
    %265 = tpu.matmul %262, %264, %cst_180 {dimension_numbers = #tpu.dot_dimension_numbers<[1], [0], [0], [1], [0, 0, 1, 1], [], []>} : vector<2x160xf32>, vector<160x32xf32>, vector<2x32xf32> -> vector<2x32xf32>
    %266 = arith.addf %147, %265 : vector<2x32xf32>
    %267 = vector.extract_strided_slice %259 {offsets = [4, 0], sizes = [2, 160], strides = [1, 1]} : vector<20x160xf32> to vector<2x160xf32>
    %268 = vector.extract_strided_slice %259 {offsets = [6, 0], sizes = [2, 160], strides = [1, 1]} : vector<20x160xf32> to vector<2x160xf32>
    %269 = arith.maximumf %267, %268 : vector<2x160xf32>
    %c6 = arith.constant 6 : index
    %c0_181 = arith.constant 0 : index
    %c0_182 = arith.constant 0 : index
    %270 = vector.load %arg14[%c6, %c0_181, %c0_182] : memref<10x160x32xf32, #tpu.memory_space<vmem>>, vector<1x160x32xf32>
    %271 = vector.shape_cast %270 : vector<1x160x32xf32> to vector<160x32xf32>
    %cst_183 = arith.constant dense<0.000000e+00> : vector<2x32xf32>
    %272 = tpu.matmul %269, %271, %cst_183 {dimension_numbers = #tpu.dot_dimension_numbers<[1], [0], [0], [1], [0, 0, 1, 1], [], []>} : vector<2x160xf32>, vector<160x32xf32>, vector<2x32xf32> -> vector<2x32xf32>
    %273 = arith.addf %266, %272 : vector<2x32xf32>
    %274 = vector.extract_strided_slice %259 {offsets = [8, 0], sizes = [2, 160], strides = [1, 1]} : vector<20x160xf32> to vector<2x160xf32>
    %275 = vector.extract_strided_slice %259 {offsets = [10, 0], sizes = [2, 160], strides = [1, 1]} : vector<20x160xf32> to vector<2x160xf32>
    %276 = arith.maximumf %274, %275 : vector<2x160xf32>
    %c7 = arith.constant 7 : index
    %c0_184 = arith.constant 0 : index
    %c0_185 = arith.constant 0 : index
    %277 = vector.load %arg14[%c7, %c0_184, %c0_185] : memref<10x160x32xf32, #tpu.memory_space<vmem>>, vector<1x160x32xf32>
    %278 = vector.shape_cast %277 : vector<1x160x32xf32> to vector<160x32xf32>
    %cst_186 = arith.constant dense<0.000000e+00> : vector<2x32xf32>
    %279 = tpu.matmul %276, %278, %cst_186 {dimension_numbers = #tpu.dot_dimension_numbers<[1], [0], [0], [1], [0, 0, 1, 1], [], []>} : vector<2x160xf32>, vector<160x32xf32>, vector<2x32xf32> -> vector<2x32xf32>
    %280 = arith.addf %273, %279 : vector<2x32xf32>
    %281 = vector.extract_strided_slice %259 {offsets = [12, 0], sizes = [2, 160], strides = [1, 1]} : vector<20x160xf32> to vector<2x160xf32>
    %282 = vector.extract_strided_slice %259 {offsets = [14, 0], sizes = [2, 160], strides = [1, 1]} : vector<20x160xf32> to vector<2x160xf32>
    %283 = arith.maximumf %281, %282 : vector<2x160xf32>
    %c8 = arith.constant 8 : index
    %c0_187 = arith.constant 0 : index
    %c0_188 = arith.constant 0 : index
    %284 = vector.load %arg14[%c8, %c0_187, %c0_188] : memref<10x160x32xf32, #tpu.memory_space<vmem>>, vector<1x160x32xf32>
    %285 = vector.shape_cast %284 : vector<1x160x32xf32> to vector<160x32xf32>
    %cst_189 = arith.constant dense<0.000000e+00> : vector<2x32xf32>
    %286 = tpu.matmul %283, %285, %cst_189 {dimension_numbers = #tpu.dot_dimension_numbers<[1], [0], [0], [1], [0, 0, 1, 1], [], []>} : vector<2x160xf32>, vector<160x32xf32>, vector<2x32xf32> -> vector<2x32xf32>
    %287 = arith.addf %280, %286 : vector<2x32xf32>
    %288 = vector.extract_strided_slice %259 {offsets = [16, 0], sizes = [2, 160], strides = [1, 1]} : vector<20x160xf32> to vector<2x160xf32>
    %289 = vector.extract_strided_slice %259 {offsets = [18, 0], sizes = [2, 160], strides = [1, 1]} : vector<20x160xf32> to vector<2x160xf32>
    %290 = arith.maximumf %288, %289 : vector<2x160xf32>
    %c9 = arith.constant 9 : index
    %c0_190 = arith.constant 0 : index
    %c0_191 = arith.constant 0 : index
    %291 = vector.load %arg14[%c9, %c0_190, %c0_191] : memref<10x160x32xf32, #tpu.memory_space<vmem>>, vector<1x160x32xf32>
    %292 = vector.shape_cast %291 : vector<1x160x32xf32> to vector<160x32xf32>
    %cst_192 = arith.constant dense<0.000000e+00> : vector<2x32xf32>
    %293 = tpu.matmul %290, %292, %cst_192 {dimension_numbers = #tpu.dot_dimension_numbers<[1], [0], [0], [1], [0, 0, 1, 1], [], []>} : vector<2x160xf32>, vector<160x32xf32>, vector<2x32xf32> -> vector<2x32xf32>
    %294 = arith.addf %287, %293 : vector<2x32xf32>
    %c0_193 = arith.constant 0 : index
    %c0_194 = arith.constant 0 : index
    %295 = vector.load %arg15[%c0_193, %c0_194] : memref<1x32xf32, #tpu.memory_space<vmem>>, vector<1x32xf32>
    %296 = vector.broadcast %295 : vector<1x32xf32> to vector<2x32xf32>
    %297 = arith.addf %294, %296 : vector<2x32xf32>
    %c0_195 = arith.constant 0 : index
    %c0_196 = arith.constant 0 : index
    %298 = vector.load %arg16[%c0_195, %c0_196] : memref<1x32xf32, #tpu.memory_space<vmem>>, vector<1x32xf32>
    %c0_197 = arith.constant 0 : index
    %c0_198 = arith.constant 0 : index
    %299 = vector.load %arg17[%c0_197, %c0_198] : memref<1x32xf32, #tpu.memory_space<vmem>>, vector<1x32xf32>
    %cst_199 = arith.constant dense<0.000000e+00> : vector<32xf32>
    %300 = vector.multi_reduction <add>, %297, %cst_199 [0] : vector<2x32xf32> to vector<32xf32>
    %301 = vector.shape_cast %300 : vector<32xf32> to vector<1x32xf32>
    %cst_200 = arith.constant 5.000000e-01 : f32
    %302 = vector.broadcast %cst_200 : f32 to vector<1x32xf32>
    %303 = arith.mulf %301, %302 : vector<1x32xf32>
    %304 = vector.broadcast %303 : vector<1x32xf32> to vector<2x32xf32>
    %305 = arith.subf %297, %304 : vector<2x32xf32>
    %306 = arith.mulf %305, %305 : vector<2x32xf32>
    %cst_201 = arith.constant dense<0.000000e+00> : vector<32xf32>
    %307 = vector.multi_reduction <add>, %306, %cst_201 [0] : vector<2x32xf32> to vector<32xf32>
    %308 = vector.shape_cast %307 : vector<32xf32> to vector<1x32xf32>
    %cst_202 = arith.constant 5.000000e-01 : f32
    %309 = vector.broadcast %cst_202 : f32 to vector<1x32xf32>
    %310 = arith.mulf %308, %309 : vector<1x32xf32>
    %cst_203 = arith.constant 9.99999974E-6 : f32
    %311 = vector.broadcast %cst_203 : f32 to vector<1x32xf32>
    %312 = arith.addf %310, %311 : vector<1x32xf32>
    %313 = math.rsqrt %312 : vector<1x32xf32>
    %314 = arith.mulf %298, %313 : vector<1x32xf32>
    %315 = vector.broadcast %314 : vector<1x32xf32> to vector<2x32xf32>
    %316 = arith.mulf %305, %315 : vector<2x32xf32>
    %317 = vector.broadcast %299 : vector<1x32xf32> to vector<2x32xf32>
    %318 = arith.addf %316, %317 : vector<2x32xf32>
    %cst_204 = arith.constant 0.000000e+00 : f32
    %319 = vector.broadcast %cst_204 : f32 to vector<2x32xf32>
    %320 = arith.maximumf %318, %319 : vector<2x32xf32>
    %c0_205 = arith.constant 0 : index
    %c0_206 = arith.constant 0 : index
    %321 = vector.load %arg18[%c0_205, %c0_206] : memref<32x64xf32, #tpu.memory_space<vmem>>, vector<32x64xf32>
    %cst_207 = arith.constant dense<0.000000e+00> : vector<2x64xf32>
    %322 = tpu.matmul %320, %321, %cst_207 {dimension_numbers = #tpu.dot_dimension_numbers<[1], [0], [0], [1], [0, 0, 1, 1], [], []>} : vector<2x32xf32>, vector<32x64xf32>, vector<2x64xf32> -> vector<2x64xf32>
    %c0_208 = arith.constant 0 : index
    %c0_209 = arith.constant 0 : index
    %323 = vector.load %arg19[%c0_208, %c0_209] : memref<1x64xf32, #tpu.memory_space<vmem>>, vector<1x64xf32>
    %324 = vector.broadcast %323 : vector<1x64xf32> to vector<2x64xf32>
    %325 = arith.addf %322, %324 : vector<2x64xf32>
    %c0_210 = arith.constant 0 : index
    %c0_211 = arith.constant 0 : index
    %326 = vector.load %arg20[%c0_210, %c0_211] : memref<1x64xf32, #tpu.memory_space<vmem>>, vector<1x64xf32>
    %c0_212 = arith.constant 0 : index
    %c0_213 = arith.constant 0 : index
    %327 = vector.load %arg21[%c0_212, %c0_213] : memref<1x64xf32, #tpu.memory_space<vmem>>, vector<1x64xf32>
    %cst_214 = arith.constant dense<0.000000e+00> : vector<64xf32>
    %328 = vector.multi_reduction <add>, %325, %cst_214 [0] : vector<2x64xf32> to vector<64xf32>
    %329 = vector.shape_cast %328 : vector<64xf32> to vector<1x64xf32>
    %cst_215 = arith.constant 5.000000e-01 : f32
    %330 = vector.broadcast %cst_215 : f32 to vector<1x64xf32>
    %331 = arith.mulf %329, %330 : vector<1x64xf32>
    %332 = vector.broadcast %331 : vector<1x64xf32> to vector<2x64xf32>
    %333 = arith.subf %325, %332 : vector<2x64xf32>
    %334 = arith.mulf %333, %333 : vector<2x64xf32>
    %cst_216 = arith.constant dense<0.000000e+00> : vector<64xf32>
    %335 = vector.multi_reduction <add>, %334, %cst_216 [0] : vector<2x64xf32> to vector<64xf32>
    %336 = vector.shape_cast %335 : vector<64xf32> to vector<1x64xf32>
    %cst_217 = arith.constant 5.000000e-01 : f32
    %337 = vector.broadcast %cst_217 : f32 to vector<1x64xf32>
    %338 = arith.mulf %336, %337 : vector<1x64xf32>
    %cst_218 = arith.constant 9.99999974E-6 : f32
    %339 = vector.broadcast %cst_218 : f32 to vector<1x64xf32>
    %340 = arith.addf %338, %339 : vector<1x64xf32>
    %341 = math.rsqrt %340 : vector<1x64xf32>
    %342 = arith.mulf %326, %341 : vector<1x64xf32>
    %343 = vector.broadcast %342 : vector<1x64xf32> to vector<2x64xf32>
    %344 = arith.mulf %333, %343 : vector<2x64xf32>
    %345 = vector.broadcast %327 : vector<1x64xf32> to vector<2x64xf32>
    %346 = arith.addf %344, %345 : vector<2x64xf32>
    %cst_219 = arith.constant 0.000000e+00 : f32
    %347 = vector.broadcast %cst_219 : f32 to vector<2x64xf32>
    %348 = arith.maximumf %346, %347 : vector<2x64xf32>
    %c0_220 = arith.constant 0 : index
    %c0_221 = arith.constant 0 : index
    %349 = vector.load %arg22[%c0_220, %c0_221] : memref<64x128xf32, #tpu.memory_space<vmem>>, vector<64x128xf32>
    %cst_222 = arith.constant dense<0.000000e+00> : vector<2x128xf32>
    %350 = tpu.matmul %348, %349, %cst_222 {dimension_numbers = #tpu.dot_dimension_numbers<[1], [0], [0], [1], [0, 0, 1, 1], [], []>} : vector<2x64xf32>, vector<64x128xf32>, vector<2x128xf32> -> vector<2x128xf32>
    %c0_223 = arith.constant 0 : index
    %c0_224 = arith.constant 0 : index
    %351 = vector.load %arg23[%c0_223, %c0_224] : memref<1x128xf32, #tpu.memory_space<vmem>>, vector<1x128xf32>
    %352 = vector.broadcast %351 : vector<1x128xf32> to vector<2x128xf32>
    %353 = arith.addf %350, %352 : vector<2x128xf32>
    %c0_225 = arith.constant 0 : index
    %c0_226 = arith.constant 0 : index
    %354 = vector.load %arg24[%c0_225, %c0_226] : memref<1x128xf32, #tpu.memory_space<vmem>>, vector<1x128xf32>
    %c0_227 = arith.constant 0 : index
    %c0_228 = arith.constant 0 : index
    %355 = vector.load %arg25[%c0_227, %c0_228] : memref<1x128xf32, #tpu.memory_space<vmem>>, vector<1x128xf32>
    %cst_229 = arith.constant dense<0.000000e+00> : vector<128xf32>
    %356 = vector.multi_reduction <add>, %353, %cst_229 [0] : vector<2x128xf32> to vector<128xf32>
    %357 = vector.shape_cast %356 : vector<128xf32> to vector<1x128xf32>
    %cst_230 = arith.constant 5.000000e-01 : f32
    %358 = vector.broadcast %cst_230 : f32 to vector<1x128xf32>
    %359 = arith.mulf %357, %358 : vector<1x128xf32>
    %360 = vector.broadcast %359 : vector<1x128xf32> to vector<2x128xf32>
    %361 = arith.subf %353, %360 : vector<2x128xf32>
    %362 = arith.mulf %361, %361 : vector<2x128xf32>
    %cst_231 = arith.constant dense<0.000000e+00> : vector<128xf32>
    %363 = vector.multi_reduction <add>, %362, %cst_231 [0] : vector<2x128xf32> to vector<128xf32>
    %364 = vector.shape_cast %363 : vector<128xf32> to vector<1x128xf32>
    %cst_232 = arith.constant 5.000000e-01 : f32
    %365 = vector.broadcast %cst_232 : f32 to vector<1x128xf32>
    %366 = arith.mulf %364, %365 : vector<1x128xf32>
    %cst_233 = arith.constant 9.99999974E-6 : f32
    %367 = vector.broadcast %cst_233 : f32 to vector<1x128xf32>
    %368 = arith.addf %366, %367 : vector<1x128xf32>
    %369 = math.rsqrt %368 : vector<1x128xf32>
    %370 = arith.mulf %354, %369 : vector<1x128xf32>
    %371 = vector.broadcast %370 : vector<1x128xf32> to vector<2x128xf32>
    %372 = arith.mulf %361, %371 : vector<2x128xf32>
    %373 = vector.broadcast %355 : vector<1x128xf32> to vector<2x128xf32>
    %374 = arith.addf %372, %373 : vector<2x128xf32>
    %cst_234 = arith.constant 0.000000e+00 : f32
    %375 = vector.broadcast %cst_234 : f32 to vector<2x128xf32>
    %376 = arith.maximumf %374, %375 : vector<2x128xf32>
    %c0_235 = arith.constant 0 : index
    %c0_236 = arith.constant 0 : index
    %377 = vector.load %arg26[%c0_235, %c0_236] : memref<128x11xf32, #tpu.memory_space<vmem>>, vector<128x11xf32>
    %cst_237 = arith.constant dense<0.000000e+00> : vector<2x11xf32>
    %378 = tpu.matmul %376, %377, %cst_237 {dimension_numbers = #tpu.dot_dimension_numbers<[1], [0], [0], [1], [0, 0, 1, 1], [], []>} : vector<2x128xf32>, vector<128x11xf32>, vector<2x11xf32> -> vector<2x11xf32>
    %c0_238 = arith.constant 0 : index
    %c0_239 = arith.constant 0 : index
    %379 = vector.load %arg27[%c0_238, %c0_239] : memref<1x11xf32, #tpu.memory_space<vmem>>, vector<1x11xf32>
    %380 = vector.broadcast %379 : vector<1x11xf32> to vector<2x11xf32>
    %381 = arith.addf %378, %380 : vector<2x11xf32>
    %382 = vector.extract_strided_slice %381 {offsets = [0, 0], sizes = [2, 1], strides = [1, 1]} : vector<2x11xf32> to vector<2x1xf32>
    %cst_240 = arith.constant 0.000000e+00 : f32
    %383 = vector.broadcast %cst_240 : f32 to vector<2x1xf32>
    %384 = arith.subf %383, %382 : vector<2x1xf32>
    %385 = math.exp %384 : vector<2x1xf32>
    %cst_241 = arith.constant 1.000000e+00 : f32
    %386 = vector.broadcast %cst_241 : f32 to vector<2x1xf32>
    %387 = arith.addf %386, %385 : vector<2x1xf32>
    %388 = tpu.reciprocal %387 : vector<2x1xf32> -> vector<2x1xf32>
    %389 = vector.extract_strided_slice %381 {offsets = [0, 1], sizes = [2, 10], strides = [1, 1]} : vector<2x11xf32> to vector<2x10xf32>
    %cst_242 = arith.constant dense<0xFF800000> : vector<2xf32>
    %390 = vector.multi_reduction <maximumf>, %389, %cst_242 [1] : vector<2x10xf32> to vector<2xf32>
    %391 = vector.shape_cast %390 : vector<2xf32> to vector<2x1xf32>
    %392 = vector.broadcast %391 : vector<2x1xf32> to vector<2x10xf32>
    %393 = arith.subf %389, %392 : vector<2x10xf32>
    %394 = math.exp %393 : vector<2x10xf32>
    %cst_243 = arith.constant dense<0.000000e+00> : vector<2xf32>
    %395 = vector.multi_reduction <add>, %394, %cst_243 [1] : vector<2x10xf32> to vector<2xf32>
    %396 = vector.shape_cast %395 : vector<2xf32> to vector<2x1xf32>
    %397 = math.log %396 : vector<2x1xf32>
    %398 = vector.broadcast %397 : vector<2x1xf32> to vector<2x10xf32>
    %399 = arith.subf %393, %398 : vector<2x10xf32>
    %400 = tpu.concatenate %388, %399 in 1 : vector<2x1xf32>, vector<2x10xf32> -> vector<2x11xf32>
    %c0_244 = arith.constant 0 : index
    %c0_245 = arith.constant 0 : index
    %401 = vector.load %arg28[%c0_244, %c0_245] : memref<2x11xf32, #tpu.memory_space<vmem>>, vector<2x11xf32>
    tpu.vector_store %arg28[%c0_244, %c0_245], %400 {strides = array<i32>} : memref<2x11xf32, #tpu.memory_space<vmem>>, vector<2x11xf32>,
    return
  }
}

</mosaic_0001>

<bundles_post_ra>
// kernel: net4_forward.1
= control target key start
LH: loop header
LB: loop body
LE: loop exit
PB: predicated region body
PF: predicated region fallthrough
CT: control target
= control target key end

     0   :  { %v7556_v3 = vmov 0.0   ;;  %v7557_v8 = vmov 0.0|0.0   ;;  %vm126_vm0 = vcmask 1041408   ;;  %vm7558_vm1 = vmmov 1   ;;  %s11592_s1 = inlined_call_operand.vmem [shape: f32[42,192], index: 1, kind: input, shape index: {}]   ;;  %s11593_s5 = inlined_call_operand.vmem [shape: f32[192,16], index: 5, kind: input, shape index: {}]   ;;  %s11594_s0 = inlined_call_operand.vmem [shape: f32[48,42], index: 0, kind: input, shape index: {}]   ;;  %s11595_s6 = inlined_call_operand.vmem [shape: f32[16,192], index: 6, kind: input, shape index: {}]   ;;  %s11596_s2 = inlined_call_operand.vmem [shape: f32[1,192], index: 2, kind: input, shape index: {}]   ;;  %s11597_s7 = inlined_call_operand.vmem [shape: f32[3,192,160], index: 7, kind: input, shape index: {}]   ;;  %s11598_s8 = inlined_call_operand.vmem [shape: f32[3,192,160], index: 8, kind: input, shape index: {}]   ;;  %s11599_s3 = inlined_call_operand.vmem [shape: f32[1,16], index: 3, kind: input, shape index: {}]   ;;  %s11600_s4 = inlined_call_operand.vmem [shape: f32[1,192], index: 4, kind: input, shape index: {}]   ;;  %s11601_s12 = inlined_call_operand.vmem [shape: f32[160,32], index: 12, kind: input, shape index: {}]   ;;  %s11602_s13 = inlined_call_operand.vmem [shape: f32[32,160], index: 13, kind: input, shape index: {}]   ;;  %s11603_s9 = inlined_call_operand.vmem [shape: f32[1,160], index: 9, kind: input, shape index: {}]   ;;  %s11604_s14 = inlined_call_operand.vmem [shape: f32[10,160,32], index: 14, kind: input, shape index: {}]   ;;  %s11605_s10 = inlined_call_operand.vmem [shape: f32[1,32], index: 10, kind: input, shape index: {}]   ;;  %s11606_s11 = inlined_call_operand.vmem [shape: f32[1,160], index: 11, kind: input, shape index: {}]   ;;  %s11607_s18 = inlined_call_operand.vmem [shape: f32[32,64], index: 18, kind: input, shape index: {}]   ;;  %s11608_s15 = inlined_call_operand.vmem [shape: f32[1,32], index: 15, kind: input, shape index: {}]   ;;  %s11609_s16 = inlined_call_operand.vmem [shape: f32[1,32], index: 16, kind: input, shape index: {}]   ;;  %s11610_s17 = inlined_call_operand.vmem [shape: f32[1,32], index: 17, kind: input, shape index: {}]   ;;  %s11611_s22 = inlined_call_operand.vmem [shape: f32[64,128], index: 22, kind: input, shape index: {}]   ;;  %s11612_s19 = inlined_call_operand.vmem [shape: f32[1,64], index: 19, kind: input, shape index: {}]   ;;  %s11613_s20 = inlined_call_operand.vmem [shape: f32[1,64], index: 20, kind: input, shape index: {}]   ;;  %s11614_s21 = inlined_call_operand.vmem [shape: f32[1,64], index: 21, kind: input, shape index: {}]   ;;  %s11615_s26 = inlined_call_operand.vmem [shape: f32[128,11], index: 26, kind: input, shape index: {}]   ;;  %s11616_s23 = inlined_call_operand.vmem [shape: f32[1,128], index: 23, kind: input, shape index: {}]   ;;  %s11617_s24 = inlined_call_operand.vmem [shape: f32[1,128], index: 24, kind: input, shape index: {}]   ;;  %s11618_s25 = inlined_call_operand.vmem [shape: f32[1,128], index: 25, kind: input, shape index: {}]   ;;  %s11619_s27 = inlined_call_operand.vmem [shape: f32[1,11], index: 27, kind: input, shape index: {}]   ;;  %s11620_s28 = inlined_call_operand.vmem [shape: f32[2,11], index: 28, kind: output, shape index: {}]  }
   0x1   :  { %11635 = sst [smem:[#allocation3_spill]] %s11592_s1  ;;  %197 = vmatprep.mubr.f32.mxu0 %v7556_v3  ;;  %6213 = vmatprep.subr.bf16.mxu1 %v7557_v8  ;;  %vm7751_vm2 = vmpackc.low %vm126_vm0, %vm7558_vm1  ;;  %vm116_vm3 = vcmask 343040   ;;  %vm254_vm4 = vcmask 523264   ;;  %vm340_vm5 = vcmask 130048   ;;  %vm1007_vm6 = vcmask 1045504  }
   0x2   :  { %11636 = sst [smem:[#allocation4_spill]] %s11593_s5  ;;  %vm1311_vm7 = vcmask 1043456   ;;  %vm1597_vm8 = vcmask 261120   ;;  %vm1601_vm9 = vcmask 257024   ;;  %vm7559_vm10 = vmmov 0  }
   0x3   :  { %11637 = sst [smem:[#allocation5_spill]] %s11594_s0  ;;  %vm5048_vm11 = vcmask 254976   ;;  %vm5171_vm12 = vcmask 517120   ;;  %vm5432_vm13 = vcmask 82952   ;;  %vm5443_vm14 = vcmask 74752  }
   0x4   :  { %11638 = sst [smem:[#allocation6_spill]] %s11595_s6  ;;  %vm5450_vm15 = vcmask 7168  }
   0x5   :  { %11639 = sst [smem:[#allocation7_spill]] %s11596_s2 }
   0x6   :  { %11640 = sst [smem:[#allocation8_spill]] %s11597_s7  ;;  %s11663_s30 = sld [smem:[#allocation7_spill]] }
   0x7   :  { %11641 = sst [smem:[#allocation9_spill]] %s11598_s8  ;;  %s11664_s0 = sld [smem:[#allocation8_spill]] }
   0x8   :  { %11642 = sst [smem:[#allocation10_spill]] %s11599_s3  ;;  %s11665_s2 = sld [smem:[#allocation9_spill]] }
   0x9   :  { %11643 = sst [smem:[#allocation11_spill]] %s11600_s4  ;;  %s11658_s4 = sld [smem:[#allocation4_spill]] }
   0xa   :  { %11644 = sst [smem:[#allocation12_spill]] %s11601_s12  ;;  %s11657_s12 = sld [smem:[#allocation3_spill]] }
   0xb   :  { %11645 = sst [smem:[#allocation13_spill]] %s11602_s13  ;;  %s11662_s13 = sld [smem:[#allocation6_spill]] }
   0xc   :  { %11646 = sst [smem:[#allocation14_spill]] %s11603_s9  ;;  %s11666_s1 = sld [smem:[#allocation10_spill]] }
   0xd   :  { %11647 = sst [smem:[#allocation15_spill]] %s11604_s14  ;;  %s11661_s14 = sld [smem:[#allocation5_spill]] }
   0xe   :  { %11648 = sst [smem:[#allocation16_spill]] %s11612_s19  ;;  %s11667_s7 = sld [smem:[#allocation11_spill]] }
   0xf   :  { %11649 = sst [smem:[#allocation17_spill]] %s11613_s20  ;;  %v216_v19 = vld [vmem:[%s11658_s4] sm:$0xff]  ;;  %v217_v20 = vld [vmem:[%s11658_s4 + $0x8] sm:$0xff]  ;;  %v218_v23 = vld [vmem:[%s11658_s4 + $0x10] sm:$0xff]  ;;  %s11668_s3 = sld [smem:[#allocation12_spill]] }
  0x10   :  { %11650 = sst [smem:[#allocation18_spill]] %s11614_s21  ;;  %v93_v0 = vld [vmem:[%s11657_s12 + $0x8] sm:$0xff]  ;;  %v95_v1 = vld [vmem:[%s11657_s12 + $0x18] sm:$0xff]  ;;  %v92_v2 = vld [vmem:[%s11657_s12] sm:$0xff]  ;;  %v7755_v22 = vpack.c.bf16 %v217_v20, %v216_v19  ;;  %s11669_s6 = sld [smem:[#allocation13_spill]] }
  0x11   :  { %11651 = sst [smem:[#allocation19_spill]] %s11615_s26  ;;  %v6199_v4 = vpack.c.bf16 %v95_v1, %v93_v0  ;;  %v94_v5 = vld [vmem:[%s11657_s12 + $0x10] sm:$0xff]  ;;  %v97_v6 = vld [vmem:[%s11657_s12 + $0x28] sm:$0xff]  ;;  %v99_v7 = vld [vmem:[%s11657_s12 + $0x38] sm:$0xff]  ;;  %s11671_s26 = sld [smem:[#allocation15_spill]] }
  0x12   :  { %11652 = sst [smem:[#allocation20_spill]] %s11616_s23  ;;  %v6201_v9 = vpack.c.bf16 %v94_v5, %v92_v2  ;;  %v6203_v10 = vpack.c.bf16 %v99_v7, %v97_v6  ;;  %v96_v11 = vld [vmem:[%s11657_s12 + $0x20] sm:$0xff]  ;;  %v98_v12 = vld [vmem:[%s11657_s12 + $0x30] sm:$0xff]  ;;  %v101_v13 = vld [vmem:[%s11657_s12 + $0x48] sm:$0xff]  ;;  %6215 = vmatpush1.bf16.msra.mxu1 %v7755_v22  ;;  %v106_v2 = vlaneseq }
  0x13   :  { %11653 = sst [smem:[#allocation21_spill]] %s11617_s24  ;;  %6200 = vmatprep.subr.bf16.mxu0 %v6199_v4  ;;  %v103_v14 = vld [vmem:[%s11657_s12 + $0x58] sm:$0x3]  ;;  %v6205_v15 = vpack.c.bf16 %v98_v12, %v96_v11  ;;  %v100_v16 = vld [vmem:[%s11657_s12 + $0x40] sm:$0xff]  ;;  %v102_v18 = vld [vmem:[%s11657_s12 + $0x50] sm:$0x3]  ;;  %6216 = vmatprep.subr.bf16.mxu1 %v7557_v8 }
  0x14   :  { %11654 = sst [smem:[#allocation22_spill]] %s11618_s25  ;;  %6202 = vmatpush1.bf16.msra.mxu0 %v6201_v9  ;;  %v6207_v17 = vpack.c.bf16 %v103_v14, %v101_v13  ;;  %v219_v24 = vld [vmem:[%s11658_s4 + $0x18] sm:$0xff]  ;;  %v6210_v25 = vpack.c.bf16 %v102_v18, %v100_v16  ;;  %v220_v27 = vld [vmem:[%s11658_s4 + $0x20] sm:$0xff]  ;;  %v221_v28 = vld [vmem:[%s11658_s4 + $0x28] sm:$0xff]  ;;  %v107_v4 = vshrl.u32 %v106_v2, 7  ;;  %s11676_s8 = sld [smem:[#allocation20_spill]] }
  0x15   :  { %11655 = sst [smem:[#allocation23_spill]] %s11619_s27  ;;  %6204 = vmatprep.subr.bf16.mxu0 %v6203_v10  ;;  %v7764_v26 = vpack.c.bf16 %v219_v24, %v218_v23  ;;  %v89_v29 = vld [vmem:[%s11661_s14] sm:$0xff]  ;;  %v7781_v30 = vpack.c.bf16 %v221_v28, %v220_v27  ;;  %v222_v31 = vld [vmem:[%s11658_s4 + $0x30] sm:$0xff]  ;;  %v223_v32 = vld [vmem:[%s11658_s4 + $0x38] sm:$0xff]  ;;  %s11670_s25 = sld [smem:[#allocation14_spill]] }
  0x16   :  { %11656 = sst [smem:[#allocation24_spill]] %s11620_s28  ;;  %v90_v33 = vld [vmem:[%s11661_s14 + $0x8] sm:$0xff]  ;;  %v7796_v34 = vpack.c.bf16 %v223_v32, %v222_v31  ;;  %v224_v35 = vld [vmem:[%s11658_s4 + $0x40] sm:$0xff]  ;;  %v91_v37 = vld [vmem:[%s11661_s14 + $0x10] sm:$0xff]  ;;  %v7900_v5 = vsub.s32 1, %v107_v4  ;;  %v7905_v7 = vsub.s32 0, %v107_v4 }
  0x17   :  { %6218 = vmatpush1.bf16.msra.mxu1 %v7764_v26  ;;  %v225_v36 = vld [vmem:[%s11658_s4 + $0x48] sm:$0xff]  ;;  %v226_v39 = vld [vmem:[%s11658_s4 + $0x50] sm:$0xff]  ;;  %v227_v40 = vld [vmem:[%s11658_s4 + $0x58] sm:$0xff]  ;;  %s11677_s29 = sld [smem:[#allocation21_spill]]  ;;  %s11679_s5 = sld [smem:[#allocation23_spill]] }
  0x18   :  { %6206 = vmatpush1.bf16.msra.mxu0 %v6205_v15  ;;  %6219 = vmatprep.subr.bf16.mxu1 %v7557_v8  ;;  %v7811_v38 = vpack.c.bf16 %v225_v36, %v224_v35  ;;  %v7824_v41 = vpack.c.bf16 %v227_v40, %v226_v39  ;;  %v228_v42 = vld [vmem:[%s11658_s4 + $0x60] sm:$0xff]  ;;  %v229_v43 = vld [vmem:[%s11658_s4 + $0x68] sm:$0xff]  ;;  %v230_v45 = vld [vmem:[%s11658_s4 + $0x70] sm:$0xff] }
  0x19   :  { %6209 = vmatprep.subr.msk.bf16.mxu0 %vm7751_vm2, %v6207_v17  ;;  %v7834_v44 = vpack.c.bf16 %v229_v43, %v228_v42  ;;  %v231_v46 = vld [vmem:[%s11658_s4 + $0x78] sm:$0xff]  ;;  %v232_v48 = vld [vmem:[%s11658_s4 + $0x80] sm:$0xff]  ;;  %v233_v49 = vld [vmem:[%s11658_s4 + $0x88] sm:$0xff] }
  0x1a   :  { %v7844_v47 = vpack.c.bf16 %v231_v46, %v230_v45  ;;  %v7854_v50 = vpack.c.bf16 %v233_v49, %v232_v48  ;;  %v234_v51 = vld [vmem:[%s11658_s4 + $0x90] sm:$0xff]  ;;  %v235_v52 = vld [vmem:[%s11658_s4 + $0x98] sm:$0xff]  ;;  %v236_v54 = vld [vmem:[%s11658_s4 + $0xa0] sm:$0xff] }
  0x1b   :  { %6221 = vmatpush1.bf16.msra.mxu1 %v7781_v30  ;;  %v7864_v53 = vpack.c.bf16 %v235_v52, %v234_v51  ;;  %v237_v55 = vld [vmem:[%s11658_s4 + $0xa8] sm:$0xff]  ;;  %v238_v57 = vld [vmem:[%s11658_s4 + $0xb0] sm:$0xff]  ;;  %v239_v58 = vld [vmem:[%s11658_s4 + $0xb8] sm:$0xff] }
  0x1c   :  { %6212 = vmatpush1.bf16.msk.msra.mxu0 %vm7751_vm2, %v6210_v25  ;;  %6222 = vmatprep.subr.bf16.mxu1 %v7557_v8  ;;  %v7874_v56 = vpack.c.bf16 %v237_v55, %v236_v54  ;;  %v7883_v59 = vpack.c.bf16 %v239_v58, %v238_v57  ;;  %v241_v60 = vld [vmem:[%s11662_s13 + $0x8] sm:$0xff]  ;;  %v243_v61 = vld [vmem:[%s11662_s13 + $0x18] sm:$0xff]  ;;  %v240_v62 = vld [vmem:[%s11662_s13] sm:$0xff] }
  0x1d   :  { %v6249_v63 = vpack.c.bf16 %v243_v61, %v241_v60  ;;  %v242_v0 = vld [vmem:[%s11662_s13 + $0x10] sm:$0xff]  ;;  %v104_v6 = vld [vmem:[%s11663_s30] sm:$0x3]  ;;  %v5754_v21 = vld [vmem:[%s11671_s26 + $0x2c8] sm:$0xff] }
  0x1e   :  { %v6251_v1 = vpack.c.bf16 %v242_v0, %v240_v62  ;;  %v113_v11 = vrot.slane %v104_v6, %v7900_v5  ;;  %v109_v12 = vrot.slane %v104_v6, %v7905_v7 }
  0x1f   :  { %5460 = vmatmul.mubr.msk.f32.vlgmr.msra.gmra.mrb[0].mxu0 %vm116_vm3, %v89_v29  ;;  %6224 = vmatpush1.bf16.msra.mxu1 %v7796_v34 }
  0x20   :  { %203 = vmatprep.mubr.f32.mxu0 %v7556_v3  ;;  %6225 = vmatprep.subr.bf16.mxu1 %v7557_v8 }
  0x21   :  { %6250 = vmatprep.subr.bf16.mxu0 %v6249_v63 }
  0x22   :  { %6252 = vmatpush1.bf16.msra.mxu0 %v6251_v1 }
  0x23   :  { %5461 = vmatmul.mubr.msk.f32.gmra.mrb[2].mxu0 %vm116_vm3, %v90_v33  ;;  %6227 = vmatpush1.bf16.msra.mxu1 %v7811_v38 }
  0x24   :  { %209 = vmatprep.mubr.f32.mxu0 %v7556_v3  ;;  %6228 = vmatprep.subr.bf16.mxu1 %v7557_v8 }
  0x25   :  { %6253 = vmatprep.subr.bf16.mxu0 %v7557_v8 }
  0x27   :  { %5462 = vmatmul.mubr.msk.f32.gmra.mrb[4].mxu0 %vm116_vm3, %v91_v37  ;;  %6230 = vmatpush1.bf16.msra.mxu1 %v7824_v41 }
  0x28   :  { %408 = vmatprep.mubr.f32.mxu0 %v7556_v3  ;;  %6231 = vmatprep.subr.bf16.mxu1 %v7557_v8 }
  0x2b   :  { %6233 = vmatpush1.bf16.msra.mxu1 %v7834_v44 }
  0x2c   :  { %6234 = vmatprep.subr.bf16.mxu1 %v7557_v8 }
  0x2f   :  { %6236 = vmatpush1.bf16.msra.mxu1 %v7844_v47 }
  0x30   :  { %6237 = vmatprep.subr.bf16.mxu1 %v7557_v8 }
  0x33   :  { %6239 = vmatpush1.bf16.msra.mxu1 %v7854_v50 }
  0x34   :  { %6240 = vmatprep.subr.bf16.mxu1 %v7557_v8 }
  0x37   :  { %6242 = vmatpush1.bf16.msra.mxu1 %v7864_v53 }
  0x38   :  { %6243 = vmatprep.subr.bf16.mxu1 %v7557_v8 }
  0x3b   :  { %6245 = vmatpush1.bf16.msra.mxu1 %v7874_v56 }
  0x3c   :  { %6246 = vmatprep.subr.bf16.mxu1 %v7557_v8 }
  0x3f   :  { %6248 = vmatpush1.bf16.msra.mxu1 %v7883_v59 }
  0x40   :  { %6290 = vmatprep.subr.bf16.mxu1 %v6249_v63 }
  0xf2   :  { %v199_v9 = vpop.f32.mrb[0].mxu0 }
  0xf3   :  { %v201_v10 = vpop.f32.mrb[1].mxu0  ;;  %v200_v18 = vadd.f32 %v199_v9, %v109_v12 }
  0xf4   :  { %v7911_v16 = vadd.f32 %v201_v10, %v113_v11 }
  0xf6   :  { %v205_v13 = vpop.f32.mrb[2].mxu0  ;;  %v255_v27 = vsel %vm254_vm4, %v7911_v16, 0.0 }
  0xf7   :  { %v7909_v14 = vadd.f32 %v205_v13, %v109_v12  ;;  %v207_v15 = vpop.f32.mrb[3].mxu0 }
  0xf8   :  { %v7913_v17 = vadd.f32 %v207_v15, %v113_v11 }
  0xf9   :  { %v246_v23 = vadd.f32 %v7909_v14, %v200_v18 }
  0xfa   :  { %v256_v19 = vsel %vm254_vm4, %v7913_v17, 0.0  ;;  %v211_v20 = vpop.f32.mrb[4].mxu0 }
  0xfb   :  { %v212_v24 = vadd.f32 %v211_v20, %v109_v12  ;;  %v213_v25 = vpop.f32.mrb[5].mxu0  ;;  %v257_v29 = vadd.f32 %v256_v19, %v255_v27 }
  0xfc   :  { %v214_v28 = vadd.f32 %v213_v25, %v113_v11  ;;  %v813_v25 = vld [vmem:[%s11665_s2 + $0x8] sm:$0xff] }
  0xfd   :  { %v247_v31 = vadd.f32 %v246_v23, %v212_v24  ;;  %v656_v23 = vld [vmem:[%s11664_s0 + $0x8] sm:$0xff] }
  0xfe   :  { %v258_v32 = vsel %vm254_vm4, %v214_v28, 0.0 }
  0xff   :  { %v248_v33 = vrot.slane %v247_v31, 4  ;;  %v259_v35 = vadd.f32 %v258_v32, %v257_v29  ;;  %v814_v32 = vld [vmem:[%s11665_s2 + $0x10] sm:$0xff] }
 0x101   :  { %v249_v36 = vadd.f32 %v248_v33, %v247_v31  ;;  %v260_v37 = vrot.slane %v259_v35, 4  ;;  %v812_v31 = vld [vmem:[%s11665_s2] sm:$0xff] }
 0x102   :  { %v6343_v33 = vpack.c.bf16 %v814_v32, %v812_v31  ;;  %v662_v31 = vld [vmem:[%s11664_s0 + $0x38] sm:$0xff] }
 0x103   :  { %v250_v39 = vrot.slane %v249_v36, 2  ;;  %v261_v40 = vadd.f32 %v260_v37, %v259_v35  ;;  %v817_v35 = vld [vmem:[%s11665_s2 + $0x28] sm:$0xff] }
 0x105   :  { %v262_v42 = vrot.slane %v261_v40, 2  ;;  %v251_v43 = vadd.f32 %v250_v39, %v249_v36  ;;  %v819_v36 = vld [vmem:[%s11665_s2 + $0x38] sm:$0xff]  ;;  %v816_v39 = vld [vmem:[%s11665_s2 + $0x20] sm:$0xff] }
 0x106   :  { %v6345_v37 = vpack.c.bf16 %v819_v36, %v817_v35 }
 0x107   :  { %v263_v45 = vadd.f32 %v262_v42, %v261_v40  ;;  %v252_v46 = vrot.slane %v251_v43, 1  ;;  %v818_v40 = vld [vmem:[%s11665_s2 + $0x30] sm:$0xff] }
 0x108   :  { %v6347_v42 = vpack.c.bf16 %v818_v40, %v816_v39  ;;  %v661_v39 = vld [vmem:[%s11664_s0 + $0x30] sm:$0xff]  ;;  %v664_v40 = vld [vmem:[%s11664_s0 + $0x48] sm:$0xff] }
 0x109   :  { %v264_v48 = vrot.slane %v263_v45, 1  ;;  %v253_v51 = vadd.f32 %v252_v46, %v251_v43  ;;  %v821_v43 = vld [vmem:[%s11665_s2 + $0x48] sm:$0xff] }
 0x10b   :  { %v265_v49 = vadd.f32 %v264_v48, %v263_v45  ;;  %v823_v45 = vld [vmem:[%s11665_s2 + $0x58] sm:$0xff]  ;;  %v820_v48 = vld [vmem:[%s11665_s2 + $0x40] sm:$0xff] }
 0x10c   :  { %v6349_v46 = vpack.c.bf16 %v823_v45, %v821_v43 }
 0x10d   :  { %5463 = vmatprep.mubr.msk.f32.mxu1 %vm254_vm4, %v265_v49  ;;  %v822_v49 = vld [vmem:[%s11665_s2 + $0x50] sm:$0xff] }
 0x10e   :  { %334 = vmatmul.mubr.f32.vlgmr.msra.gmra.mrb[0].mxu1 %v253_v51  ;;  %v6351_v51 = vpack.c.bf16 %v822_v49, %v820_v48  ;;  %v665_v48 = vld [vmem:[%s11664_s0 + $0x50] sm:$0xff]  ;;  %v668_v49 = vld [vmem:[%s11664_s0 + $0x68] sm:$0xff] }
 0x10f   :  { %6292 = vmatpush1.bf16.msra.mxu1 %v6251_v1  ;;  %598 = vmatprep.mubr.f32.mxu1 %v7556_v3 }
 0x1e1   :  { %v335_v52 = vpop.f32.mrb[0].mxu1 }
 0x1e2   :  { %v339_v54 = vmul.f32 0.0034722222, %v335_v52  ;;  %v337_v55 = vpop.f32.mrb[1].mxu1  ;;  %v825_v52 = vld [vmem:[%s11665_s2 + $0x68] sm:$0xff] }
 0x1e4   :  { %5464 = vmatmul.mubr.msk.f32.vlgmr.msra.gmra.mrb[6].mxu0 %vm340_vm5, %v339_v54  ;;  %v827_v54 = vld [vmem:[%s11665_s2 + $0x78] sm:$0xff] }
 0x1e5   :  { %6255 = vmatpush1.bf16.msra.mxu0 %v7755_v22  ;;  %v6353_v55 = vpack.c.bf16 %v827_v54, %v825_v52 }
 0x1e6   :  { %6256 = vmatprep.subr.bf16.mxu0 %v7557_v8 }
 0x1e9   :  { %6258 = vmatpush1.bf16.msra.mxu0 %v7764_v26 }
 0x1ea   :  { %6259 = vmatprep.subr.bf16.mxu0 %v7557_v8 }
 0x1ed   :  { %6261 = vmatpush1.bf16.msra.mxu0 %v7781_v30 }
 0x1ee   :  { %6262 = vmatprep.subr.bf16.mxu0 %v7557_v8 }
 0x1f1   :  { %6264 = vmatpush1.bf16.msra.mxu0 %v7796_v34 }
 0x1f2   :  { %6265 = vmatprep.subr.bf16.mxu0 %v7557_v8 }
 0x1f5   :  { %6267 = vmatpush1.bf16.msra.mxu0 %v7811_v38 }
 0x1f6   :  { %6268 = vmatprep.subr.bf16.mxu0 %v7557_v8 }
 0x1f9   :  { %6270 = vmatpush1.bf16.msra.mxu0 %v7824_v41 }
 0x1fa   :  { %6271 = vmatprep.subr.bf16.mxu0 %v7557_v8 }
 0x1fd   :  { %6273 = vmatpush1.bf16.msra.mxu0 %v7834_v44 }
 0x1fe   :  { %6274 = vmatprep.subr.bf16.mxu0 %v7557_v8 }
 0x201   :  { %6276 = vmatpush1.bf16.msra.mxu0 %v7844_v47 }
 0x202   :  { %6277 = vmatprep.subr.bf16.mxu0 %v7557_v8 }
 0x205   :  { %6279 = vmatpush1.bf16.msra.mxu0 %v7854_v50 }
 0x206   :  { %6280 = vmatprep.subr.bf16.mxu0 %v7557_v8 }
 0x209   :  { %6282 = vmatpush1.bf16.msra.mxu0 %v7864_v53 }
 0x20a   :  { %6283 = vmatprep.subr.bf16.mxu0 %v7557_v8 }
 0x20d   :  { %6285 = vmatpush1.bf16.msra.mxu0 %v7874_v56 }
 0x20e   :  { %6286 = vmatprep.subr.bf16.mxu0 %v7557_v8 }
 0x211   :  { %6288 = vmatpush1.bf16.msra.mxu0 %v7883_v59 }
 0x2b7   :  { %v410_v22 = vpop.f32.mrb[6].mxu0 }
 0x2b8   :  { %v418_v26 = vrot.slane %v410_v22, %v7905_v7  ;;  %v412_v30 = vpop.f32.mrb[7].mxu0  ;;  %v824_v22 = vld [vmem:[%s11665_s2 + $0x60] sm:$0xff] }
 0x2b9   :  { %v422_v34 = vrot.slane %v412_v30, %v7905_v7 }
 0x2ba   :  { %v7949_v38 = vsub.f32 %v200_v18, %v418_v26  ;;  %v7952_v41 = vsub.f32 %v7909_v14, %v418_v26  ;;  %v7954_v44 = vsub.f32 %v212_v24, %v418_v26  ;;  %v658_v24 = vld [vmem:[%s11664_s0 + $0x18] sm:$0xff]  ;;  %v826_v26 = vld [vmem:[%s11665_s2 + $0x70] sm:$0xff] }
 0x2bb   :  { %v7957_v47 = vsub.f32 %v7911_v16, %v422_v34  ;;  %v7960_v50 = vsub.f32 %v7913_v17, %v422_v34  ;;  %v7962_v53 = vsub.f32 %v214_v28, %v422_v34  ;;  %v6293_v27 = vpack.c.bf16 %v658_v24, %v656_v23  ;;  %v815_v28 = vld [vmem:[%s11665_s2 + $0x18] sm:$0xff]  ;;  %v829_v34 = vld [vmem:[%s11665_s2 + $0x88] sm:$0xff] }
 0x2bc   :  { %v429_v56 = vmul.f32 %v7949_v38, %v7949_v38  ;;  %v431_v57 = vmul.f32 %v7952_v41, %v7952_v41  ;;  %v433_v61 = vmul.f32 %v7954_v44, %v7954_v44  ;;  %v6341_v29 = vpack.c.bf16 %v815_v28, %v813_v25  ;;  %v655_v25 = vld [vmem:[%s11664_s0] sm:$0xff] }
 0x2bd   :  { %v430_v58 = vmul.f32 %v7957_v47, %v7957_v47  ;;  %v432_v59 = vmul.f32 %v7960_v50, %v7960_v50  ;;  %v434_v60 = vmul.f32 %v7962_v53, %v7962_v53  ;;  %6294 = vmatprep.subr.bf16.mxu1 %v6293_v27  ;;  %v6355_v30 = vpack.c.bf16 %v826_v26, %v824_v22  ;;  %v657_v27 = vld [vmem:[%s11664_s0 + $0x10] sm:$0xff]  ;;  %v244_v28 = vld [vmem:[%s11666_s1] sm:$0x1]  ;;  %v672_v26 = vld [vmem:[%s11664_s0 + $0x88] sm:$0xff] }
 0x2be   :  { %v435_v62 = vadd.f32 %v431_v57, %v429_v56  ;;  %6342 = vmatprep.subr.bf16.mxu0 %v6341_v29  ;;  %v831_v56 = vld [vmem:[%s11665_s2 + $0x98] sm:$0xff]  ;;  %v660_v29 = vld [vmem:[%s11664_s0 + $0x28] sm:$0xff]  ;;  %v669_v22 = vld [vmem:[%s11664_s0 + $0x70] sm:$0xff] }
 0x2bf   :  { %v443_v63 = vsel %vm254_vm4, %v430_v58, 0.0  ;;  %v444_v0 = vsel %vm254_vm4, %v432_v59, 0.0  ;;  %v446_v4 = vsel %vm254_vm4, %v434_v60, 0.0  ;;  %v6357_v57 = vpack.c.bf16 %v831_v56, %v829_v34  ;;  %v828_v58 = vld [vmem:[%s11665_s2 + $0x80] sm:$0xff]  ;;  %v830_v59 = vld [vmem:[%s11665_s2 + $0x90] sm:$0xff] }
 0x2c0   :  { %v436_v1 = vadd.f32 %v435_v62, %v433_v61  ;;  %v445_v2 = vadd.f32 %v444_v0, %v443_v63  ;;  %v6359_v60 = vpack.c.bf16 %v830_v59, %v828_v58  ;;  %v833_v61 = vld [vmem:[%s11665_s2 + $0xa8] sm:$0xff]  ;;  %v835_v62 = vld [vmem:[%s11665_s2 + $0xb8] sm:$0xff]  ;;  %v832_v0 = vld [vmem:[%s11665_s2 + $0xa0] sm:$0xff]  ;;  %v6297_v36 = vpack.c.bf16 %v662_v31, %v660_v29 }
 0x2c1   :  { %v6361_v63 = vpack.c.bf16 %v835_v62, %v833_v61  ;;  %v673_v58 = vld [vmem:[%s11664_s0 + $0x90] sm:$0xff]  ;;  %v676_v59 = vld [vmem:[%s11664_s0 + $0xa8] sm:$0xff]  ;;  %v844_v31 = vld [vmem:[%s11665_s2 + $0x100] sm:$0xff] }
 0x2c2   :  { %v437_v6 = vrot.slane %v436_v1, 4  ;;  %v447_v9 = vadd.f32 %v446_v4, %v445_v2  ;;  %v837_v4 = vld [vmem:[%s11665_s2 + $0xc8] sm:$0xff] }
 0x2c4   :  { %v438_v10 = vadd.f32 %v437_v6, %v436_v1  ;;  %v448_v11 = vrot.slane %v447_v9, 4  ;;  %v834_v1 = vld [vmem:[%s11665_s2 + $0xb0] sm:$0xff]  ;;  %v839_v6 = vld [vmem:[%s11665_s2 + $0xd8] sm:$0xff] }
 0x2c5   :  { %v6363_v2 = vpack.c.bf16 %v834_v1, %v832_v0  ;;  %v677_v0 = vld [vmem:[%s11664_s0 + $0xb0] sm:$0xff]  ;;  %v680_v1 = vld [vmem:[%s11664_s0 + $0xc8] sm:$0xff] }
 0x2c6   :  { %v449_v12 = vadd.f32 %v448_v11, %v447_v9  ;;  %v439_v13 = vrot.slane %v438_v10, 2  ;;  %v6365_v9 = vpack.c.bf16 %v839_v6, %v837_v4  ;;  %v838_v11 = vld [vmem:[%s11665_s2 + $0xd0] sm:$0xff] }
 0x2c8   :  { %v450_v14 = vrot.slane %v449_v12, 2  ;;  %v440_v15 = vadd.f32 %v439_v13, %v438_v10  ;;  %v836_v10 = vld [vmem:[%s11665_s2 + $0xc0] sm:$0xff]  ;;  %v841_v13 = vld [vmem:[%s11665_s2 + $0xe8] sm:$0xff] }
 0x2ca   :  { %v451_v16 = vadd.f32 %v450_v14, %v449_v12  ;;  %v441_v17 = vrot.slane %v440_v15, 1  ;;  %v6367_v12 = vpack.c.bf16 %v838_v11, %v836_v10  ;;  %v843_v14 = vld [vmem:[%s11665_s2 + $0xf8] sm:$0xff]  ;;  %v681_v10 = vld [vmem:[%s11664_s0 + $0xd0] sm:$0xff]  ;;  %v684_v11 = vld [vmem:[%s11664_s0 + $0xe8] sm:$0xff] }
 0x2cc   :  { %v452_v18 = vrot.slane %v451_v16, 1  ;;  %v442_v20 = vadd.f32 %v441_v17, %v440_v15  ;;  %v6369_v15 = vpack.c.bf16 %v843_v14, %v841_v13  ;;  %v842_v17 = vld [vmem:[%s11665_s2 + $0xf0] sm:$0xff] }
 0x2ce   :  { %v453_v19 = vadd.f32 %v452_v18, %v451_v16  ;;  %v840_v16 = vld [vmem:[%s11665_s2 + $0xe0] sm:$0xff] }
 0x2cf   :  { %v6371_v18 = vpack.c.bf16 %v842_v17, %v840_v16  ;;  %v685_v16 = vld [vmem:[%s11664_s0 + $0xf0] sm:$0xff] }
 0x2d0   :  { %5465 = vmatprep.mubr.msk.f32.mxu0 %vm254_vm4, %v453_v19 }
 0x2d1   :  { %522 = vmatmul.mubr.f32.vlgmr.msra.gmra.mrb[8].mxu0 %v442_v20 }
 0x2d2   :  { %6344 = vmatpush1.bf16.msra.mxu0 %v6343_v33  ;;  %v6295_v33 = vpack.c.bf16 %v657_v27, %v655_v25  ;;  %v687_v25 = vld [vmem:[%s11664_s0 + $0x100] sm:$0xff]  ;;  %v689_v27 = vld [vmem:[%s11664_s0 + $0x110] sm:$0xff] }
 0x2d3   :  { %6346 = vmatprep.subr.bf16.mxu0 %v6345_v37  ;;  %v659_v37 = vld [vmem:[%s11664_s0 + $0x20] sm:$0xff]  ;;  %v6327_v29 = vpack.c.bf16 %v689_v27, %v687_v25 }
 0x2d4   :  { %v6299_v43 = vpack.c.bf16 %v661_v39, %v659_v37  ;;  %v849_v37 = vld [vmem:[%s11665_s2 + $0x128] sm:$0xff] }
 0x2d6   :  { %6348 = vmatpush1.bf16.msra.mxu0 %v6347_v42  ;;  %v666_v42 = vld [vmem:[%s11664_s0 + $0x58] sm:$0xff] }
 0x2d7   :  { %6350 = vmatprep.subr.bf16.mxu0 %v6349_v46  ;;  %v6301_v45 = vpack.c.bf16 %v666_v42, %v664_v40  ;;  %v663_v46 = vld [vmem:[%s11664_s0 + $0x40] sm:$0xff]  ;;  %v851_v40 = vld [vmem:[%s11665_s2 + $0x138] sm:$0xff] }
 0x2d8   :  { %v6303_v52 = vpack.c.bf16 %v665_v48, %v663_v46  ;;  %v691_v42 = vld [vmem:[%s11664_s0 + $0x120] sm:$0xff] }
 0x2d9   :  { %v848_v48 = vld [vmem:[%s11665_s2 + $0x120] sm:$0xff] }
 0x2da   :  { %6352 = vmatpush1.bf16.msra.mxu0 %v6351_v51  ;;  %v670_v51 = vld [vmem:[%s11664_s0 + $0x78] sm:$0xff] }
 0x2db   :  { %6354 = vmatprep.subr.bf16.mxu0 %v6353_v55  ;;  %v6305_v54 = vpack.c.bf16 %v670_v51, %v668_v49  ;;  %v667_v55 = vld [vmem:[%s11664_s0 + $0x60] sm:$0xff]  ;;  %v850_v49 = vld [vmem:[%s11665_s2 + $0x130] sm:$0xff] }
 0x2dc   :  { %v6307_v34 = vpack.c.bf16 %v669_v22, %v667_v55  ;;  %v6379_v51 = vpack.c.bf16 %v850_v49, %v848_v48  ;;  %v853_v55 = vld [vmem:[%s11665_s2 + $0x148] sm:$0xff] }
 0x2de   :  { %6356 = vmatpush1.bf16.msra.mxu0 %v6355_v30  ;;  %v674_v30 = vld [vmem:[%s11664_s0 + $0x98] sm:$0xff] }
 0x2df   :  { %6358 = vmatprep.subr.bf16.mxu0 %v6357_v57  ;;  %v6309_v56 = vpack.c.bf16 %v674_v30, %v672_v26  ;;  %v671_v57 = vld [vmem:[%s11664_s0 + $0x80] sm:$0xff]  ;;  %v855_v26 = vld [vmem:[%s11665_s2 + $0x158] sm:$0xff] }
 0x2e0   :  { %v6311_v61 = vpack.c.bf16 %v673_v58, %v671_v57  ;;  %v695_v30 = vld [vmem:[%s11664_s0 + $0x140] sm:$0xff] }
 0x2e1   :  { %v852_v58 = vld [vmem:[%s11665_s2 + $0x140] sm:$0xff] }
 0x2e2   :  { %6360 = vmatpush1.bf16.msra.mxu0 %v6359_v60  ;;  %v678_v60 = vld [vmem:[%s11664_s0 + $0xb8] sm:$0xff] }
 0x2e3   :  { %6362 = vmatprep.subr.bf16.mxu0 %v6361_v63  ;;  %v6313_v62 = vpack.c.bf16 %v678_v60, %v676_v59  ;;  %v675_v63 = vld [vmem:[%s11664_s0 + $0xa0] sm:$0xff]  ;;  %v854_v59 = vld [vmem:[%s11665_s2 + $0x150] sm:$0xff] }
 0x2e4   :  { %v6315_v4 = vpack.c.bf16 %v677_v0, %v675_v63  ;;  %v6383_v60 = vpack.c.bf16 %v854_v59, %v852_v58  ;;  %v857_v63 = vld [vmem:[%s11665_s2 + $0x168] sm:$0xff]  ;;  %v5530_v58 = vld [vmem:[%s11665_s2 + $0x1b0] sm:$0xff] }
 0x2e6   :  { %6364 = vmatpush1.bf16.msra.mxu0 %v6363_v2  ;;  %v682_v2 = vld [vmem:[%s11664_s0 + $0xd8] sm:$0xff] }
 0x2e7   :  { %6366 = vmatprep.subr.bf16.mxu0 %v6365_v9  ;;  %v6317_v6 = vpack.c.bf16 %v682_v2, %v680_v1  ;;  %v679_v9 = vld [vmem:[%s11664_s0 + $0xc0] sm:$0xff]  ;;  %v859_v1 = vld [vmem:[%s11665_s2 + $0x178] sm:$0xff] }
 0x2e8   :  { %v6319_v13 = vpack.c.bf16 %v681_v10, %v679_v9  ;;  %v699_v2 = vld [vmem:[%s11664_s0 + $0x160] sm:$0xff] }
 0x2e9   :  { %v856_v10 = vld [vmem:[%s11665_s2 + $0x160] sm:$0xff] }
 0x2ea   :  { %6368 = vmatpush1.bf16.msra.mxu0 %v6367_v12  ;;  %v686_v12 = vld [vmem:[%s11664_s0 + $0xf8] sm:$0xff] }
 0x2eb   :  { %6370 = vmatprep.subr.bf16.mxu0 %v6369_v15  ;;  %v6321_v14 = vpack.c.bf16 %v686_v12, %v684_v11  ;;  %v683_v15 = vld [vmem:[%s11664_s0 + $0xe0] sm:$0xff]  ;;  %v858_v11 = vld [vmem:[%s11665_s2 + $0x170] sm:$0xff] }
 0x2ec   :  { %v6323_v17 = vpack.c.bf16 %v685_v16, %v683_v15  ;;  %v6387_v12 = vpack.c.bf16 %v858_v11, %v856_v10  ;;  %v5525_v15 = vld [vmem:[%s11665_s2 + $0x188] sm:$0xff]  ;;  %v5532_v11 = vld [vmem:[%s11665_s2 + $0x1c0] sm:$0xff] }
 0x2ee   :  { %6372 = vmatpush1.bf16.msra.mxu0 %v6371_v18  ;;  %v688_v18 = vld [vmem:[%s11664_s0 + $0x108] sm:$0xff] }
 0x3a4   :  { %v523_v19 = vpop.f32.mrb[8].mxu0 }
 0x3a5   :  { %v527_v20 = vmul.f32 0.0034722222, %v523_v19  ;;  %v525_v23 = vpop.f32.mrb[9].mxu0  ;;  %v690_v19 = vld [vmem:[%s11664_s0 + $0x118] sm:$0xff] }
 0x3a6   :  { %v6325_v23 = vpack.c.bf16 %v690_v19, %v688_v18  ;;  %v245_v19 = vld [vmem:[%s11667_s7] sm:$0x3] }
 0x3a7   :  { %v528_v24 = vadd.f32 1e-05, %v527_v20  ;;  %v845_v20 = vld [vmem:[%s11665_s2 + $0x108] sm:$0xff] }
 0x3a9   :  { %7534 = vrsqrt.f32 %v528_v24  ;;  %v847_v24 = vld [vmem:[%s11665_s2 + $0x118] sm:$0xff] }
 0x3b3   :  { %v7535_v32 = vpop.eup %7534 }
 0x3b4   :  { %v530_v35 = vmul.f32 %v7535_v32, %v244_v28  ;;  %v6373_v28 = vpack.c.bf16 %v847_v24, %v845_v20  ;;  %v846_v32 = vld [vmem:[%s11665_s2 + $0x110] sm:$0xff]  ;;  %v623_v24 = vrot.slane %v245_v19, %v7905_v7 }
 0x3b6   :  { %5466 = vmatmul.mubr.msk.f32.vlgmr.msra.gmra.mrb[2].mxu1 %vm340_vm5, %v530_v35  ;;  %6374 = vmatprep.subr.bf16.mxu0 %v6373_v28  ;;  %v692_v35 = vld [vmem:[%s11664_s0 + $0x128] sm:$0xff]  ;;  %v627_v28 = vrot.slane %v245_v19, %v7900_v5  ;;  %v5539_v19 = vld [vmem:[%s11665_s2 + $0x1f8] sm:$0xff] }
 0x3b7   :  { %6296 = vmatpush1.bf16.msra.mxu1 %v6295_v33  ;;  %v6375_v33 = vpack.c.bf16 %v846_v32, %v844_v31 }
 0x3b8   :  { %6298 = vmatprep.subr.bf16.mxu1 %v6297_v36  ;;  %v694_v36 = vld [vmem:[%s11664_s0 + $0x138] sm:$0xff] }
 0x3b9   :  { %6376 = vmatpush1.bf16.msra.mxu0 %v6375_v33  ;;  %v6329_v39 = vpack.c.bf16 %v694_v36, %v692_v35 }
 0x3bb   :  { %6300 = vmatpush1.bf16.msra.mxu1 %v6299_v43  ;;  %v693_v43 = vld [vmem:[%s11664_s0 + $0x130] sm:$0xff] }
 0x3bc   :  { %6302 = vmatprep.subr.bf16.mxu1 %v6301_v45  ;;  %v6377_v45 = vpack.c.bf16 %v851_v40, %v849_v37  ;;  %v6331_v46 = vpack.c.bf16 %v693_v43, %v691_v42 }
 0x3be   :  { %6378 = vmatprep.subr.bf16.mxu0 %v6377_v45 }
 0x3bf   :  { %6304 = vmatpush1.bf16.msra.mxu1 %v6303_v52  ;;  %v696_v52 = vld [vmem:[%s11664_s0 + $0x148] sm:$0xff]  ;;  %6380 = vmatpush1.bf16.msra.mxu0 %v6379_v51 }
 0x3c0   :  { %6306 = vmatprep.subr.bf16.mxu1 %v6305_v54  ;;  %v698_v54 = vld [vmem:[%s11664_s0 + $0x158] sm:$0xff]  ;;  %v5478_v51 = vld [vmem:[%s11664_s0 + $0x1a8] sm:$0xff] }
 0x3c1   :  { %v6333_v22 = vpack.c.bf16 %v698_v54, %v696_v52  ;;  %v5529_v52 = vld [vmem:[%s11665_s2 + $0x1a8] sm:$0xff]  ;;  %v5531_v54 = vld [vmem:[%s11665_s2 + $0x1b8] sm:$0xff] }
 0x3c3   :  { %6308 = vmatpush1.bf16.msra.mxu1 %v6307_v34  ;;  %v697_v34 = vld [vmem:[%s11664_s0 + $0x150] sm:$0xff] }
 0x3c4   :  { %6310 = vmatprep.subr.bf16.mxu1 %v6309_v56  ;;  %v6381_v56 = vpack.c.bf16 %v855_v26, %v853_v55  ;;  %v6335_v57 = vpack.c.bf16 %v697_v34, %v695_v30  ;;  %v5477_v26 = vld [vmem:[%s11664_s0 + $0x1a0] sm:$0xff]  ;;  %v5479_v30 = vld [vmem:[%s11664_s0 + $0x1b0] sm:$0xff] }
 0x3c6   :  { %6382 = vmatprep.subr.bf16.mxu0 %v6381_v56 }
 0x3c7   :  { %6312 = vmatpush1.bf16.msra.mxu1 %v6311_v61  ;;  %v700_v61 = vld [vmem:[%s11664_s0 + $0x168] sm:$0xff]  ;;  %6384 = vmatpush1.bf16.msra.mxu0 %v6383_v60  ;;  %v6441_v60 = vpack.c.bf16 %v5531_v54, %v5529_v52  ;;  %v5547_v52 = vld [vmem:[%s11665_s2 + $0x238] sm:$0xff] }
 0x3c8   :  { %6314 = vmatprep.subr.bf16.mxu1 %v6313_v62  ;;  %v702_v62 = vld [vmem:[%s11664_s0 + $0x178] sm:$0xff] }
 0x3c9   :  { %v6337_v0 = vpack.c.bf16 %v702_v62, %v700_v61  ;;  %v5482_v61 = vld [vmem:[%s11664_s0 + $0x1c8] sm:$0xff]  ;;  %v5484_v62 = vld [vmem:[%s11664_s0 + $0x1d8] sm:$0xff] }
 0x3cb   :  { %6316 = vmatpush1.bf16.msra.mxu1 %v6315_v4  ;;  %v701_v4 = vld [vmem:[%s11664_s0 + $0x170] sm:$0xff] }
 0x3cc   :  { %6318 = vmatprep.subr.bf16.mxu1 %v6317_v6  ;;  %v6385_v6 = vpack.c.bf16 %v859_v1, %v857_v63  ;;  %v6339_v9 = vpack.c.bf16 %v701_v4, %v699_v2  ;;  %v5533_v63 = vld [vmem:[%s11665_s2 + $0x1c8] sm:$0xff]  ;;  %v6395_v2 = vpack.c.bf16 %v5479_v30, %v5477_v26  ;;  %v5495_v26 = vld [vmem:[%s11664_s0 + $0x230] sm:$0xff] }
 0x3ce   :  { %6386 = vmatprep.subr.bf16.mxu0 %v6385_v6  ;;  %v5481_v6 = vld [vmem:[%s11664_s0 + $0x1c0] sm:$0xff] }
 0x3cf   :  { %6320 = vmatpush1.bf16.msra.mxu1 %v6319_v13  ;;  %v5474_v13 = vld [vmem:[%s11664_s0 + $0x188] sm:$0xff]  ;;  %6388 = vmatpush1.bf16.msra.mxu0 %v6387_v12  ;;  %v5534_v12 = vld [vmem:[%s11665_s2 + $0x1d0] sm:$0xff] }
 0x3d0   :  { %6322 = vmatprep.subr.bf16.mxu1 %v6321_v14  ;;  %v5476_v14 = vld [vmem:[%s11664_s0 + $0x198] sm:$0xff] }
 0x3d1   :  { %v6389_v16 = vpack.c.bf16 %v5476_v14, %v5474_v13  ;;  %v6397_v14 = vpack.c.bf16 %v5484_v62, %v5482_v61  ;;  %v5551_v61 = vld [vmem:[%s11665_s2 + $0x258] sm:$0xff] }
 0x3d3   :  { %6324 = vmatpush1.bf16.msra.mxu1 %v6323_v17  ;;  %v5527_v17 = vld [vmem:[%s11665_s2 + $0x198] sm:$0xff] }
 0x3d4   :  { %6326 = vmatprep.subr.bf16.mxu1 %v6325_v23  ;;  %v6437_v18 = vpack.c.bf16 %v5527_v17, %v5525_v15  ;;  %v5488_v17 = vld [vmem:[%s11664_s0 + $0x1f8] sm:$0xff] }
 0x3d6   :  { %6438 = vmatprep.subr.bf16.mxu0 %v6437_v18  ;;  %v5537_v18 = vld [vmem:[%s11665_s2 + $0x1e8] sm:$0xff] }
 0x3d7   :  { %6328 = vmatpush1.bf16.msra.mxu1 %v6327_v29 }
 0x3d8   :  { %6330 = vmatprep.subr.bf16.mxu1 %v6329_v39 }
 0x3db   :  { %6332 = vmatpush1.bf16.msra.mxu1 %v6331_v46 }
 0x3dc   :  { %6334 = vmatprep.subr.bf16.mxu1 %v6333_v22 }
 0x3df   :  { %6336 = vmatpush1.bf16.msra.mxu1 %v6335_v57  ;;  %v5528_v57 = vld [vmem:[%s11665_s2 + $0x1a0] sm:$0xff] }
 0x3e0   :  { %6338 = vmatprep.subr.bf16.mxu1 %v6337_v0  ;;  %v5535_v0 = vld [vmem:[%s11665_s2 + $0x1d8] sm:$0xff]  ;;  %v6443_v4 = vpack.c.bf16 %v5530_v58, %v5528_v57  ;;  %v5546_v57 = vld [vmem:[%s11665_s2 + $0x230] sm:$0xff]  ;;  %v5498_v58 = vld [vmem:[%s11664_s0 + $0x248] sm:$0xff] }
 0x3e1   :  { %v6445_v15 = vpack.c.bf16 %v5535_v0, %v5533_v63  ;;  %v5497_v0 = vld [vmem:[%s11664_s0 + $0x240] sm:$0xff] }
 0x3e3   :  { %6340 = vmatpush1.bf16.msra.mxu1 %v6339_v9  ;;  %v5483_v9 = vld [vmem:[%s11664_s0 + $0x1d0] sm:$0xff] }
 0x3e4   :  { %6390 = vmatprep.subr.bf16.mxu1 %v6389_v16  ;;  %v5486_v16 = vld [vmem:[%s11664_s0 + $0x1e8] sm:$0xff] }
 0x489   :  { %v600_v20 = vpop.f32.mrb[2].mxu1 }
 0x48a   :  { %v608_v23 = vrot.slane %v600_v20, %v7905_v7  ;;  %v602_v25 = vpop.f32.mrb[3].mxu1  ;;  %v5485_v20 = vld [vmem:[%s11664_s0 + $0x1e0] sm:$0xff] }
 0x48b   :  { %v612_v27 = vrot.slane %v602_v25, %v7905_v7  ;;  %v6447_v25 = vpack.c.bf16 %v5534_v12, %v5532_v11  ;;  %v5550_v11 = vld [vmem:[%s11665_s2 + $0x250] sm:$0xff]  ;;  %v5502_v12 = vld [vmem:[%s11664_s0 + $0x268] sm:$0xff] }
 0x48c   :  { %v613_v29 = vmul.f32 %v608_v23, %v7949_v38  ;;  %v617_v31 = vmul.f32 %v608_v23, %v7954_v44  ;;  %v5473_v38 = vld [vmem:[%s11664_s0 + $0x180] sm:$0xff]  ;;  %v615_v44 = vmul.f32 %v608_v23, %v7952_v41  ;;  %v5480_v41 = vld [vmem:[%s11664_s0 + $0x1b8] sm:$0xff] }
 0x48d   :  { %v614_v32 = vmul.f32 %v612_v27, %v7957_v47  ;;  %v616_v33 = vmul.f32 %v612_v27, %v7960_v50  ;;  %v618_v35 = vmul.f32 %v612_v27, %v7962_v53  ;;  %v5475_v47 = vld [vmem:[%s11664_s0 + $0x190] sm:$0xff]  ;;  %v5524_v50 = vld [vmem:[%s11665_s2 + $0x180] sm:$0xff]  ;;  %v6393_v59 = vpack.c.bf16 %v5480_v41, %v5478_v51  ;;  %v5496_v51 = vld [vmem:[%s11664_s0 + $0x238] sm:$0xff] }
 0x48e   :  { %v630_v36 = vadd.f32 %v623_v24, %v613_v29  ;;  %v634_v37 = vadd.f32 %v623_v24, %v617_v31  ;;  %v5526_v53 = vld [vmem:[%s11665_s2 + $0x190] sm:$0xff]  ;;  %v6391_v55 = vpack.c.bf16 %v5475_v47, %v5473_v38  ;;  %v632_v34 = vadd.f32 %v623_v24, %v615_v44  ;;  %v5536_v31 = vld [vmem:[%s11665_s2 + $0x1e0] sm:$0xff]  ;;  %v5545_v41 = vld [vmem:[%s11665_s2 + $0x228] sm:$0xff] }
 0x48f   :  { %v631_v39 = vadd.f32 %v627_v28, %v614_v32  ;;  %v633_v40 = vadd.f32 %v627_v28, %v616_v33  ;;  %v635_v42 = vadd.f32 %v627_v28, %v618_v35  ;;  %v6439_v22 = vpack.c.bf16 %v5526_v53, %v5524_v50  ;;  %v5487_v29 = vld [vmem:[%s11664_s0 + $0x1f0] sm:$0xff]  ;;  %v5490_v33 = vld [vmem:[%s11664_s0 + $0x208] sm:$0xff]  ;;  %v5492_v35 = vld [vmem:[%s11664_s0 + $0x218] sm:$0xff] }
 0x490   :  { %v636_v43 = vmax.f32 %v630_v36, 0.0  ;;  %v640_v45 = vmax.f32 %v634_v37, 0.0  ;;  %v8358_v10 = vmax.f32 %v632_v34, 0.0  ;;  %v6399_v24 = vpack.c.bf16 %v5483_v9, %v5481_v6  ;;  %v5538_v32 = vld [vmem:[%s11665_s2 + $0x1f0] sm:$0xff]  ;;  %v5540_v47 = vld [vmem:[%s11665_s2 + $0x200] sm:$0xff]  ;;  %v5494_v53 = vld [vmem:[%s11664_s0 + $0x228] sm:$0xff] }
 0x491   :  { %v637_v46 = vmax.f32 %v631_v39, 0.0  ;;  %v639_v48 = vmax.f32 %v633_v40, 0.0  ;;  %v641_v49 = vmax.f32 %v635_v42, 0.0  ;;  %v6401_v37 = vpack.c.bf16 %v5488_v17, %v5486_v16  ;;  %v5541_v40 = vld [vmem:[%s11665_s2 + $0x208] sm:$0xff]  ;;  %v5543_v42 = vld [vmem:[%s11665_s2 + $0x218] sm:$0xff]  ;;  %v5542_v50 = vld [vmem:[%s11665_s2 + $0x210] sm:$0xff] }
 0x492   :  { %642 = vst [vmem:[#allocation2] sm:$0xff] %v636_v43  ;;  %646 = vst [vmem:[#allocation2 + $0x20] sm:$0xff] %v640_v45  ;;  %v6449_v39 = vpack.c.bf16 %v5539_v19, %v5537_v18  ;;  %v6403_v45 = vpack.c.bf16 %v5487_v29, %v5485_v20  ;;  %v6405_v38 = vpack.c.bf16 %v5492_v35, %v5490_v33  ;;  %v5548_v9 = vld [vmem:[%s11665_s2 + $0x240] sm:$0xff]  ;;  %v5503_v19 = vld [vmem:[%s11664_s0 + $0x270] sm:$0xff] }
 0x493   :  { %643 = vst.msk [vmem:[#allocation2 + $0x8] sm:$0xff] %vm254_vm4, %v637_v46  ;;  %645 = vst.msk [vmem:[#allocation2 + $0x18] sm:$0xff] %vm254_vm4, %v639_v48  ;;  %v6451_v46 = vpack.c.bf16 %v5538_v32, %v5536_v31  ;;  %v5489_v48 = vld [vmem:[%s11664_s0 + $0x200] sm:$0xff]  ;;  %v6453_v44 = vpack.c.bf16 %v5543_v42, %v5541_v40  ;;  %v6409_v30 = vpack.c.bf16 %v5496_v51, %v5494_v53  ;;  %v5508_v29 = vld [vmem:[%s11664_s0 + $0x298] sm:$0xff] }
 0x494   :  { %647 = vst.msk [vmem:[#allocation2 + $0x28] sm:$0xff] %vm254_vm4, %v641_v49  ;;  %v5491_v49 = vld [vmem:[%s11664_s0 + $0x210] sm:$0xff]  ;;  %v6457_v34 = vpack.c.bf16 %v5547_v52, %v5545_v41  ;;  %v6463_v17 = vpack.c.bf16 %v5550_v11, %v5548_v9  ;;  %v5501_v18 = vld [vmem:[%s11664_s0 + $0x260] sm:$0xff]  ;;  %v5557_v31 = vld [vmem:[%s11665_s2 + $0x288] sm:$0xff] }
 0x495   :  { %v6407_v54 = vpack.c.bf16 %v5491_v49, %v5489_v48  ;;  %v5559_v32 = vld [vmem:[%s11665_s2 + $0x298] sm:$0xff]  ;;  %v6419_v33 = vpack.c.bf16 %v5503_v19, %v5501_v18  ;;  %v5556_v42 = vld [vmem:[%s11665_s2 + $0x280] sm:$0xff]  ;;  %v5561_v48 = vld [vmem:[%s11665_s2 + $0x2a8] sm:$0xff] }
 0x496   :  { %v6469_v40 = vpack.c.bf16 %v5559_v32, %v5557_v31  ;;  %v5563_v49 = vld [vmem:[%s11665_s2 + $0x2b8] sm:$0xff]  ;;  %v5560_v41 = vld [vmem:[%s11665_s2 + $0x2a0] sm:$0xff]  ;;  %v5562_v52 = vld [vmem:[%s11665_s2 + $0x2b0] sm:$0xff] }
 0x497   :  { %v6473_v51 = vpack.c.bf16 %v5563_v49, %v5561_v48  ;;  %v5517_v9 = vld [vmem:[%s11664_s0 + $0x2e0] sm:$0xff]  ;;  %v5519_v11 = vld [vmem:[%s11664_s0 + $0x2f0] sm:$0xff]  ;;  %v5627_v18 = vld [vmem:[%s11665_s2 + $0x308] sm:$0xff] }
 0x498   :  { %v5629_v19 = vld [vmem:[%s11665_s2 + $0x318] sm:$0xff]  ;;  %v5575_v31 = vld [vmem:[%s11664_s0 + $0x300] sm:$0xff]  ;;  %v5577_v32 = vld [vmem:[%s11664_s0 + $0x310] sm:$0xff] }
 0x499   :  { %v653_v36 = vld [vmem:[#allocation2 + $0x20] sm:$0xf]  ;;  %v6487_v48 = vpack.c.bf16 %v5577_v32, %v5575_v31 }
 0x49a   :  { %v650_v56 = vld [vmem:[#allocation2 + $0x8] sm:$0xff]  ;;  %v8350_v1 = vld [vmem:[#allocation2 + $0x18] sm:$0xff]  ;;  %v5591_v32 = vld [vmem:[%s11664_s0 + $0x380] sm:$0xff] }
 0x49b   :  { %5467 = vmatprep.mubr.msk.f32.mxu1 %vm254_vm4, %v650_v56  ;;  %5470 = vmatprep.mubr.msk.f32.mxu0 %vm254_vm4, %v650_v56  ;;  %v950_v13 = vld [vmem:[#allocation2 + $0x8] sm:$0xfc]  ;;  %v1012_v28 = vrot.slane %v8350_v1, 2  ;;  %v5544_v56 = vld [vmem:[%s11665_s2 + $0x220] sm:$0xff] }
 0x49c   :  { %777 = vmatmul.mubr.f32.vlgmr.msra.gmra.mrb[4].mxu1 %v636_v43  ;;  %925 = vmatmul.mubr.f32.vlgmr.msra.gmra.mrb[10].mxu0 %v636_v43  ;;  %v654_v23 = vld [vmem:[#allocation2 + $0x28] sm:$0xf]  ;;  %v1011_v27 = vrot.slane %v950_v13, 2  ;;  %v6459_v63 = vpack.c.bf16 %v5546_v57, %v5544_v56  ;;  %v5504_v13 = vld [vmem:[%s11664_s0 + $0x278] sm:$0xff]  ;;  %v5513_v56 = vld [vmem:[%s11664_s0 + $0x2c0] sm:$0xff] }
 0x49d   :  { %6392 = vmatpush1.bf16.msra.mxu1 %v6391_v55  ;;  %6440 = vmatpush1.bf16.msra.mxu0 %v6439_v22  ;;  %v6455_v55 = vpack.c.bf16 %v5542_v50, %v5540_v47  ;;  %v5493_v22 = vld [vmem:[%s11664_s0 + $0x220] sm:$0xff]  ;;  %v6417_v20 = vpack.c.bf16 %v5504_v13, %v5502_v12  ;;  %v5511_v50 = vld [vmem:[%s11664_s0 + $0x2b0] sm:$0xff] }
 0x49e   :  { %5468 = vmatprep.mubr.msk.f32.mxu1 %vm254_vm4, %v8350_v1  ;;  %5471 = vmatprep.mubr.msk.f32.mxu0 %vm254_vm4, %v8350_v1  ;;  %v1013_v43 = vsel %vm1007_vm6, %v1011_v27, %v1012_v28  ;;  %v6411_v62 = vpack.c.bf16 %v5495_v26, %v5493_v22  ;;  %v5506_v27 = vld [vmem:[%s11664_s0 + $0x288] sm:$0xff]  ;;  %v5509_v47 = vld [vmem:[%s11664_s0 + $0x2a0] sm:$0xff]  ;;  %v5567_v26 = vld [vmem:[%s11665_s2 + $0x2d8] sm:$0xff] }
 0x49f   :  { %6394 = vmatprep.subr.bf16.mxu1 %v6393_v59  ;;  %6442 = vmatprep.subr.bf16.mxu0 %v6441_v60  ;;  %v5500_v59 = vld [vmem:[%s11664_s0 + $0x258] sm:$0xff]  ;;  %v5549_v60 = vld [vmem:[%s11665_s2 + $0x248] sm:$0xff]  ;;  %v5515_v57 = vld [vmem:[%s11664_s0 + $0x2d0] sm:$0xff] }
 0x4a0   :  { %783 = vmatmul.mubr.f32.gmra.mrb[6].mxu1 %v8358_v10  ;;  %931 = vmatmul.mubr.f32.gmra.mrb[12].mxu0 %v8358_v10  ;;  %v6461_v6 = vpack.c.bf16 %v5551_v61, %v5549_v60  ;;  %v5565_v22 = vld [vmem:[%s11665_s2 + $0x2c8] sm:$0xff]  ;;  %v5564_v60 = vld [vmem:[%s11665_s2 + $0x2c0] sm:$0xff]  ;;  %v5566_v61 = vld [vmem:[%s11665_s2 + $0x2d0] sm:$0xff] }
 0x4a1   :  { %6396 = vmatpush1.bf16.msra.mxu1 %v6395_v2  ;;  %6444 = vmatpush1.bf16.msra.mxu0 %v6443_v4  ;;  %v5499_v2 = vld [vmem:[%s11664_s0 + $0x250] sm:$0xff]  ;;  %v6413_v4 = vpack.c.bf16 %v5500_v59, %v5498_v58  ;;  %v6477_v59 = vpack.c.bf16 %v5567_v26, %v5565_v22  ;;  %v5586_v22 = vld [vmem:[%s11664_s0 + $0x358] sm:$0xff]  ;;  %v5635_v26 = vld [vmem:[%s11665_s2 + $0x348] sm:$0xff] }
 0x4a2   :  { %5469 = vmatprep.mubr.msk.f32.mxu1 %vm254_vm4, %v654_v23  ;;  %5472 = vmatprep.mubr.msk.f32.mxu0 %vm254_vm4, %v654_v23  ;;  %v6415_v16 = vpack.c.bf16 %v5499_v2, %v5497_v0  ;;  %v5569_v0 = vld [vmem:[%s11665_s2 + $0x2e8] sm:$0xff]  ;;  %v5571_v2 = vld [vmem:[%s11665_s2 + $0x2f8] sm:$0xff] }
 0x4a3   :  { %6398 = vmatprep.subr.bf16.mxu1 %v6397_v14  ;;  %6446 = vmatprep.subr.bf16.mxu0 %v6445_v15  ;;  %v5553_v14 = vld [vmem:[%s11665_s2 + $0x268] sm:$0xff]  ;;  %v5555_v15 = vld [vmem:[%s11665_s2 + $0x278] sm:$0xff]  ;;  %v6481_v13 = vpack.c.bf16 %v5571_v2, %v5569_v0 }
 0x4a4   :  { %789 = vmatmul.mubr.f32.gmra.mrb[8].mxu1 %v653_v36  ;;  %937 = vmatmul.mubr.f32.gmra.mrb[14].mxu0 %v653_v36  ;;  %v6465_v23 = vpack.c.bf16 %v5555_v15, %v5553_v14  ;;  %v5505_v36 = vld [vmem:[%s11664_s0 + $0x280] sm:$0xff]  ;;  %v5570_v15 = vld [vmem:[%s11665_s2 + $0x2f0] sm:$0xff]  ;;  %v5588_v0 = vld [vmem:[%s11664_s0 + $0x368] sm:$0xff] }
 0x4a5   :  { %6400 = vmatpush1.bf16.msra.mxu1 %v6399_v24  ;;  %6448 = vmatpush1.bf16.msra.mxu0 %v6447_v25  ;;  %v5552_v24 = vld [vmem:[%s11665_s2 + $0x260] sm:$0xff]  ;;  %v5554_v25 = vld [vmem:[%s11665_s2 + $0x270] sm:$0xff] }
 0x4a6   :  { %5521 = vmatprep.mubr.msk.f32.mxu1 %vm254_vm4, %v1013_v43  ;;  %5572 = vmatprep.mubr.msk.f32.mxu0 %vm254_vm4, %v1013_v43  ;;  %v6467_v35 = vpack.c.bf16 %v5554_v25, %v5552_v24  ;;  %v5558_v43 = vld [vmem:[%s11665_s2 + $0x290] sm:$0xff]  ;;  %v5568_v14 = vld [vmem:[%s11665_s2 + $0x2e0] sm:$0xff]  ;;  %v952_v25 = vld [vmem:[#allocation2 + $0x28] sm:$0x3f] }
 0x4a7   :  { %6402 = vmatprep.subr.bf16.mxu1 %v6401_v37  ;;  %6450 = vmatprep.subr.bf16.mxu0 %v6449_v39  ;;  %v5507_v37 = vld [vmem:[%s11664_s0 + $0x290] sm:$0xff]  ;;  %v6421_v39 = vpack.c.bf16 %v5508_v29, %v5506_v27  ;;  %v6483_v24 = vpack.c.bf16 %v5570_v15, %v5568_v14  ;;  %v6533_v29 = vpack.c.bf16 %v5629_v19, %v5627_v18  ;;  %v5587_v14 = vld [vmem:[%s11664_s0 + $0x360] sm:$0xff] }
 0x4a8   :  { %v5589_v15 = vld [vmem:[%s11664_s0 + $0x370] sm:$0xff]  ;;  %v5638_v18 = vld [vmem:[%s11665_s2 + $0x360] sm:$0xff] }
 0x4a9   :  { %6404 = vmatpush1.bf16.msra.mxu1 %v6403_v45  ;;  %6452 = vmatpush1.bf16.msra.mxu0 %v6451_v46  ;;  %v5510_v45 = vld [vmem:[%s11664_s0 + $0x2a8] sm:$0xff]  ;;  %v5512_v46 = vld [vmem:[%s11664_s0 + $0x2b8] sm:$0xff]  ;;  %v5640_v19 = vld [vmem:[%s11665_s2 + $0x370] sm:$0xff] }
 0x4aa   :  { %6406 = vmatprep.subr.bf16.mxu1 %v6405_v38  ;;  %6454 = vmatprep.subr.bf16.mxu0 %v6453_v44  ;;  %v6423_v38 = vpack.c.bf16 %v5507_v37, %v5505_v36  ;;  %v6471_v44 = vpack.c.bf16 %v5558_v43, %v5556_v42  ;;  %v6425_v53 = vpack.c.bf16 %v5512_v46, %v5510_v45  ;;  %v5628_v36 = vld [vmem:[%s11665_s2 + $0x310] sm:$0xff]  ;;  %v5580_v37 = vld [vmem:[%s11664_s0 + $0x328] sm:$0xff]  ;;  %v951_v42 = vld [vmem:[#allocation2 + $0x20] sm:$0x3f]  ;;  %v1009_v46 = vrot.slane %v8358_v10, 2 }
 0x4ab   :  { %v5631_v43 = vld [vmem:[%s11665_s2 + $0x328] sm:$0xff]  ;;  %v5633_v45 = vld [vmem:[%s11665_s2 + $0x338] sm:$0xff]  ;;  %v6547_v31 = vpack.c.bf16 %v5640_v19, %v5638_v18  ;;  %v5607_v19 = vld [vmem:[%s11664_s0 + $0x400] sm:$0xff] }
 0x4ad   :  { %6408 = vmatpush1.bf16.msra.mxu1 %v6407_v54  ;;  %6456 = vmatpush1.bf16.msra.mxu0 %v6455_v55  ;;  %v5514_v54 = vld [vmem:[%s11664_s0 + $0x2c8] sm:$0xff]  ;;  %v5516_v55 = vld [vmem:[%s11664_s0 + $0x2d8] sm:$0xff] }
 0x4ae   :  { %6410 = vmatprep.subr.bf16.mxu1 %v6409_v30  ;;  %6458 = vmatprep.subr.bf16.mxu0 %v6457_v34  ;;  %v6427_v30 = vpack.c.bf16 %v5511_v50, %v5509_v47  ;;  %v6475_v34 = vpack.c.bf16 %v5562_v52, %v5560_v41  ;;  %v6429_v58 = vpack.c.bf16 %v5516_v55, %v5514_v54  ;;  %v1014_v50 = vrot.slane %v951_v42, 2  ;;  %v5630_v41 = vld [vmem:[%s11665_s2 + $0x320] sm:$0xff]  ;;  %v5632_v52 = vld [vmem:[%s11665_s2 + $0x330] sm:$0xff]  ;;  %v5584_v54 = vld [vmem:[%s11664_s0 + $0x348] sm:$0xff] }
 0x4af   :  { %v5598_v42 = vld [vmem:[%s11664_s0 + $0x3b8] sm:$0xff] }
 0x4b1   :  { %6412 = vmatpush1.bf16.msra.mxu1 %v6411_v62  ;;  %6460 = vmatpush1.bf16.msra.mxu0 %v6459_v63  ;;  %v5518_v62 = vld [vmem:[%s11664_s0 + $0x2e8] sm:$0xff]  ;;  %v5520_v63 = vld [vmem:[%s11664_s0 + $0x2f8] sm:$0xff] }
 0x4b2   :  { %6414 = vmatprep.subr.bf16.mxu1 %v6413_v4  ;;  %6462 = vmatprep.subr.bf16.mxu0 %v6461_v6  ;;  %v6431_v4 = vpack.c.bf16 %v5515_v57, %v5513_v56  ;;  %v6479_v6 = vpack.c.bf16 %v5566_v61, %v5564_v60  ;;  %v6433_v12 = vpack.c.bf16 %v5520_v63, %v5518_v62  ;;  %v5583_v57 = vld [vmem:[%s11664_s0 + $0x340] sm:$0xff]  ;;  %v5636_v63 = vld [vmem:[%s11665_s2 + $0x350] sm:$0xff] }
 0x4b3   :  { %v6539_v56 = vpack.c.bf16 %v5632_v52, %v5630_v41  ;;  %v6493_v60 = vpack.c.bf16 %v5586_v22, %v5584_v54  ;;  %v5634_v62 = vld [vmem:[%s11665_s2 + $0x340] sm:$0xff]  ;;  %v5602_v41 = vld [vmem:[%s11664_s0 + $0x3d8] sm:$0xff]  ;;  %v5651_v52 = vld [vmem:[%s11665_s2 + $0x3c8] sm:$0xff] }
 0x4b4   :  { %v5653_v54 = vld [vmem:[%s11665_s2 + $0x3d8] sm:$0xff] }
 0x4b5   :  { %6416 = vmatpush1.bf16.msra.mxu1 %v6415_v16  ;;  %6464 = vmatpush1.bf16.msra.mxu0 %v6463_v17  ;;  %v5576_v16 = vld [vmem:[%s11664_s0 + $0x308] sm:$0xff]  ;;  %v5578_v17 = vld [vmem:[%s11664_s0 + $0x318] sm:$0xff] }
 0x4b6   :  { %6418 = vmatprep.subr.bf16.mxu1 %v6417_v20  ;;  %6466 = vmatprep.subr.bf16.mxu0 %v6465_v23  ;;  %v949_v20 = vld [vmem:[#allocation2] sm:$0xfc]  ;;  %v6435_v23 = vpack.c.bf16 %v5519_v11, %v5517_v9  ;;  %v6485_v27 = vpack.c.bf16 %v5578_v17, %v5576_v16  ;;  %v5639_v9 = vld [vmem:[%s11665_s2 + $0x368] sm:$0xff]  ;;  %v5641_v11 = vld [vmem:[%s11665_s2 + $0x378] sm:$0xff] }
 0x4b7   :  { %v6545_v17 = vpack.c.bf16 %v5641_v11, %v5639_v9  ;;  %v5654_v11 = vld [vmem:[%s11665_s2 + $0x3e0] sm:$0xff] }
 0x4b9   :  { %6420 = vmatpush1.bf16.msra.mxu1 %v6419_v33  ;;  %6468 = vmatpush1.bf16.msra.mxu0 %v6467_v35  ;;  %v5626_v33 = vld [vmem:[%s11665_s2 + $0x300] sm:$0xff]  ;;  %v1008_v35 = vrot.slane %v949_v20, 2  ;;  %v5592_v20 = vld [vmem:[%s11664_s0 + $0x388] sm:$0xff] }
 0x4ba   :  { %6422 = vmatprep.subr.bf16.mxu1 %v6421_v39  ;;  %6470 = vmatprep.subr.bf16.mxu0 %v6469_v40  ;;  %v5582_v39 = vld [vmem:[%s11664_s0 + $0x338] sm:$0xff]  ;;  %v1016_v40 = vrot.slane %v952_v25, 2  ;;  %v6535_v49 = vpack.c.bf16 %v5628_v36, %v5626_v33  ;;  %v5643_v25 = vld [vmem:[%s11665_s2 + $0x388] sm:$0xff]  ;;  %v5593_v33 = vld [vmem:[%s11664_s0 + $0x390] sm:$0xff] }
 0x4bb   :  { %v1010_v47 = vsel %vm1007_vm6, %v1008_v35, %v1009_v46 }
 0x4bc   :  { %v1017_v55 = vsel %vm1007_vm6, %v1012_v28, %v1016_v40 }
 0x4bd   :  { %6424 = vmatpush1.bf16.msra.mxu1 %v6423_v38  ;;  %6472 = vmatpush1.bf16.msra.mxu0 %v6471_v44  ;;  %v5579_v38 = vld [vmem:[%s11664_s0 + $0x320] sm:$0xff]  ;;  %v5581_v44 = vld [vmem:[%s11664_s0 + $0x330] sm:$0xff] }
 0x4be   :  { %6426 = vmatprep.subr.bf16.mxu1 %v6425_v53  ;;  %6474 = vmatprep.subr.bf16.mxu0 %v6473_v51  ;;  %v6489_v53 = vpack.c.bf16 %v5582_v39, %v5580_v37  ;;  %v6537_v51 = vpack.c.bf16 %v5633_v45, %v5631_v43  ;;  %v6491_v28 = vpack.c.bf16 %v5581_v44, %v5579_v38  ;;  %v5642_v37 = vld [vmem:[%s11665_s2 + $0x380] sm:$0xff]  ;;  %v5644_v39 = vld [vmem:[%s11665_s2 + $0x390] sm:$0xff]  ;;  %v5647_v43 = vld [vmem:[%s11665_s2 + $0x3a8] sm:$0xff] }
 0x4bf   :  { %v5649_v45 = vld [vmem:[%s11665_s2 + $0x3b8] sm:$0xff]  ;;  %v5597_v38 = vld [vmem:[%s11664_s0 + $0x3b0] sm:$0xff] }
 0x4c1   :  { %6428 = vmatpush1.bf16.msra.mxu1 %v6427_v30  ;;  %6476 = vmatpush1.bf16.msra.mxu0 %v6475_v34  ;;  %v5637_v30 = vld [vmem:[%s11665_s2 + $0x358] sm:$0xff]  ;;  %v1255_v34 = vld [vmem:[#allocation2 + $0x8] sm:$0xf0] }
 0x4c2   :  { %6430 = vmatprep.subr.bf16.mxu1 %v6429_v58  ;;  %6478 = vmatprep.subr.bf16.mxu0 %v6477_v59  ;;  %v5585_v58 = vld [vmem:[%s11664_s0 + $0x350] sm:$0xff]  ;;  %v1015_v59 = vsel %vm1007_vm6, %v1009_v46, %v1014_v50  ;;  %v6541_v61 = vpack.c.bf16 %v5637_v30, %v5635_v26  ;;  %v1315_v2 = vrot.slane %v1255_v34, 4  ;;  %v6503_v46 = vpack.c.bf16 %v5593_v33, %v5591_v32  ;;  %v5599_v26 = vld [vmem:[%s11664_s0 + $0x3c0] sm:$0xff]  ;;  %v5663_v32 = vld [vmem:[%s11665_s2 + $0x428] sm:$0xff] }
 0x4c3   :  { %v5601_v30 = vld [vmem:[%s11664_s0 + $0x3d0] sm:$0xff]  ;;  %v5665_v33 = vld [vmem:[%s11665_s2 + $0x438] sm:$0xff] }
 0x4c5   :  { %6432 = vmatpush1.bf16.msra.mxu1 %v6431_v4  ;;  %6480 = vmatpush1.bf16.msra.mxu0 %v6479_v6  ;;  %v1316_v4 = vrot.slane %v8350_v1, 4  ;;  %v5590_v6 = vld [vmem:[%s11664_s0 + $0x378] sm:$0xff]  ;;  %v1563_v1 = vld [vmem:[%s11668_s3 + $0x28] sm:$0xff] }
 0x4c6   :  { %6434 = vmatprep.subr.bf16.mxu1 %v6433_v12  ;;  %6482 = vmatprep.subr.bf16.mxu0 %v6481_v13  ;;  %v6495_v12 = vpack.c.bf16 %v5585_v58, %v5583_v57  ;;  %v6543_v13 = vpack.c.bf16 %v5636_v63, %v5634_v62  ;;  %v6497_v16 = vpack.c.bf16 %v5590_v6, %v5588_v0  ;;  %v5652_v57 = vld [vmem:[%s11665_s2 + $0x3d0] sm:$0xff]  ;;  %v5604_v58 = vld [vmem:[%s11664_s0 + $0x3e8] sm:$0xff]  ;;  %v5603_v0 = vld [vmem:[%s11664_s0 + $0x3e0] sm:$0xff] }
 0x4c7   :  { %v6511_v62 = vpack.c.bf16 %v5601_v30, %v5599_v26  ;;  %v5671_v26 = vld [vmem:[%s11665_s2 + $0x468] sm:$0xff]  ;;  %v5673_v30 = vld [vmem:[%s11665_s2 + $0x478] sm:$0xff] }
 0x4c9   :  { %6436 = vmatpush1.bf16.msra.mxu1 %v6435_v23  ;;  %6484 = vmatpush1.bf16.msra.mxu0 %v6483_v24  ;;  %v1317_v23 = vsel %vm1311_vm7, %v1315_v2, %v1316_v4  ;;  %v5594_v24 = vld [vmem:[%s11664_s0 + $0x398] sm:$0xff]  ;;  %v5605_v2 = vld [vmem:[%s11664_s0 + $0x3f0] sm:$0xff] }
 0x4ca   :  { %6486 = vmatprep.subr.bf16.mxu1 %v6485_v27  ;;  %6534 = vmatprep.subr.bf16.mxu0 %v6533_v29  ;;  %v5645_v27 = vld [vmem:[%s11665_s2 + $0x398] sm:$0xff]  ;;  %v6499_v29 = vpack.c.bf16 %v5589_v15, %v5587_v14  ;;  %v6501_v35 = vpack.c.bf16 %v5594_v24, %v5592_v20  ;;  %v5659_v15 = vld [vmem:[%s11665_s2 + $0x408] sm:$0xff]  ;;  %v5609_v20 = vld [vmem:[%s11664_s0 + $0x410] sm:$0xff] }
 0x4cb   :  { %v6549_v36 = vpack.c.bf16 %v5645_v27, %v5643_v25  ;;  %v5610_v14 = vld [vmem:[%s11664_s0 + $0x418] sm:$0xff]  ;;  %v5658_v25 = vld [vmem:[%s11665_s2 + $0x400] sm:$0xff]  ;;  %v5660_v27 = vld [vmem:[%s11665_s2 + $0x410] sm:$0xff] }
 0x4cc   :  { %1092 = vmatmul.mubr.f32.vlgmr.msra.gmra.mrb[4].mxu1 %v1010_v47  ;;  %1230 = vmatmul.mubr.f32.vlgmr.msra.gmra.mrb[10].mxu0 %v1010_v47  ;;  %v6553_v47 = vpack.c.bf16 %v5649_v45, %v5647_v43  ;;  %v5662_v43 = vld [vmem:[%s11665_s2 + $0x420] sm:$0xff]  ;;  %v5664_v45 = vld [vmem:[%s11665_s2 + $0x430] sm:$0xff] }
 0x4cd   :  { %5522 = vmatprep.mubr.msk.f32.mxu1 %vm254_vm4, %v1017_v55  ;;  %5573 = vmatprep.mubr.msk.f32.mxu0 %vm254_vm4, %v1017_v55 }
 0x4ce   :  { %6488 = vmatpush1.bf16.msra.mxu1 %v6487_v48  ;;  %6536 = vmatpush1.bf16.msra.mxu0 %v6535_v49  ;;  %v6551_v48 = vpack.c.bf16 %v5644_v39, %v5642_v37  ;;  %v5595_v49 = vld [vmem:[%s11664_s0 + $0x3a0] sm:$0xff]  ;;  %v5613_v39 = vld [vmem:[%s11664_s0 + $0x430] sm:$0xff] }
 0x4cf   :  { %6490 = vmatprep.subr.bf16.mxu1 %v6489_v53  ;;  %6538 = vmatprep.subr.bf16.mxu0 %v6537_v51  ;;  %v5648_v53 = vld [vmem:[%s11665_s2 + $0x3b0] sm:$0xff]  ;;  %v5600_v51 = vld [vmem:[%s11664_s0 + $0x3c8] sm:$0xff]  ;;  %v6507_v55 = vpack.c.bf16 %v5597_v38, %v5595_v49  ;;  %v5611_v37 = vld [vmem:[%s11664_s0 + $0x420] sm:$0xff] }
 0x4d0   :  { %1098 = vmatmul.mubr.f32.gmra.mrb[6].mxu1 %v1015_v59  ;;  %1236 = vmatmul.mubr.f32.gmra.mrb[12].mxu0 %v1015_v59  ;;  %v6509_v34 = vpack.c.bf16 %v5602_v41, %v5600_v51  ;;  %v5606_v59 = vld [vmem:[%s11664_s0 + $0x3f8] sm:$0xff]  ;;  %v5667_v49 = vld [vmem:[%s11665_s2 + $0x448] sm:$0xff] }
 0x4d1   :  { %5523 = vmatprep.mubr.msk.f32.mxu1 %vm254_vm4, %v1016_v40  ;;  %5574 = vmatprep.mubr.msk.f32.mxu0 %vm254_vm4, %v1016_v40  ;;  %v5596_v40 = vld [vmem:[%s11664_s0 + $0x3a8] sm:$0xff]  ;;  %v6513_v6 = vpack.c.bf16 %v5606_v59, %v5604_v58  ;;  %v5669_v38 = vld [vmem:[%s11665_s2 + $0x458] sm:$0xff]  ;;  %v6577_v58 = vpack.c.bf16 %v5673_v30, %v5671_v26  ;;  %v5621_v59 = vld [vmem:[%s11664_s0 + $0x470] sm:$0xff] }
 0x4d2   :  { %6492 = vmatpush1.bf16.msra.mxu1 %v6491_v28  ;;  %6540 = vmatpush1.bf16.msra.mxu0 %v6539_v56  ;;  %v6505_v44 = vpack.c.bf16 %v5598_v42, %v5596_v40  ;;  %v6557_v28 = vpack.c.bf16 %v5653_v54, %v5651_v52  ;;  %v5650_v56 = vld [vmem:[%s11665_s2 + $0x3c0] sm:$0xff]  ;;  %v6569_v42 = vpack.c.bf16 %v5665_v33, %v5663_v32  ;;  %v5668_v54 = vld [vmem:[%s11665_s2 + $0x450] sm:$0xff]  ;;  %v1567_v32 = vld [vmem:[%s11668_s3 + $0x48] sm:$0xff] }
 0x4d3   :  { %6494 = vmatprep.subr.bf16.mxu1 %v6493_v60  ;;  %6542 = vmatprep.subr.bf16.mxu0 %v6541_v61  ;;  %v5655_v60 = vld [vmem:[%s11665_s2 + $0x3e8] sm:$0xff]  ;;  %v5657_v61 = vld [vmem:[%s11665_s2 + $0x3f8] sm:$0xff]  ;;  %v6559_v63 = vpack.c.bf16 %v5652_v57, %v5650_v56  ;;  %v6573_v41 = vpack.c.bf16 %v5669_v38, %v5667_v49  ;;  %v5666_v52 = vld [vmem:[%s11665_s2 + $0x440] sm:$0xff] }
 0x4d4   :  { %1104 = vmatmul.mubr.f32.gmra.mrb[8].mxu1 %v1014_v50  ;;  %1242 = vmatmul.mubr.f32.gmra.mrb[14].mxu0 %v1014_v50  ;;  %v5646_v50 = vld [vmem:[%s11665_s2 + $0x3a0] sm:$0xff]  ;;  %v6561_v9 = vpack.c.bf16 %v5657_v61, %v5655_v60  ;;  %v5672_v61 = vld [vmem:[%s11665_s2 + $0x470] sm:$0xff]  ;;  %v1575_v49 = vld [vmem:[%s11668_s3 + $0x88] sm:$0xff] }
 0x4d5   :  { %5623 = vmatprep.mubr.msk.f32.mxu1 %vm254_vm4, %v1317_v23  ;;  %5674 = vmatprep.mubr.msk.f32.mxu0 %vm254_vm4, %v1317_v23  ;;  %v6555_v22 = vpack.c.bf16 %v5648_v53, %v5646_v50  ;;  %v5615_v50 = vld [vmem:[%s11664_s0 + $0x440] sm:$0xff]  ;;  %v5617_v53 = vld [vmem:[%s11664_s0 + $0x450] sm:$0xff] }
 0x4d6   :  { %6496 = vmatpush1.bf16.msra.mxu1 %v6495_v12  ;;  %6544 = vmatpush1.bf16.msra.mxu0 %v6543_v13  ;;  %v5656_v12 = vld [vmem:[%s11665_s2 + $0x3f0] sm:$0xff]  ;;  %v5608_v13 = vld [vmem:[%s11664_s0 + $0x408] sm:$0xff]  ;;  %v5619_v56 = vld [vmem:[%s11664_s0 + $0x460] sm:$0xff] }
 0x4d7   :  { %6498 = vmatprep.subr.bf16.mxu1 %v6497_v16  ;;  %6546 = vmatprep.subr.bf16.mxu0 %v6545_v17  ;;  %v5661_v16 = vld [vmem:[%s11665_s2 + $0x418] sm:$0xff]  ;;  %v6515_v17 = vpack.c.bf16 %v5605_v2, %v5603_v0  ;;  %v6563_v18 = vpack.c.bf16 %v5656_v12, %v5654_v11  ;;  %v6517_v23 = vpack.c.bf16 %v5610_v14, %v5608_v13  ;;  %v5670_v60 = vld [vmem:[%s11665_s2 + $0x460] sm:$0xff]  ;;  %v1257_v2 = vld [vmem:[#allocation2 + $0x28] sm:$0xff]  ;;  %v1313_v14 = vrot.slane %v8358_v10, 4 }
 0x4d8   :  { %v6565_v24 = vpack.c.bf16 %v5661_v16, %v5659_v15  ;;  %v6579_v0 = vpack.c.bf16 %v5672_v61, %v5670_v60  ;;  %v1559_v11 = vld [vmem:[%s11668_s3 + $0x8] sm:$0xff]  ;;  %v1320_v12 = vrot.slane %v1257_v2, 4  ;;  %v1256_v13 = vld [vmem:[#allocation2 + $0x20] sm:$0xff] }
 0x4da   :  { %6500 = vmatpush1.bf16.msra.mxu1 %v6499_v29  ;;  %6548 = vmatpush1.bf16.msra.mxu0 %v6547_v31  ;;  %v5612_v29 = vld [vmem:[%s11664_s0 + $0x428] sm:$0xff]  ;;  %v5614_v31 = vld [vmem:[%s11664_s0 + $0x438] sm:$0xff]  ;;  %v1321_v10 = vsel %vm1311_vm7, %v1316_v4, %v1320_v12 }
 0x4db   :  { %6502 = vmatprep.subr.bf16.mxu1 %v6501_v35  ;;  %6550 = vmatprep.subr.bf16.mxu0 %v6549_v36  ;;  %v6519_v35 = vpack.c.bf16 %v5609_v20, %v5607_v19  ;;  %v6567_v36 = vpack.c.bf16 %v5660_v27, %v5658_v25  ;;  %v6521_v40 = vpack.c.bf16 %v5614_v31, %v5612_v29  ;;  %v1561_v19 = vld [vmem:[%s11668_s3 + $0x18] sm:$0xff]  ;;  %v1564_v25 = vld [vmem:[%s11668_s3 + $0x30] sm:$0xff]  ;;  %v1566_v31 = vld [vmem:[%s11668_s3 + $0x40] sm:$0xff] }
 0x4dc   :  { %v1565_v27 = vld [vmem:[%s11668_s3 + $0x38] sm:$0xff]  ;;  %v8958_v33 = vpack.c.bf16 %v1567_v32, %v1566_v31 }
 0x4dd   :  { %v8948_v29 = vpack.c.bf16 %v1565_v27, %v1564_v25 }
 0x4de   :  { %6504 = vmatpush1.bf16.msra.mxu1 %v6503_v46  ;;  %6552 = vmatpush1.bf16.msra.mxu0 %v6551_v48  ;;  %v5616_v46 = vld [vmem:[%s11664_s0 + $0x448] sm:$0xff]  ;;  %v5618_v48 = vld [vmem:[%s11664_s0 + $0x458] sm:$0xff] }
 0x4df   :  { %6506 = vmatprep.subr.bf16.mxu1 %v6505_v44  ;;  %6554 = vmatprep.subr.bf16.mxu0 %v6553_v47  ;;  %v6523_v44 = vpack.c.bf16 %v5613_v39, %v5611_v37  ;;  %v6571_v47 = vpack.c.bf16 %v5664_v45, %v5662_v43  ;;  %v6525_v51 = vpack.c.bf16 %v5618_v48, %v5616_v46  ;;  %v1570_v39 = vld [vmem:[%s11668_s3 + $0x60] sm:$0xff]  ;;  %v1572_v43 = vld [vmem:[%s11668_s3 + $0x70] sm:$0xff]  ;;  %v1573_v45 = vld [vmem:[%s11668_s3 + $0x78] sm:$0xff] }
 0x4e0   :  { %v8988_v46 = vpack.c.bf16 %v1573_v45, %v1572_v43  ;;  %v1574_v48 = vld [vmem:[%s11668_s3 + $0x80] sm:$0xff] }
 0x4e1   :  { %v8998_v38 = vpack.c.bf16 %v1575_v49, %v1574_v48 }
 0x4e2   :  { %6508 = vmatpush1.bf16.msra.mxu1 %v6507_v55  ;;  %6556 = vmatpush1.bf16.msra.mxu0 %v6555_v22  ;;  %v5620_v55 = vld [vmem:[%s11664_s0 + $0x468] sm:$0xff]  ;;  %v5622_v22 = vld [vmem:[%s11664_s0 + $0x478] sm:$0xff] }
 0x4e3   :  { %6510 = vmatprep.subr.bf16.mxu1 %v6509_v34  ;;  %6558 = vmatprep.subr.bf16.mxu0 %v6557_v28  ;;  %v6527_v34 = vpack.c.bf16 %v5617_v53, %v5615_v50  ;;  %v6575_v28 = vpack.c.bf16 %v5668_v54, %v5666_v52  ;;  %v6529_v57 = vpack.c.bf16 %v5622_v22, %v5620_v55  ;;  %v1579_v53 = vld [vmem:[%s11669_s6 + $0x8] sm:$0xff]  ;;  %v1580_v54 = vld [vmem:[%s11669_s6 + $0x10] sm:$0xff]  ;;  %v1585_v22 = vld [vmem:[%s11669_s6 + $0x38] sm:$0xff] }
 0x4e4   :  { %v1583_v55 = vld [vmem:[%s11669_s6 + $0x28] sm:$0xff] }
 0x4e5   :  { %v9031_v30 = vpack.c.bf16 %v1585_v22, %v1583_v55 }
 0x4e6   :  { %6512 = vmatpush1.bf16.msra.mxu1 %v6511_v62  ;;  %6560 = vmatpush1.bf16.msra.mxu0 %v6559_v63  ;;  %v1254_v62 = vld [vmem:[#allocation2] sm:$0xf0]  ;;  %v6531_v63 = vpack.c.bf16 %v5621_v59, %v5619_v56 }
 0x4e7   :  { %6514 = vmatprep.subr.bf16.mxu1 %v6513_v6  ;;  %6562 = vmatprep.subr.bf16.mxu0 %v6561_v9  ;;  %v1312_v6 = vrot.slane %v1254_v62, 4  ;;  %v1558_v9 = vld [vmem:[%s11668_s3] sm:$0xff] }
 0x4e8   :  { %v8908_v15 = vpack.c.bf16 %v1559_v11, %v1558_v9 }
 0x4e9   :  { %v1314_v16 = vsel %vm1311_vm7, %v1312_v6, %v1313_v14 }
 0x4ea   :  { %6516 = vmatpush1.bf16.msra.mxu1 %v6515_v17  ;;  %6564 = vmatpush1.bf16.msra.mxu0 %v6563_v18  ;;  %v1318_v17 = vrot.slane %v1256_v13, 4  ;;  %v1560_v18 = vld [vmem:[%s11668_s3 + $0x10] sm:$0xff] }
 0x4eb   :  { %6518 = vmatprep.subr.bf16.mxu1 %v6517_v23  ;;  %6566 = vmatprep.subr.bf16.mxu0 %v6565_v24  ;;  %v8923_v20 = vpack.c.bf16 %v1561_v19, %v1560_v18  ;;  %v1562_v24 = vld [vmem:[%s11668_s3 + $0x20] sm:$0xff] }
 0x4ec   :  { %v1319_v23 = vsel %vm1311_vm7, %v1313_v14, %v1318_v17  ;;  %v8936_v4 = vpack.c.bf16 %v1563_v1, %v1562_v24 }
 0x4ee   :  { %6520 = vmatpush1.bf16.msra.mxu1 %v6519_v35  ;;  %6568 = vmatpush1.bf16.msra.mxu0 %v6567_v36  ;;  %v1568_v35 = vld [vmem:[%s11668_s3 + $0x50] sm:$0xff]  ;;  %v1569_v36 = vld [vmem:[%s11668_s3 + $0x58] sm:$0xff] }
 0x4ef   :  { %6522 = vmatprep.subr.bf16.mxu1 %v6521_v40  ;;  %6570 = vmatprep.subr.bf16.mxu0 %v6569_v42  ;;  %v8968_v37 = vpack.c.bf16 %v1569_v36, %v1568_v35  ;;  %v1571_v40 = vld [vmem:[%s11668_s3 + $0x68] sm:$0xff] }
 0x4f0   :  { %v8978_v42 = vpack.c.bf16 %v1571_v40, %v1570_v39 }
 0x4f2   :  { %6524 = vmatpush1.bf16.msra.mxu1 %v6523_v44  ;;  %6572 = vmatpush1.bf16.msra.mxu0 %v6571_v47  ;;  %v1576_v44 = vld [vmem:[%s11668_s3 + $0x90] sm:$0xff]  ;;  %v1577_v47 = vld [vmem:[%s11668_s3 + $0x98] sm:$0xff] }
 0x4f3   :  { %6526 = vmatprep.subr.bf16.mxu1 %v6525_v51  ;;  %6574 = vmatprep.subr.bf16.mxu0 %v6573_v41  ;;  %v9008_v50 = vpack.c.bf16 %v1577_v47, %v1576_v44  ;;  %v1581_v51 = vld [vmem:[%s11669_s6 + $0x18] sm:$0xff]  ;;  %v1578_v41 = vld [vmem:[%s11669_s6] sm:$0xff] }
 0x4f4   :  { %v6611_v52 = vpack.c.bf16 %v1581_v51, %v1579_v53  ;;  %v9029_v26 = vpack.c.bf16 %v1580_v54, %v1578_v41 }
 0x4f6   :  { %6528 = vmatpush1.bf16.msra.mxu1 %v6527_v34  ;;  %6576 = vmatpush1.bf16.msra.mxu0 %v6575_v28  ;;  %v1582_v34 = vld [vmem:[%s11669_s6 + $0x20] sm:$0xff]  ;;  %v1584_v28 = vld [vmem:[%s11669_s6 + $0x30] sm:$0xff] }
 0x4f7   :  { %6530 = vmatprep.subr.bf16.mxu1 %v6529_v57  ;;  %6578 = vmatprep.subr.bf16.mxu0 %v6577_v58  ;;  %v9040_v56 = vpack.c.bf16 %v1584_v28, %v1582_v34  ;;  %v648_v57 = vld [vmem:[%s11670_s25] sm:$0x3] }
 0x4f8   :  { %v803_v60 = vrot.slane %v648_v57, %v7900_v5 }
 0x4fa   :  { %6532 = vmatpush1.bf16.msra.mxu1 %v6531_v63  ;;  %6580 = vmatpush1.bf16.msra.mxu0 %v6579_v0  ;;  %v799_v63 = vrot.slane %v648_v57, %v7905_v7 }
 0x4fb   :  { %6581 = vmatprep.subr.bf16.mxu1 %v7557_v8  ;;  %6612 = vmatprep.subr.bf16.mxu0 %v6611_v52 }
 0x4fd   :  { %1396 = vmatmul.mubr.f32.vlgmr.msra.gmra.mrb[4].mxu1 %v1314_v16  ;;  %1534 = vmatmul.mubr.f32.vlgmr.msra.gmra.mrb[10].mxu0 %v1314_v16 }
 0x4fe   :  { %5624 = vmatprep.mubr.msk.f32.mxu1 %vm254_vm4, %v1321_v10  ;;  %5675 = vmatprep.mubr.msk.f32.mxu0 %vm254_vm4, %v1321_v10 }
 0x4ff   :  { %6583 = vmatpush1.bf16.msra.mxu1 %v8908_v15  ;;  %6614 = vmatpush1.bf16.msra.mxu0 %v9029_v26 }
 0x500   :  { %6584 = vmatprep.subr.bf16.mxu1 %v7557_v8  ;;  %6616 = vmatprep.subr.bf16.mxu0 %v9031_v30 }
 0x501   :  { %1402 = vmatmul.mubr.f32.gmra.mrb[6].mxu1 %v1319_v23  ;;  %1540 = vmatmul.mubr.f32.gmra.mrb[12].mxu0 %v1319_v23 }
 0x502   :  { %5625 = vmatprep.mubr.msk.f32.mxu1 %vm254_vm4, %v1320_v12  ;;  %5676 = vmatprep.mubr.msk.f32.mxu0 %vm254_vm4, %v1320_v12 }
 0x503   :  { %6586 = vmatpush1.bf16.msra.mxu1 %v8923_v20  ;;  %6618 = vmatpush1.bf16.msra.mxu0 %v9040_v56 }
 0x504   :  { %6587 = vmatprep.subr.bf16.mxu1 %v7557_v8  ;;  %6619 = vmatprep.subr.bf16.mxu0 %v7557_v8 }
 0x505   :  { %1408 = vmatmul.mubr.f32.gmra.mrb[8].mxu1 %v1318_v17  ;;  %1546 = vmatmul.mubr.f32.gmra.mrb[14].mxu0 %v1318_v17 }
 0x506   :  { %1773 = vmatprep.mubr.f32.mxu0 %v7556_v3 }
 0x507   :  { %6589 = vmatpush1.bf16.msra.mxu1 %v8936_v4 }
 0x508   :  { %6590 = vmatprep.subr.bf16.mxu1 %v7557_v8 }
 0x50b   :  { %6592 = vmatpush1.bf16.msra.mxu1 %v8948_v29 }
 0x50c   :  { %6593 = vmatprep.subr.bf16.mxu1 %v7557_v8 }
 0x50f   :  { %6595 = vmatpush1.bf16.msra.mxu1 %v8958_v33 }
 0x510   :  { %6596 = vmatprep.subr.bf16.mxu1 %v7557_v8 }
 0x513   :  { %6598 = vmatpush1.bf16.msra.mxu1 %v8968_v37 }
 0x514   :  { %6599 = vmatprep.subr.bf16.mxu1 %v7557_v8 }
 0x517   :  { %6601 = vmatpush1.bf16.msra.mxu1 %v8978_v42 }
 0x518   :  { %6602 = vmatprep.subr.bf16.mxu1 %v7557_v8 }
 0x51b   :  { %6604 = vmatpush1.bf16.msra.mxu1 %v8988_v46 }
 0x51c   :  { %6605 = vmatprep.subr.bf16.mxu1 %v7557_v8 }
 0x51f   :  { %6607 = vmatpush1.bf16.msra.mxu1 %v8998_v38 }
 0x520   :  { %6608 = vmatprep.subr.bf16.mxu1 %v7557_v8 }
 0x523   :  { %6610 = vmatpush1.bf16.msra.mxu1 %v9008_v50 }
 0x524   :  { %6650 = vmatprep.subr.bf16.mxu1 %v6611_v52 }
 0x5d0   :  { %v1397_v58 = vpop.f32.mrb[4].mxu1  ;;  %v1535_v59 = vpop.f32.mrb[10].mxu0 }
 0x5d1   :  { %v1399_v61 = vpop.f32.mrb[5].mxu1  ;;  %v1537_v62 = vpop.f32.mrb[11].mxu0  ;;  %v9062_v18 = vadd.f32 %v1397_v58, %v799_v63  ;;  %v9064_v19 = vadd.f32 %v1535_v59, %v799_v63 }
 0x5d2   :  { %v9050_v6 = vadd.f32 %v1399_v61, %v803_v60  ;;  %v9052_v9 = vadd.f32 %v1537_v62, %v803_v60 }
 0x5d4   :  { %v1403_v0 = vpop.f32.mrb[6].mxu1  ;;  %v1541_v2 = vpop.f32.mrb[12].mxu0  ;;  %v1598_v25 = vsel %vm1597_vm8, %v9050_v6, 0.0  ;;  %v1619_v27 = vsel %vm1597_vm8, %v9052_v9, 0.0 }
 0x5d5   :  { %v1405_v11 = vpop.f32.mrb[7].mxu1  ;;  %v1543_v12 = vpop.f32.mrb[13].mxu0  ;;  %v9054_v13 = vadd.f32 %v1403_v0, %v799_v63  ;;  %v9056_v14 = vadd.f32 %v1541_v2, %v799_v63 }
 0x5d6   :  { %v9058_v16 = vadd.f32 %v1405_v11, %v803_v60  ;;  %v9060_v17 = vadd.f32 %v1543_v12, %v803_v60 }
 0x5d7   :  { %v1588_v39 = vadd.f32 %v9054_v13, %v9062_v18  ;;  %v1610_v40 = vadd.f32 %v9056_v14, %v9064_v19 }
 0x5d8   :  { %v1599_v10 = vsel %vm1597_vm8, %v9058_v16, 0.0  ;;  %v1620_v23 = vsel %vm1597_vm8, %v9060_v17, 0.0  ;;  %v1409_v24 = vpop.f32.mrb[8].mxu1  ;;  %v1547_v1 = vpop.f32.mrb[14].mxu0 }
 0x5d9   :  { %v9074_v31 = vadd.f32 %v1409_v24, %v799_v63  ;;  %v9076_v32 = vadd.f32 %v1547_v1, %v799_v63  ;;  %v1411_v35 = vpop.f32.mrb[9].mxu1  ;;  %v1549_v36 = vpop.f32.mrb[15].mxu0  ;;  %v1600_v48 = vadd.f32 %v1599_v10, %v1598_v25  ;;  %v1621_v49 = vadd.f32 %v1620_v23, %v1619_v27 }
 0x5da   :  { %v9082_v43 = vadd.f32 %v1411_v35, %v803_v60  ;;  %v9084_v45 = vadd.f32 %v1549_v36, %v803_v60 }
 0x5db   :  { %v1589_v44 = vsel %vm1311_vm7, %v9074_v31, 0.0  ;;  %v1611_v47 = vsel %vm1311_vm7, %v9076_v32, 0.0 }
 0x5dc   :  { %v1590_v53 = vadd.f32 %v1589_v44, %v1588_v39  ;;  %v1612_v51 = vadd.f32 %v1611_v47, %v1610_v40  ;;  %v1602_v41 = vsel %vm1601_vm9, %v9082_v43, 0.0  ;;  %v1622_v52 = vsel %vm1601_vm9, %v9084_v45, 0.0 }
 0x5dd   :  { %v1603_v54 = vadd.f32 %v1602_v41, %v1600_v48  ;;  %v1623_v55 = vadd.f32 %v1622_v52, %v1621_v49 }
 0x5de   :  { %v1591_v22 = vrot.slane %v1590_v53, 4  ;;  %v1613_v34 = vrot.slane %v1612_v51, 4 }
 0x5df   :  { %v1604_v28 = vrot.slane %v1603_v54, 4  ;;  %v1624_v57 = vrot.slane %v1623_v55, 4 }
 0x5e0   :  { %v1592_v58 = vadd.f32 %v1591_v22, %v1590_v53  ;;  %v1614_v59 = vadd.f32 %v1613_v34, %v1612_v51 }
 0x5e1   :  { %v1605_v60 = vadd.f32 %v1604_v28, %v1603_v54  ;;  %v1625_v61 = vadd.f32 %v1624_v57, %v1623_v55 }
 0x5e2   :  { %v1593_v62 = vrot.slane %v1592_v58, 2  ;;  %v1615_v63 = vrot.slane %v1614_v59, 2 }
 0x5e3   :  { %v1606_v0 = vrot.slane %v1605_v60, 2  ;;  %v1626_v2 = vrot.slane %v1625_v61, 2 }
 0x5e4   :  { %v1594_v11 = vadd.f32 %v1593_v62, %v1592_v58  ;;  %v1616_v12 = vadd.f32 %v1615_v63, %v1614_v59 }
 0x5e5   :  { %v1607_v10 = vadd.f32 %v1606_v0, %v1605_v60  ;;  %v1627_v23 = vadd.f32 %v1626_v2, %v1625_v61 }
 0x5e6   :  { %v1595_v24 = vrot.slane %v1594_v11, 1  ;;  %v1617_v1 = vrot.slane %v1616_v12, 1 }
 0x5e7   :  { %v1608_v25 = vrot.slane %v1607_v10, 1  ;;  %v1628_v27 = vrot.slane %v1627_v23, 1 }
 0x5e8   :  { %v1596_v35 = vadd.f32 %v1595_v24, %v1594_v11  ;;  %v1618_v36 = vadd.f32 %v1617_v1, %v1616_v12 }
 0x5e9   :  { %v1609_v39 = vadd.f32 %v1608_v25, %v1607_v10  ;;  %v1629_v40 = vadd.f32 %v1628_v27, %v1627_v23 }
 0x5ea   :  { %v1630_v49 = vadd.f32 %v1618_v36, %v1596_v35 }
 0x5eb   :  { %v1631_v48 = vadd.f32 %v1629_v40, %v1609_v39 }
 0x5ed   :  { %5677 = vmatprep.mubr.msk.f32.mxu1 %vm1597_vm8, %v1631_v48 }
 0x5ee   :  { %1700 = vmatmul.mubr.f32.vlgmr.msra.gmra.mrb[10].mxu1 %v1630_v49 }
 0x5ef   :  { %6652 = vmatpush1.bf16.msra.mxu1 %v9029_v26  ;;  %1998 = vmatprep.mubr.f32.mxu1 %v7556_v3 }
 0x5f0   :  { %6654 = vmatprep.subr.bf16.mxu1 %v9031_v30 }
 0x5f3   :  { %6656 = vmatpush1.bf16.msra.mxu1 %v9040_v56 }
 0x5f4   :  { %6657 = vmatprep.subr.bf16.mxu1 %v7557_v8 }
 0x6c1   :  { %v1701_v44 = vpop.f32.mrb[10].mxu1 }
 0x6c2   :  { %v1705_v47 = vmul.f32 0.005, %v1701_v44  ;;  %v1703_v53 = vpop.f32.mrb[11].mxu1 }
 0x6c4   :  { %5678 = vmatmul.mubr.msk.f32.vlgmr.msra.gmra.mrb[16].mxu0 %vm1597_vm8, %v1705_v47 }
 0x6c5   :  { %6621 = vmatpush1.bf16.msra.mxu0 %v8908_v15 }
 0x6c6   :  { %6622 = vmatprep.subr.bf16.mxu0 %v7557_v8 }
 0x6c9   :  { %6624 = vmatpush1.bf16.msra.mxu0 %v8923_v20 }
 0x6ca   :  { %6625 = vmatprep.subr.bf16.mxu0 %v7557_v8 }
 0x6cd   :  { %6627 = vmatpush1.bf16.msra.mxu0 %v8936_v4 }
 0x6ce   :  { %6628 = vmatprep.subr.bf16.mxu0 %v7557_v8 }
 0x6d1   :  { %6630 = vmatpush1.bf16.msra.mxu0 %v8948_v29 }
 0x6d2   :  { %6631 = vmatprep.subr.bf16.mxu0 %v7557_v8 }
 0x6d5   :  { %6633 = vmatpush1.bf16.msra.mxu0 %v8958_v33 }
 0x6d6   :  { %6634 = vmatprep.subr.bf16.mxu0 %v7557_v8 }
 0x6d9   :  { %6636 = vmatpush1.bf16.msra.mxu0 %v8968_v37 }
 0x6da   :  { %6637 = vmatprep.subr.bf16.mxu0 %v7557_v8 }
 0x6dd   :  { %6639 = vmatpush1.bf16.msra.mxu0 %v8978_v42 }
 0x6de   :  { %6640 = vmatprep.subr.bf16.mxu0 %v7557_v8 }
 0x6e1   :  { %6642 = vmatpush1.bf16.msra.mxu0 %v8988_v46 }
 0x6e2   :  { %6643 = vmatprep.subr.bf16.mxu0 %v7557_v8 }
 0x6e5   :  { %6645 = vmatpush1.bf16.msra.mxu0 %v8998_v38 }
 0x6e6   :  { %6646 = vmatprep.subr.bf16.mxu0 %v7557_v8 }
 0x6e9   :  { %6648 = vmatpush1.bf16.msra.mxu0 %v9008_v50 }
 0x6ea   :  { %6687 = vmatprep.subr.bf16.mxu0 %v7557_v8 }
 0x797   :  { %v1775_v15 = vpop.f32.mrb[16].mxu0 }
 0x798   :  { %v1783_v20 = vrot.slane %v1775_v15, %v7905_v7  ;;  %v1777_v4 = vpop.f32.mrb[17].mxu0 }
 0x799   :  { %v1787_v29 = vrot.slane %v1777_v4, %v7905_v7 }
 0x79a   :  { %v9124_v33 = vsub.f32 %v9062_v18, %v1783_v20  ;;  %v9127_v37 = vsub.f32 %v9054_v13, %v1783_v20  ;;  %v9130_v42 = vsub.f32 %v9074_v31, %v1783_v20  ;;  %v9133_v46 = vsub.f32 %v9064_v19, %v1783_v20 }
 0x79b   :  { %v9136_v38 = vsub.f32 %v9056_v14, %v1783_v20  ;;  %v9139_v50 = vsub.f32 %v9076_v32, %v1783_v20  ;;  %v9142_v26 = vsub.f32 %v9050_v6, %v1787_v29  ;;  %v9145_v30 = vsub.f32 %v9058_v16, %v1787_v29 }
 0x79c   :  { %v9148_v56 = vsub.f32 %v9082_v43, %v1787_v29  ;;  %v9151_v13 = vsub.f32 %v9052_v9, %v1787_v29  ;;  %v9154_v18 = vsub.f32 %v9060_v17, %v1787_v29  ;;  %v9157_v14 = vsub.f32 %v9084_v45, %v1787_v29 }
 0x79d   :  { %v1801_v19 = vmul.f32 %v9142_v26, %v9142_v26  ;;  %v1803_v6 = vmul.f32 %v9145_v30, %v9145_v30  ;;  %v1800_v16 = vmul.f32 %v9124_v33, %v9124_v33  ;;  %v1802_v31 = vmul.f32 %v9127_v37, %v9127_v37 }
 0x79e   :  { %v1805_v9 = vmul.f32 %v9148_v56, %v9148_v56  ;;  %v1827_v17 = vmul.f32 %v9151_v13, %v9151_v13  ;;  %v1829_v32 = vmul.f32 %v9154_v18, %v9154_v18  ;;  %v1831_v43 = vmul.f32 %v9157_v14, %v9157_v14 }
 0x79f   :  { %v1815_v45 = vsel %vm1597_vm8, %v1801_v19, 0.0  ;;  %v1816_v51 = vsel %vm1597_vm8, %v1803_v6, 0.0  ;;  %v1804_v41 = vmul.f32 %v9130_v42, %v9130_v42  ;;  %v1806_v52 = vadd.f32 %v1802_v31, %v1800_v16 }
 0x7a0   :  { %v1817_v54 = vadd.f32 %v1816_v51, %v1815_v45  ;;  %v1818_v55 = vsel %vm1601_vm9, %v1805_v9, 0.0  ;;  %v1841_v22 = vsel %vm1597_vm8, %v1827_v17, 0.0  ;;  %v1842_v34 = vsel %vm1597_vm8, %v1829_v32, 0.0  ;;  %v2075_v45 = vld [vmem:[%s11671_s26 + $0x8] sm:$0xff] }
 0x7a1   :  { %v1843_v28 = vadd.f32 %v1842_v34, %v1841_v22  ;;  %v1844_v57 = vsel %vm1601_vm9, %v1831_v43, 0.0  ;;  %v1807_v58 = vsel %vm1311_vm7, %v1804_v41, 0.0  ;;  %v1826_v59 = vmul.f32 %v9133_v46, %v9133_v46  ;;  %v2074_v43 = vld [vmem:[%s11671_s26] sm:$0xff]  ;;  %v2076_v41 = vld [vmem:[%s11671_s26 + $0x10] sm:$0xff]  ;;  %v2079_v22 = vld [vmem:[%s11671_s26 + $0x28] sm:$0xff] }
 0x7a2   :  { %v1819_v60 = vadd.f32 %v1818_v55, %v1817_v54  ;;  %v1808_v61 = vadd.f32 %v1807_v58, %v1806_v52  ;;  %v1828_v62 = vmul.f32 %v9136_v38, %v9136_v38  ;;  %v1830_v63 = vmul.f32 %v9139_v50, %v9139_v50  ;;  %v2077_v52 = vld [vmem:[%s11671_s26 + $0x18] sm:$0xff]  ;;  %v2078_v55 = vld [vmem:[%s11671_s26 + $0x20] sm:$0xff] }
 0x7a3   :  { %v1845_v0 = vadd.f32 %v1844_v57, %v1843_v28  ;;  %v6688_v51 = vpack.c.bf16 %v2075_v45, %v2074_v43  ;;  %v6691_v54 = vpack.c.bf16 %v2077_v52, %v2076_v41  ;;  %v6694_v34 = vpack.c.bf16 %v2079_v22, %v2078_v55  ;;  %v2080_v28 = vld [vmem:[%s11671_s26 + $0x30] sm:$0xff]  ;;  %v2081_v57 = vld [vmem:[%s11671_s26 + $0x38] sm:$0xff]  ;;  %v5694_v43 = vld [vmem:[%s11671_s26 + $0x108] sm:$0xff] }
 0x7a4   :  { %v1820_v2 = vrot.slane %v1819_v60, 4  ;;  %v1809_v11 = vrot.slane %v1808_v61, 4  ;;  %v1832_v12 = vadd.f32 %v1828_v62, %v1826_v59  ;;  %v1833_v10 = vsel %vm1311_vm7, %v1830_v63, 0.0  ;;  %v2082_v59 = vld [vmem:[%s11671_s26 + $0x40] sm:$0xff]  ;;  %v2084_v62 = vld [vmem:[%s11671_s26 + $0x50] sm:$0xff]  ;;  %v2085_v63 = vld [vmem:[%s11671_s26 + $0x58] sm:$0xff] }
 0x7a5   :  { %v1846_v23 = vrot.slane %v1845_v0, 4  ;;  %v6697_v58 = vpack.c.bf16 %v2081_v57, %v2080_v28  ;;  %v2088_v45 = vld [vmem:[%s11671_s26 + $0x70] sm:$0xff]  ;;  %v2089_v41 = vld [vmem:[%s11671_s26 + $0x78] sm:$0xff]  ;;  %v2091_v28 = vld [vmem:[%s11671_s26 + $0x88] sm:$0xff] }
 0x7a6   :  { %v1821_v24 = vadd.f32 %v1820_v2, %v1819_v60  ;;  %v1810_v1 = vadd.f32 %v1809_v11, %v1808_v61  ;;  %v1834_v25 = vadd.f32 %v1833_v10, %v1832_v12  ;;  %v2083_v60 = vld [vmem:[%s11671_s26 + $0x48] sm:$0xff]  ;;  %v5695_v52 = vld [vmem:[%s11671_s26 + $0x110] sm:$0xff]  ;;  %v6709_v55 = vpack.c.bf16 %v2089_v41, %v2088_v45  ;;  %v5697_v57 = vld [vmem:[%s11671_s26 + $0x120] sm:$0xff] }
 0x7a7   :  { %v1847_v27 = vadd.f32 %v1846_v23, %v1845_v0  ;;  %v6700_v61 = vpack.c.bf16 %v2083_v60, %v2082_v59  ;;  %v6703_v0 = vpack.c.bf16 %v2085_v63, %v2084_v62  ;;  %v5681_v23 = vld [vmem:[%s11671_s26 + $0xa0] sm:$0xff]  ;;  %v2093_v62 = vld [vmem:[%s11671_s26 + $0x98] sm:$0xff]  ;;  %v5699_v63 = vld [vmem:[%s11671_s26 + $0x130] sm:$0xff] }
 0x7a8   :  { %v1822_v35 = vrot.slane %v1821_v24, 2  ;;  %v1811_v36 = vrot.slane %v1810_v1, 2  ;;  %v1835_v39 = vrot.slane %v1834_v25, 4 }
 0x7a9   :  { %v1848_v40 = vrot.slane %v1847_v27, 2 }
 0x7aa   :  { %v1823_v48 = vadd.f32 %v1822_v35, %v1821_v24  ;;  %v1812_v49 = vadd.f32 %v1811_v36, %v1810_v1  ;;  %v1836_v44 = vadd.f32 %v1835_v39, %v1834_v25  ;;  %v5682_v24 = vld [vmem:[%s11671_s26 + $0xa8] sm:$0xff]  ;;  %v1586_v1 = vld [vmem:[%s11605_s10] sm:$0x1]  ;;  %v5683_v36 = vld [vmem:[%s11671_s26 + $0xb0] sm:$0xff] }
 0x7ab   :  { %v1849_v47 = vadd.f32 %v1848_v40, %v1847_v27  ;;  %v6658_v27 = vpack.c.bf16 %v5682_v24, %v5681_v23  ;;  %v5684_v39 = vld [vmem:[%s11671_s26 + $0xb8] sm:$0xff] }
 0x7ac   :  { %v1824_v53 = vrot.slane %v1823_v48, 1  ;;  %v1813_v15 = vrot.slane %v1812_v49, 1  ;;  %v1837_v20 = vrot.slane %v1836_v44, 2  ;;  %v6661_v40 = vpack.c.bf16 %v5684_v39, %v5683_v36 }
 0x7ad   :  { %v1850_v4 = vrot.slane %v1849_v47, 1 }
 0x7ae   :  { %v1825_v29 = vadd.f32 %v1824_v53, %v1823_v48  ;;  %v1838_v19 = vadd.f32 %v1837_v20, %v1836_v44  ;;  %v1814_v16 = vadd.f32 %v1813_v15, %v1812_v49  ;;  %v5685_v48 = vld [vmem:[%s11671_s26 + $0xc0] sm:$0xff]  ;;  %v5686_v49 = vld [vmem:[%s11671_s26 + $0xc8] sm:$0xff]  ;;  %v5688_v53 = vld [vmem:[%s11671_s26 + $0xd8] sm:$0xff] }
 0x7af   :  { %v1851_v6 = vadd.f32 %v1850_v4, %v1849_v47  ;;  %v6664_v44 = vpack.c.bf16 %v5686_v49, %v5685_v48  ;;  %v5687_v47 = vld [vmem:[%s11671_s26 + $0xd0] sm:$0xff]  ;;  %v5689_v20 = vld [vmem:[%s11671_s26 + $0xe0] sm:$0xff]  ;;  %v5690_v4 = vld [vmem:[%s11671_s26 + $0xe8] sm:$0xff] }
 0x7b0   :  { %v1839_v31 = vrot.slane %v1838_v19, 1  ;;  %v6667_v15 = vpack.c.bf16 %v5688_v53, %v5687_v47 }
 0x7b1   :  { %v1853_v9 = vadd.f32 %v1851_v6, %v1825_v29  ;;  %v6670_v29 = vpack.c.bf16 %v5690_v4, %v5689_v20  ;;  %v5692_v6 = vld [vmem:[%s11671_s26 + $0xf8] sm:$0xff] }
 0x7b2   :  { %v1840_v17 = vadd.f32 %v1839_v31, %v1838_v19  ;;  %v5691_v19 = vld [vmem:[%s11671_s26 + $0xf0] sm:$0xff]  ;;  %v2086_v31 = vld [vmem:[%s11671_s26 + $0x60] sm:$0xff] }
 0x7b3   :  { %5679 = vmatprep.mubr.msk.f32.mxu0 %vm1597_vm8, %v1853_v9  ;;  %v2087_v9 = vld [vmem:[%s11671_s26 + $0x68] sm:$0xff] }
 0x7b4   :  { %v1852_v32 = vadd.f32 %v1840_v17, %v1814_v16  ;;  %v6673_v16 = vpack.c.bf16 %v5692_v6, %v5691_v19  ;;  %v6706_v17 = vpack.c.bf16 %v2087_v9, %v2086_v31  ;;  %v5724_v6 = vld [vmem:[%s11671_s26 + $0x1e0] sm:$0xff] }
 0x7b6   :  { %1922 = vmatmul.mubr.f32.vlgmr.msra.gmra.mrb[18].mxu0 %v1852_v32  ;;  %v5693_v32 = vld [vmem:[%s11671_s26 + $0x100] sm:$0xff] }
 0x7b7   :  { %6689 = vmatpush1.bf16.msra.mxu0 %v6688_v51  ;;  %v6676_v51 = vpack.c.bf16 %v5694_v43, %v5693_v32 }
 0x7b8   :  { %6690 = vmatprep.subr.bf16.mxu0 %v7557_v8 }
 0x7bb   :  { %6692 = vmatpush1.bf16.msra.mxu0 %v6691_v54  ;;  %v5696_v54 = vld [vmem:[%s11671_s26 + $0x118] sm:$0xff] }
 0x7bc   :  { %6693 = vmatprep.subr.bf16.mxu0 %v7557_v8  ;;  %v6679_v22 = vpack.c.bf16 %v5696_v54, %v5695_v52 }
 0x7bf   :  { %6695 = vmatpush1.bf16.msra.mxu0 %v6694_v34  ;;  %v2090_v34 = vld [vmem:[%s11671_s26 + $0x80] sm:$0xff] }
 0x7c0   :  { %6696 = vmatprep.subr.bf16.mxu0 %v7557_v8  ;;  %v6712_v59 = vpack.c.bf16 %v2091_v28, %v2090_v34 }
 0x7c3   :  { %6698 = vmatpush1.bf16.msra.mxu0 %v6697_v58  ;;  %v5698_v58 = vld [vmem:[%s11671_s26 + $0x128] sm:$0xff] }
 0x7c4   :  { %6699 = vmatprep.subr.bf16.mxu0 %v7557_v8  ;;  %v6682_v60 = vpack.c.bf16 %v5698_v58, %v5697_v57  ;;  %v5726_v57 = vld [vmem:[%s11671_s26 + $0x1f0] sm:$0xff]  ;;  %v5727_v58 = vld [vmem:[%s11671_s26 + $0x1f8] sm:$0xff] }
 0x7c7   :  { %6701 = vmatpush1.bf16.msra.mxu0 %v6700_v61  ;;  %v2092_v61 = vld [vmem:[%s11671_s26 + $0x90] sm:$0xff] }
 0x7c8   :  { %6702 = vmatprep.subr.bf16.mxu0 %v7557_v8 }
 0x7cb   :  { %6704 = vmatpush1.bf16.msra.mxu0 %v6703_v0  ;;  %v5700_v0 = vld [vmem:[%s11671_s26 + $0x138] sm:$0xff] }
 0x7cc   :  { %6705 = vmatprep.subr.bf16.mxu0 %v7557_v8 }
 0x7cf   :  { %6707 = vmatpush1.bf16.msra.mxu0 %v6706_v17 }
 0x7d0   :  { %6708 = vmatprep.subr.bf16.mxu0 %v7557_v8 }
 0x7d3   :  { %6710 = vmatpush1.bf16.msra.mxu0 %v6709_v55  ;;  %v5703_v55 = vld [vmem:[%s11671_s26 + $0x140] sm:$0xff] }
 0x7d4   :  { %6711 = vmatprep.subr.bf16.mxu0 %v7557_v8 }
 0x7d7   :  { %6713 = vmatpush1.bf16.msra.mxu0 %v6712_v59 }
 0x7d8   :  { %6714 = vmatprep.subr.bf16.mxu0 %v7557_v8 }
 0x889   :  { %v1923_v2 = vpop.f32.mrb[18].mxu0 }
 0x88a   :  { %v1927_v11 = vmul.f32 0.005, %v1923_v2  ;;  %v1925_v12 = vpop.f32.mrb[19].mxu0  ;;  %v6715_v2 = vpack.c.bf16 %v2093_v62, %v2092_v61 }
 0x88b   :  { %v1587_v12 = vld [vmem:[%s11606_s11] sm:$0x3] }
 0x88c   :  { %v1928_v10 = vadd.f32 1e-05, %v1927_v11  ;;  %v6685_v11 = vpack.c.bf16 %v5700_v0, %v5699_v63  ;;  %6716 = vmatpush1.bf16.msra.mxu0 %v6715_v2  ;;  %v5705_v0 = vld [vmem:[%s11671_s26 + $0x150] sm:$0xff]  ;;  %v5706_v2 = vld [vmem:[%s11671_s26 + $0x158] sm:$0xff] }
 0x88d   :  { %6747 = vmatprep.subr.bf16.mxu0 %v7557_v8 }
 0x88e   :  { %7536 = vrsqrt.f32 %v1928_v10 }
 0x898   :  { %v7537_v25 = vpop.eup %7536 }
 0x899   :  { %v1930_v35 = vmul.f32 %v7537_v25, %v1586_v1  ;;  %v9343_v1 = vrot.slane %v1587_v12, %v7905_v7 }
 0x89b   :  { %5680 = vmatmul.mubr.msk.f32.vlgmr.msra.gmra.mrb[12].mxu1 %vm1597_vm8, %v1930_v35 }
 0x89c   :  { %6659 = vmatpush1.bf16.msra.mxu1 %v6658_v27  ;;  %v9349_v27 = vrot.slane %v1587_v12, %v7900_v5  ;;  %v5728_v12 = vld [vmem:[%s11671_s26 + $0x200] sm:$0xff] }
 0x89d   :  { %6660 = vmatprep.subr.bf16.mxu1 %v7557_v8 }
 0x8a0   :  { %6662 = vmatpush1.bf16.msra.mxu1 %v6661_v40 }
 0x8a1   :  { %6663 = vmatprep.subr.bf16.mxu1 %v7557_v8 }
 0x8a4   :  { %6665 = vmatpush1.bf16.msra.mxu1 %v6664_v44 }
 0x8a5   :  { %6666 = vmatprep.subr.bf16.mxu1 %v7557_v8 }
 0x8a8   :  { %6668 = vmatpush1.bf16.msra.mxu1 %v6667_v15 }
 0x8a9   :  { %6669 = vmatprep.subr.bf16.mxu1 %v7557_v8 }
 0x8ac   :  { %6671 = vmatpush1.bf16.msra.mxu1 %v6670_v29 }
 0x8ad   :  { %6672 = vmatprep.subr.bf16.mxu1 %v7557_v8 }
 0x8b0   :  { %6674 = vmatpush1.bf16.msra.mxu1 %v6673_v16  ;;  %v5725_v16 = vld [vmem:[%s11671_s26 + $0x1e8] sm:$0xff] }
 0x8b1   :  { %6675 = vmatprep.subr.bf16.mxu1 %v7557_v8  ;;  %v6748_v54 = vpack.c.bf16 %v5725_v16, %v5724_v6  ;;  %v5713_v6 = vld [vmem:[%s11671_s26 + $0x190] sm:$0xff]  ;;  %v5714_v16 = vld [vmem:[%s11671_s26 + $0x198] sm:$0xff] }
 0x8b4   :  { %6677 = vmatpush1.bf16.msra.mxu1 %v6676_v51 }
 0x8b5   :  { %6678 = vmatprep.subr.bf16.mxu1 %v7557_v8 }
 0x8b8   :  { %6680 = vmatpush1.bf16.msra.mxu1 %v6679_v22 }
 0x8b9   :  { %6681 = vmatprep.subr.bf16.mxu1 %v7557_v8 }
 0x8bc   :  { %6683 = vmatpush1.bf16.msra.mxu1 %v6682_v60 }
 0x8bd   :  { %6684 = vmatprep.subr.bf16.mxu1 %v7557_v8 }
 0x8c0   :  { %6686 = vmatpush1.bf16.msra.mxu1 %v6685_v11  ;;  %v6751_v11 = vpack.c.bf16 %v5727_v58, %v5726_v57 }
 0x8c1   :  { %6717 = vmatprep.subr.bf16.mxu1 %v7557_v8 }
 0x96e   :  { %v2000_v10 = vpop.f32.mrb[12].mxu1 }
 0x96f   :  { %v9340_v23 = vrot.slane %v2000_v10, %v7905_v7  ;;  %v2002_v24 = vpop.f32.mrb[13].mxu1  ;;  %v5729_v10 = vld [vmem:[%s11671_s26 + $0x208] sm:$0xff] }
 0x970   :  { %v9346_v25 = vrot.slane %v2002_v24, %v7905_v7  ;;  %v6721_v24 = vpack.c.bf16 %v5706_v2, %v5705_v0  ;;  %v5742_v0 = vld [vmem:[%s11671_s26 + $0x270] sm:$0xff]  ;;  %v5743_v2 = vld [vmem:[%s11671_s26 + $0x278] sm:$0xff] }
 0x971   :  { %v2013_v35 = vmul.f32 %v9340_v23, %v9124_v33  ;;  %v2042_v36 = vmul.f32 %v9340_v23, %v9133_v46  ;;  %v2017_v9 = vmul.f32 %v9340_v23, %v9130_v42  ;;  %v2046_v17 = vmul.f32 %v9340_v23, %v9139_v50  ;;  %v5704_v42 = vld [vmem:[%s11671_s26 + $0x148] sm:$0xff] }
 0x972   :  { %v2014_v39 = vmul.f32 %v9346_v25, %v9142_v26  ;;  %v2043_v40 = vmul.f32 %v9346_v25, %v9151_v13  ;;  %v2016_v48 = vmul.f32 %v9346_v25, %v9145_v30  ;;  %v2045_v49 = vmul.f32 %v9346_v25, %v9154_v18 }
 0x973   :  { %v2030_v44 = vadd.f32 %v9343_v1, %v2013_v35  ;;  %v2048_v47 = vadd.f32 %v2042_v36, %v9343_v1  ;;  %v2034_v51 = vadd.f32 %v9343_v1, %v2017_v9  ;;  %v2052_v41 = vadd.f32 %v2046_v17, %v9343_v1  ;;  %v5707_v35 = vld [vmem:[%s11671_s26 + $0x160] sm:$0xff]  ;;  %v5708_v36 = vld [vmem:[%s11671_s26 + $0x168] sm:$0xff] }
 0x974   :  { %v2031_v33 = vadd.f32 %v9349_v27, %v2014_v39  ;;  %v2049_v46 = vadd.f32 %v2043_v40, %v9349_v27  ;;  %v2033_v53 = vadd.f32 %v9349_v27, %v2016_v48  ;;  %v2051_v26 = vadd.f32 %v2045_v49, %v9349_v27  ;;  %v5730_v40 = vld [vmem:[%s11671_s26 + $0x210] sm:$0xff]  ;;  %v5731_v48 = vld [vmem:[%s11671_s26 + $0x218] sm:$0xff] }
 0x975   :  { %v2036_v15 = vmax.f32 %v2030_v44, 0.0  ;;  %v2054_v13 = vmax.f32 %v2048_v47, 0.0  ;;  %v2040_v50 = vmax.f32 %v2034_v51, 0.0  ;;  %v2058_v28 = vmax.f32 %v2052_v41, 0.0  ;;  %v5709_v44 = vld [vmem:[%s11671_s26 + $0x170] sm:$0xff]  ;;  %v5710_v47 = vld [vmem:[%s11671_s26 + $0x178] sm:$0xff] }
 0x976   :  { %v2037_v20 = vmax.f32 %v2031_v33, 0.0  ;;  %v2055_v4 = vmax.f32 %v2049_v46, 0.0  ;;  %v2039_v30 = vmax.f32 %v2033_v53, 0.0  ;;  %v2057_v29 = vmax.f32 %v2051_v26, 0.0  ;;  %v5732_v46 = vld [vmem:[%s11671_s26 + $0x220] sm:$0xff]  ;;  %v5733_v53 = vld [vmem:[%s11671_s26 + $0x228] sm:$0xff] }
 0x977   :  { %v2060_v19 = vmax.f32 %v2036_v15, %v2054_v13  ;;  %v6718_v61 = vpack.c.bf16 %v5704_v42, %v5703_v55  ;;  %v9394_v62 = vmax.f32 %v2040_v50, %v2058_v28  ;;  %v6754_v39 = vpack.c.bf16 %v5729_v10, %v5728_v12  ;;  %v5711_v15 = vld [vmem:[%s11671_s26 + $0x180] sm:$0xff]  ;;  %v5712_v13 = vld [vmem:[%s11671_s26 + $0x188] sm:$0xff]  ;;  %v5738_v41 = vld [vmem:[%s11671_s26 + $0x250] sm:$0xff] }
 0x978   :  { %v2061_v18 = vmax.f32 %v2037_v20, %v2055_v4  ;;  %v2063_v31 = vmax.f32 %v2039_v30, %v2057_v29  ;;  %v6724_v49 = vpack.c.bf16 %v5708_v36, %v5707_v35  ;;  %v6757_v33 = vpack.c.bf16 %v5731_v48, %v5730_v40  ;;  %v5734_v4 = vld [vmem:[%s11671_s26 + $0x230] sm:$0xff]  ;;  %v5735_v30 = vld [vmem:[%s11671_s26 + $0x238] sm:$0xff]  ;;  %v5740_v50 = vld [vmem:[%s11671_s26 + $0x260] sm:$0xff] }
 0x979   :  { %v2068_v32 = vrot.slane %v2060_v19, 2  ;;  %v6727_v26 = vpack.c.bf16 %v5710_v47, %v5709_v44  ;;  %v6760_v20 = vpack.c.bf16 %v5733_v53, %v5732_v46  ;;  %v2015_v29 = vmul.f32 %v9340_v23, %v9127_v37  ;;  %v5736_v37 = vld [vmem:[%s11671_s26 + $0x240] sm:$0xff]  ;;  %v5741_v28 = vld [vmem:[%s11671_s26 + $0x268] sm:$0xff]  ;;  %v5721_v35 = vld [vmem:[%s11671_s26 + $0x1d0] sm:$0xff] }
 0x97a   :  { %v2069_v43 = vrot.slane %v2061_v18, 2  ;;  %v2267_v45 = vrot.slane %v2063_v31, 2  ;;  %v6733_v17 = vpack.c.bf16 %v5714_v16, %v5713_v6  ;;  %v2018_v51 = vmul.f32 %v9346_v25, %v9148_v56  ;;  %v5717_v56 = vld [vmem:[%s11671_s26 + $0x1b0] sm:$0xff]  ;;  %v2572_v10 = vld [vmem:[%s11657_s12 + $0x8] sm:$0xff]  ;;  %v5722_v36 = vld [vmem:[%s11671_s26 + $0x1d8] sm:$0xff] }
 0x97b   :  { %v2072_v52 = vmax.f32 %v2060_v19, %v2068_v32  ;;  %v2044_v19 = vmul.f32 %v9340_v23, %v9136_v38  ;;  %v5737_v38 = vld [vmem:[%s11671_s26 + $0x248] sm:$0xff]  ;;  %v2032_v23 = vadd.f32 %v9343_v1, %v2015_v29  ;;  %v5715_v32 = vld [vmem:[%s11671_s26 + $0x1a0] sm:$0xff]  ;;  %v2573_v47 = vld [vmem:[%s11657_s12 + $0x10] sm:$0xff] }
 0x97c   :  { %v2073_v22 = vmax.f32 %v2061_v18, %v2069_v43  ;;  %v2271_v34 = vmax.f32 %v2063_v31, %v2267_v45  ;;  %v6730_v18 = vpack.c.bf16 %v5712_v13, %v5711_v15  ;;  %v6763_v31 = vpack.c.bf16 %v5735_v30, %v5734_v4  ;;  %v5716_v43 = vld [vmem:[%s11671_s26 + $0x1a8] sm:$0xff]  ;;  %v2571_v44 = vld [vmem:[%s11657_s12] sm:$0xff]  ;;  %v2578_v53 = vld [vmem:[%s11657_s12 + $0x38] sm:$0xff] }
 0x97d   :  { %v2117_v63 = vrot.slane %v2072_v52, 4  ;;  %v2050_v9 = vadd.f32 %v2044_v19, %v9343_v1  ;;  %v6766_v45 = vpack.c.bf16 %v5737_v38, %v5736_v37  ;;  %v2047_v1 = vmul.f32 %v9346_v25, %v9157_v14  ;;  %v5718_v14 = vld [vmem:[%s11671_s26 + $0x1b8] sm:$0xff]  ;;  %v2576_v46 = vld [vmem:[%s11657_s12 + $0x28] sm:$0xff]  ;;  %v2575_v29 = vld [vmem:[%s11657_s12 + $0x20] sm:$0xff] }
 0x97e   :  { %5702 = vmatprep.mubr.msk.f32.mxu0 %vm1597_vm8, %v2073_v22  ;;  %v2118_v59 = vrot.slane %v2073_v22, 4  ;;  %v2390_v60 = vrot.slane %v2271_v34, 4  ;;  %v6736_v42 = vpack.c.bf16 %v5716_v43, %v5715_v32  ;;  %v2035_v22 = vadd.f32 %v9349_v27, %v2018_v51  ;;  %v5746_v15 = vld [vmem:[%s11671_s26 + $0x288] sm:$0xff]  ;;  %v2577_v19 = vld [vmem:[%s11657_s12 + $0x30] sm:$0xff]  ;;  %v2582_v16 = vld [vmem:[%s11657_s12 + $0x58] sm:$0x3] }
 0x97f   :  { %2259 = vmatmul.mubr.f32.vlgmr.msra.gmra.mrb[20].mxu0 %v2072_v52  ;;  %v5739_v52 = vld [vmem:[%s11671_s26 + $0x258] sm:$0xff]  ;;  %v2056_v55 = vmax.f32 %v2050_v9, 0.0  ;;  %v6739_v58 = vpack.c.bf16 %v5718_v14, %v5717_v56  ;;  %v6809_v13 = vpack.c.bf16 %v2573_v47, %v2571_v44  ;;  %v6811_v30 = vpack.c.bf16 %v2578_v53, %v2576_v46  ;;  %v2580_v6 = vld [vmem:[%s11657_s12 + $0x48] sm:$0xff]  ;;  %v2581_v32 = vld [vmem:[%s11657_s12 + $0x50] sm:$0x3] }
 0x980   :  { %6749 = vmatpush1.bf16.msra.mxu0 %v6748_v54  ;;  %5701 = vmatprep.mubr.msk.f32.mxu1 %vm1597_vm8, %v2118_v59  ;;  %v2038_v54 = vmax.f32 %v2032_v23, 0.0  ;;  %v6769_v25 = vpack.c.bf16 %v5739_v52, %v5738_v41  ;;  %v5719_v59 = vld [vmem:[%s11671_s26 + $0x1c0] sm:$0xff]  ;;  %v5748_v37 = vld [vmem:[%s11671_s26 + $0x298] sm:$0xff]  ;;  %v6813_v23 = vpack.c.bf16 %v2577_v19, %v2575_v29  ;;  %v6815_v9 = vpack.c.bf16 %v2582_v16, %v2580_v6  ;;  %v5750_v51 = vld [vmem:[%s11671_s26 + $0x2a8] sm:$0xff] }
 0x981   :  { %5744 = vmatprep.mubr.msk.f32.mxu0 %vm1597_vm8, %v2390_v60  ;;  %2187 = vmatmul.mubr.f32.vlgmr.msra.gmra.mrb[14].mxu1 %v2117_v63  ;;  %v6772_v60 = vpack.c.bf16 %v5741_v28, %v5740_v50  ;;  %v5751_v52 = vld [vmem:[%s11671_s26 + $0x2b0] sm:$0xff]  ;;  %v5753_v56 = vld [vmem:[%s11671_s26 + $0x2c0] sm:$0xff]  ;;  %v2570_v50 = vld [vmem:[%s11661_s14 + $0x28] sm:$0xff] }
 0x982   :  { %6719 = vmatpush1.bf16.msra.mxu1 %v6718_v61  ;;  %5723 = vmatprep.mubr.msk.f32.mxu1 %vm1597_vm8, %v2271_v34  ;;  %v2053_v34 = vadd.f32 %v2047_v1, %v9349_v27  ;;  %v2062_v57 = vmax.f32 %v2038_v54, %v2056_v55  ;;  %v5720_v27 = vld [vmem:[%s11671_s26 + $0x1c8] sm:$0xff]  ;;  %v2041_v61 = vmax.f32 %v2035_v22, 0.0  ;;  %v5752_v54 = vld [vmem:[%s11671_s26 + $0x2b8] sm:$0xff]  ;;  %v2569_v14 = vld [vmem:[%s11661_s14 + $0x20] sm:$0xff] }
 0x983   :  { %6750 = vmatprep.subr.bf16.mxu0 %v7557_v8  ;;  %6720 = vmatprep.subr.bf16.mxu1 %v7557_v8  ;;  %v6742_v12 = vpack.c.bf16 %v5720_v27, %v5719_v59  ;;  %v2568_v55 = vld [vmem:[%s11661_s14 + $0x18] sm:$0xff]  ;;  %v5755_v22 = vld [vmem:[%s11671_s26 + $0x2d0] sm:$0xff]  ;;  %v2697_v44 = vld [vmem:[%s11658_s4 + $0x20] sm:$0xff] }
 0x984   :  { %6752 = vmatpush1.bf16.msra.mxu0 %v6751_v11  ;;  %v2059_v63 = vmax.f32 %v2053_v34, 0.0  ;;  %v2266_v11 = vrot.slane %v2062_v57, 2  ;;  %v5756_v34 = vld [vmem:[%s11671_s26 + $0x2d8] sm:$0xff]  ;;  %v5759_v27 = vld [vmem:[%s11671_s26 + $0x2f0] sm:$0xff]  ;;  %v2698_v47 = vld [vmem:[%s11658_s4 + $0x28] sm:$0xff] }
 0x985   :  { %6753 = vmatprep.subr.bf16.mxu0 %v7557_v8  ;;  %v6793_v28 = vpack.c.bf16 %v5756_v34, %v5755_v22  ;;  %v2699_v46 = vld [vmem:[%s11658_s4 + $0x30] sm:$0xff]  ;;  %v2700_v53 = vld [vmem:[%s11658_s4 + $0x38] sm:$0xff]  ;;  %v2705_v19 = vld [vmem:[%s11658_s4 + $0x60] sm:$0xff] }
 0x986   :  { %6722 = vmatpush1.bf16.msra.mxu1 %v6721_v24  ;;  %v2574_v24 = vld [vmem:[%s11657_s12 + $0x18] sm:$0xff]  ;;  %v2065_v40 = vmax.f32 %v2041_v61, %v2059_v63  ;;  %v2270_v48 = vmax.f32 %v2062_v57, %v2266_v11  ;;  %v5757_v57 = vld [vmem:[%s11671_s26 + $0x2e0] sm:$0xff]  ;;  %v5763_v11 = vld [vmem:[%s11671_s26 + $0x310] sm:$0xff] }
 0x987   :  { %6723 = vmatprep.subr.bf16.mxu1 %v7557_v8  ;;  %v5761_v63 = vld [vmem:[%s11671_s26 + $0x300] sm:$0xff]  ;;  %v2707_v16 = vld [vmem:[%s11658_s4 + $0x70] sm:$0xff] }
 0x988   :  { %6755 = vmatpush1.bf16.msra.mxu0 %v6754_v39  ;;  %v6775_v39 = vpack.c.bf16 %v5743_v2, %v5742_v0  ;;  %v2389_v4 = vrot.slane %v2270_v48, 4  ;;  %v5762_v0 = vld [vmem:[%s11671_s26 + $0x308] sm:$0xff] }
 0x989   :  { %6756 = vmatprep.subr.bf16.mxu0 %v7557_v8  ;;  %v6802_v2 = vpack.c.bf16 %v5762_v0, %v5761_v63  ;;  %v2583_v0 = vld [vmem:[%s11663_s30] sm:$0x3]  ;;  %s11680_s30 = sld [smem:[#allocation24_spill]] }
 0x98a   :  { %6725 = vmatpush1.bf16.msra.mxu1 %v6724_v49  ;;  %v6807_v49 = vpack.c.bf16 %v2574_v24, %v2572_v10  ;;  %v2467_v24 = vrot.slane %v9394_v62, 2 }
 0x98b   :  { %6726 = vmatprep.subr.bf16.mxu1 %v7557_v8 }
 0x98c   :  { %6758 = vmatpush1.bf16.msra.mxu0 %v6757_v33  ;;  %v6745_v33 = vpack.c.bf16 %v5722_v36, %v5721_v35  ;;  %v2471_v35 = vmax.f32 %v9394_v62, %v2467_v24  ;;  %v2693_v36 = vld [vmem:[%s11658_s4] sm:$0xff]  ;;  %v2696_v62 = vld [vmem:[%s11658_s4 + $0x18] sm:$0xff] }
 0x98d   :  { %6759 = vmatprep.subr.bf16.mxu0 %v7557_v8 }
 0x98e   :  { %6728 = vmatpush1.bf16.msra.mxu1 %v6727_v26  ;;  %v5745_v26 = vld [vmem:[%s11671_s26 + $0x280] sm:$0xff] }
 0x98f   :  { %6729 = vmatprep.subr.bf16.mxu1 %v7557_v8 }
 0x990   :  { %6761 = vmatpush1.bf16.msra.mxu0 %v6760_v20  ;;  %v2468_v20 = vrot.slane %v2065_v40, 2 }
 0x991   :  { %6762 = vmatprep.subr.bf16.mxu0 %v7557_v8 }
 0x992   :  { %6731 = vmatpush1.bf16.msra.mxu1 %v6730_v18  ;;  %v6778_v18 = vpack.c.bf16 %v5746_v15, %v5745_v26  ;;  %v2472_v38 = vmax.f32 %v2065_v40, %v2468_v20  ;;  %v2695_v40 = vld [vmem:[%s11658_s4 + $0x10] sm:$0xff]  ;;  %v9696_v26 = vpack.c.bf16 %v2700_v53, %v2699_v46  ;;  %v2701_v15 = vld [vmem:[%s11658_s4 + $0x40] sm:$0xff] }
 0x993   :  { %6732 = vmatprep.subr.bf16.mxu1 %v7557_v8 }
 0x994   :  { %6764 = vmatpush1.bf16.msra.mxu0 %v6763_v31  ;;  %v5747_v31 = vld [vmem:[%s11671_s26 + $0x290] sm:$0xff] }
 0x995   :  { %6765 = vmatprep.subr.bf16.mxu0 %v7557_v8  ;;  %v6781_v43 = vpack.c.bf16 %v5748_v37, %v5747_v31  ;;  %v2708_v31 = vld [vmem:[%s11658_s4 + $0x78] sm:$0xff] }
 0x996   :  { %6734 = vmatpush1.bf16.msra.mxu1 %v6733_v17  ;;  %v2579_v17 = vld [vmem:[%s11657_s12 + $0x40] sm:$0xff]  ;;  %v9737_v37 = vpack.c.bf16 %v2708_v31, %v2707_v16 }
 0x997   :  { %6735 = vmatprep.subr.bf16.mxu1 %v7557_v8  ;;  %v6818_v1 = vpack.c.bf16 %v2581_v32, %v2579_v17  ;;  %v2711_v17 = vld [vmem:[%s11658_s4 + $0x90] sm:$0xff]  ;;  %v2712_v32 = vld [vmem:[%s11658_s4 + $0x98] sm:$0xff] }
 0x998   :  { %6767 = vmatpush1.bf16.msra.mxu0 %v6766_v45  ;;  %v5749_v45 = vld [vmem:[%s11671_s26 + $0x2a0] sm:$0xff] }
 0x999   :  { %6768 = vmatprep.subr.bf16.mxu0 %v7557_v8  ;;  %v6784_v41 = vpack.c.bf16 %v5750_v51, %v5749_v45  ;;  %v2713_v45 = vld [vmem:[%s11658_s4 + $0xa0] sm:$0xff]  ;;  %v2714_v51 = vld [vmem:[%s11658_s4 + $0xa8] sm:$0xff] }
 0x99a   :  { %6737 = vmatpush1.bf16.msra.mxu1 %v6736_v42  ;;  %v6787_v42 = vpack.c.bf16 %v5752_v54, %v5751_v52  ;;  %v2716_v52 = vld [vmem:[%s11658_s4 + $0xb8] sm:$0xff] }
 0x99b   :  { %6738 = vmatprep.subr.bf16.mxu1 %v7557_v8 }
 0x99c   :  { %6770 = vmatpush1.bf16.msra.mxu0 %v6769_v25  ;;  %v6790_v25 = vpack.c.bf16 %v5754_v21, %v5753_v56  ;;  %v2717_v56 = vld [vmem:[%s11662_s13] sm:$0xff] }
 0x99d   :  { %6771 = vmatprep.subr.bf16.mxu0 %v7557_v8 }
 0x99e   :  { %6740 = vmatpush1.bf16.msra.mxu1 %v6739_v58  ;;  %v5758_v58 = vld [vmem:[%s11671_s26 + $0x2e8] sm:$0xff] }
 0x99f   :  { %6741 = vmatprep.subr.bf16.mxu1 %v7557_v8  ;;  %v6796_v59 = vpack.c.bf16 %v5758_v58, %v5757_v57 }
 0x9a0   :  { %6773 = vmatpush1.bf16.msra.mxu0 %v6772_v60  ;;  %v5760_v60 = vld [vmem:[%s11671_s26 + $0x2f8] sm:$0xff] }
 0x9a1   :  { %6774 = vmatprep.subr.bf16.mxu0 %v7557_v8  ;;  %v6799_v61 = vpack.c.bf16 %v5760_v60, %v5759_v27 }
 0x9a2   :  { %6743 = vmatpush1.bf16.msra.mxu1 %v6742_v12  ;;  %v5764_v12 = vld [vmem:[%s11671_s26 + $0x318] sm:$0xff] }
 0x9a3   :  { %6744 = vmatprep.subr.bf16.mxu1 %v7557_v8  ;;  %v6805_v10 = vpack.c.bf16 %v5764_v12, %v5763_v11  ;;  %v2592_v12 = vrot.slane %v2583_v0, %v7900_v5 }
 0x9a4   :  { %6776 = vmatpush1.bf16.msra.mxu0 %v6775_v39  ;;  %v2694_v39 = vld [vmem:[%s11658_s4 + $0x8] sm:$0xff] }
 0x9a5   :  { %6808 = vmatprep.subr.bf16.mxu0 %v6807_v49  ;;  %v9676_v49 = vpack.c.bf16 %v2696_v62, %v2695_v40 }
 0x9a6   :  { %6746 = vmatpush1.bf16.msra.mxu1 %v6745_v33  ;;  %v9687_v33 = vpack.c.bf16 %v2698_v47, %v2697_v44 }
 0x9a7   :  { %2459 = vmatmul.mubr.f32.vlgmr.msra.gmra.mrb[22].mxu0 %v2389_v4  ;;  %6777 = vmatprep.subr.bf16.mxu1 %v7557_v8  ;;  %v2703_v4 = vld [vmem:[%s11658_s4 + $0x50] sm:$0xff] }
 0x9a8   :  { %6810 = vmatpush1.bf16.msra.mxu0 %v6809_v13  ;;  %2674 = vmatprep.mubr.f32.mxu0 %v7556_v3  ;;  %v2702_v13 = vld [vmem:[%s11658_s4 + $0x48] sm:$0xff] }
 0x9a9   :  { %2361 = vmatmul.mubr.f32.vlgmr.msra.gmra.mrb[16].mxu1 %v2270_v48  ;;  %6812 = vmatprep.subr.bf16.mxu0 %v6811_v30  ;;  %v9670_v48 = vpack.c.bf16 %v2694_v39, %v2693_v36  ;;  %v9706_v20 = vpack.c.bf16 %v2702_v13, %v2701_v15  ;;  %v2704_v30 = vld [vmem:[%s11658_s4 + $0x58] sm:$0xff] }
 0x9aa   :  { %6779 = vmatpush1.bf16.msra.mxu1 %v6778_v18  ;;  %5765 = vmatprep.mubr.msk.f32.mxu1 %vm1597_vm8, %v2472_v38  ;;  %v9717_v29 = vpack.c.bf16 %v2704_v30, %v2703_v4  ;;  %v2706_v18 = vld [vmem:[%s11658_s4 + $0x68] sm:$0xff]  ;;  %v2709_v38 = vld [vmem:[%s11658_s4 + $0x80] sm:$0xff] }
 0x9ab   :  { %6780 = vmatprep.subr.bf16.mxu1 %v7557_v8  ;;  %v9727_v6 = vpack.c.bf16 %v2706_v18, %v2705_v19 }
 0x9ac   :  { %6814 = vmatpush1.bf16.msra.mxu0 %v6813_v23  ;;  %v2710_v23 = vld [vmem:[%s11658_s4 + $0x88] sm:$0xff] }
 0x9ad   :  { %6817 = vmatprep.subr.msk.bf16.mxu0 %vm7751_vm2, %v6815_v9  ;;  %v9747_v9 = vpack.c.bf16 %v2710_v23, %v2709_v38 }
 0x9ae   :  { %6782 = vmatpush1.bf16.msra.mxu1 %v6781_v43  ;;  %v9757_v43 = vpack.c.bf16 %v2712_v32, %v2711_v17 }
 0x9af   :  { %6783 = vmatprep.subr.bf16.mxu1 %v7557_v8 }
 0x9b0   :  { %6820 = vmatpush1.bf16.msk.msra.mxu0 %vm7751_vm2, %v6818_v1  ;;  %v9767_v1 = vpack.c.bf16 %v2714_v51, %v2713_v45 }
 0x9b1   :  { %6821 = vmatprep.subr.bf16.mxu0 %v7557_v8 }
 0x9b2   :  { %6785 = vmatpush1.bf16.msra.mxu1 %v6784_v41  ;;  %v2715_v41 = vld [vmem:[%s11658_s4 + $0xb0] sm:$0xff] }
 0x9b3   :  { %5768 = vmatmul.mubr.msk.f32.vlgmr.msra.gmra.mrb[24].mxu0 %vm116_vm3, %v2568_v55  ;;  %6786 = vmatprep.subr.bf16.mxu1 %v7557_v8  ;;  %v9776_v54 = vpack.c.bf16 %v2716_v52, %v2715_v41  ;;  %v2718_v55 = vld [vmem:[%s11662_s13 + $0x8] sm:$0xff] }
 0x9b4   :  { %2680 = vmatprep.mubr.f32.mxu0 %v7556_v3  ;;  %6823 = vmatpush1.bf16.msra.mxu0 %v9670_v48 }
 0x9b5   :  { %6824 = vmatprep.subr.bf16.mxu0 %v7557_v8 }
 0x9b6   :  { %6788 = vmatpush1.bf16.msra.mxu1 %v6787_v42  ;;  %v2720_v42 = vld [vmem:[%s11662_s13 + $0x18] sm:$0xff] }
 0x9b7   :  { %5769 = vmatmul.mubr.msk.f32.gmra.mrb[26].mxu0 %vm116_vm3, %v2569_v14  ;;  %6789 = vmatprep.subr.bf16.mxu1 %v7557_v8  ;;  %v6857_v21 = vpack.c.bf16 %v2720_v42, %v2718_v55  ;;  %v2719_v14 = vld [vmem:[%s11662_s13 + $0x10] sm:$0xff] }
 0x9b8   :  { %2686 = vmatprep.mubr.f32.mxu0 %v7556_v3  ;;  %6826 = vmatpush1.bf16.msra.mxu0 %v9676_v49 }
 0x9b9   :  { %6827 = vmatprep.subr.bf16.mxu0 %v7557_v8 }
 0x9ba   :  { %6791 = vmatpush1.bf16.msra.mxu1 %v6790_v25  ;;  %v6859_v25 = vpack.c.bf16 %v2719_v14, %v2717_v56 }
 0x9bb   :  { %5770 = vmatmul.mubr.msk.f32.gmra.mrb[28].mxu0 %vm116_vm3, %v2570_v50  ;;  %6792 = vmatprep.subr.bf16.mxu1 %v7557_v8 }
 0x9bc   :  { %6829 = vmatpush1.bf16.msra.mxu0 %v9687_v33 }
 0x9bd   :  { %6830 = vmatprep.subr.bf16.mxu0 %v7557_v8 }
 0x9be   :  { %6794 = vmatpush1.bf16.msra.mxu1 %v6793_v28 }
 0x9bf   :  { %6795 = vmatprep.subr.bf16.mxu1 %v7557_v8 }
 0x9c0   :  { %6832 = vmatpush1.bf16.msra.mxu0 %v9696_v26 }
 0x9c1   :  { %6833 = vmatprep.subr.bf16.mxu0 %v7557_v8 }
 0x9c2   :  { %6797 = vmatpush1.bf16.msra.mxu1 %v6796_v59 }
 0x9c3   :  { %6798 = vmatprep.subr.bf16.mxu1 %v7557_v8 }
 0x9c4   :  { %6835 = vmatpush1.bf16.msra.mxu0 %v9706_v20 }
 0x9c5   :  { %6836 = vmatprep.subr.bf16.mxu0 %v7557_v8 }
 0x9c6   :  { %6800 = vmatpush1.bf16.msra.mxu1 %v6799_v61 }
 0x9c7   :  { %6801 = vmatprep.subr.bf16.mxu1 %v7557_v8 }
 0x9c8   :  { %6838 = vmatpush1.bf16.msra.mxu0 %v9717_v29 }
 0x9c9   :  { %6839 = vmatprep.subr.bf16.mxu0 %v7557_v8 }
 0x9ca   :  { %6803 = vmatpush1.bf16.msra.mxu1 %v6802_v2 }
 0x9cb   :  { %6804 = vmatprep.subr.bf16.mxu1 %v7557_v8 }
 0x9cc   :  { %6841 = vmatpush1.bf16.msra.mxu0 %v9727_v6 }
 0x9cd   :  { %6842 = vmatprep.subr.bf16.mxu0 %v7557_v8 }
 0x9ce   :  { %6806 = vmatpush1.bf16.msra.mxu1 %v6805_v10  ;;  %v2588_v10 = vrot.slane %v2583_v0, %v7905_v7 }
 0x9cf   :  { %6858 = vmatprep.subr.bf16.mxu1 %v6857_v21 }
 0x9d0   :  { %6844 = vmatpush1.bf16.msra.mxu0 %v9737_v37 }
 0x9d1   :  { %2562 = vmatmul.mubr.f32.vlgmr.msra.gmra.mrb[18].mxu1 %v2471_v35  ;;  %6845 = vmatprep.subr.bf16.mxu0 %v7557_v8 }
 0x9d2   :  { %2883 = vmatprep.mubr.f32.mxu1 %v7556_v3  ;;  %6860 = vmatpush1.bf16.msra.mxu1 %v6859_v25 }
 0x9d3   :  { %6861 = vmatprep.subr.bf16.mxu1 %v7557_v8 }
 0x9d4   :  { %6847 = vmatpush1.bf16.msra.mxu0 %v9747_v9 }
 0x9d5   :  { %6848 = vmatprep.subr.bf16.mxu0 %v7557_v8 }
 0x9d8   :  { %6850 = vmatpush1.bf16.msra.mxu0 %v9757_v43 }
 0x9d9   :  { %6851 = vmatprep.subr.bf16.mxu0 %v7557_v8 }
 0x9dc   :  { %6853 = vmatpush1.bf16.msra.mxu0 %v9767_v1 }
 0x9dd   :  { %6854 = vmatprep.subr.bf16.mxu0 %v7557_v8 }
 0x9e0   :  { %6856 = vmatpush1.bf16.msra.mxu0 %v9776_v54 }
 0x9e1   :  { %6898 = vmatprep.subr.bf16.mxu0 %v6857_v21 }
 0xa52   :  { %v2260_v22 = vpop.f32.mrb[20].mxu0 }
 0xa53   :  { %v2262_v34 = vpop.f32.mrb[21].mxu0 }
 0xa54   :  { %v2188_v50 = vpop.f32.mrb[14].mxu1 }
 0xa55   :  { %v2261_v28 = vadd.f32 %v2260_v22, %v2188_v50  ;;  %v2190_v57 = vpop.f32.mrb[15].mxu1 }
 0xa7a   :  { %v2460_v58 = vpop.f32.mrb[22].mxu0 }
 0xa7b   :  { %v2462_v59 = vpop.f32.mrb[23].mxu0 }
 0xa7c   :  { %v2362_v27 = vpop.f32.mrb[16].mxu1 }
 0xa7d   :  { %v2366_v60 = vadd.f32 %v2362_v27, %v2261_v28  ;;  %v2364_v61 = vpop.f32.mrb[17].mxu1 }
 0xa7f   :  { %v2464_v63 = vadd.f32 %v2460_v58, %v2366_v60 }
 0xa86   :  { %v2676_v2 = vpop.f32.mrb[24].mxu0 }
 0xa87   :  { %v2678_v11 = vpop.f32.mrb[25].mxu0  ;;  %v2677_v62 = vadd.f32 %v2676_v2, %v2588_v10 }
 0xa88   :  { %v9800_v39 = vadd.f32 %v2678_v11, %v2592_v12 }
 0xa8a   :  { %v2682_v24 = vpop.f32.mrb[26].mxu0  ;;  %v2731_v13 = vsel %vm254_vm4, %v9800_v39, 0.0 }
 0xa8b   :  { %v9798_v35 = vadd.f32 %v2682_v24, %v2588_v10  ;;  %v2684_v36 = vpop.f32.mrb[27].mxu0 }
 0xa8c   :  { %v9802_v40 = vadd.f32 %v2684_v36, %v2592_v12 }
 0xa8d   :  { %v2723_v46 = vadd.f32 %v9798_v35, %v2677_v62 }
 0xa8e   :  { %v2732_v44 = vsel %vm254_vm4, %v9802_v40, 0.0  ;;  %v2688_v47 = vpop.f32.mrb[28].mxu0 }
 0xa8f   :  { %v2689_v53 = vadd.f32 %v2688_v47, %v2588_v10  ;;  %v2690_v15 = vpop.f32.mrb[29].mxu0  ;;  %v2733_v30 = vadd.f32 %v2732_v44, %v2731_v13  ;;  %v3133_v13 = vld [vmem:[%s11664_s0 + $0x18] sm:$0xff] }
 0xa90   :  { %v2691_v4 = vadd.f32 %v2690_v15, %v2592_v12  ;;  %v3131_v15 = vld [vmem:[%s11664_s0 + $0x8] sm:$0xff] }
 0xa91   :  { %v2724_v19 = vadd.f32 %v2723_v46, %v2689_v53 }
 0xa92   :  { %v2734_v18 = vsel %vm254_vm4, %v2691_v4, 0.0 }
 0xa93   :  { %v2725_v16 = vrot.slane %v2724_v19, 4  ;;  %v2735_v31 = vadd.f32 %v2734_v18, %v2733_v30  ;;  %v6901_v30 = vpack.c.bf16 %v3133_v13, %v3131_v15 }
 0xa95   :  { %v2726_v38 = vadd.f32 %v2725_v16, %v2724_v19  ;;  %v2736_v23 = vrot.slane %v2735_v31, 4  ;;  %v3290_v19 = vld [vmem:[%s11665_s2 + $0x18] sm:$0xff]  ;;  %v3287_v16 = vld [vmem:[%s11665_s2] sm:$0xff] }
 0xa97   :  { %v2727_v17 = vrot.slane %v2726_v38, 2  ;;  %v2737_v32 = vadd.f32 %v2736_v23, %v2735_v31  ;;  %v3289_v31 = vld [vmem:[%s11665_s2 + $0x10] sm:$0xff]  ;;  %v3292_v23 = vld [vmem:[%s11665_s2 + $0x28] sm:$0xff] }
 0xa99   :  { %v2728_v45 = vadd.f32 %v2727_v17, %v2726_v38  ;;  %v2738_v51 = vrot.slane %v2737_v32, 2  ;;  %v6951_v38 = vpack.c.bf16 %v3289_v31, %v3287_v16  ;;  %v3294_v17 = vld [vmem:[%s11665_s2 + $0x38] sm:$0xff] }
 0xa9a   :  { %v3137_v16 = vld [vmem:[%s11664_s0 + $0x38] sm:$0xff] }
 0xa9b   :  { %v2739_v41 = vadd.f32 %v2738_v51, %v2737_v32  ;;  %v2729_v52 = vrot.slane %v2728_v45, 1  ;;  %v6953_v32 = vpack.c.bf16 %v3294_v17, %v3292_v23  ;;  %v3293_v51 = vld [vmem:[%s11665_s2 + $0x30] sm:$0xff] }
 0xa9d   :  { %v2740_v55 = vrot.slane %v2739_v41, 1  ;;  %v2730_v56 = vadd.f32 %v2729_v52, %v2728_v45  ;;  %v3291_v45 = vld [vmem:[%s11665_s2 + $0x20] sm:$0xff]  ;;  %v3296_v52 = vld [vmem:[%s11665_s2 + $0x48] sm:$0xff] }
 0xa9f   :  { %v2741_v42 = vadd.f32 %v2740_v55, %v2739_v41  ;;  %v6955_v41 = vpack.c.bf16 %v3293_v51, %v3291_v45  ;;  %v3298_v55 = vld [vmem:[%s11665_s2 + $0x58] sm:$0xff]  ;;  %v3136_v45 = vld [vmem:[%s11664_s0 + $0x30] sm:$0xff]  ;;  %v3139_v51 = vld [vmem:[%s11664_s0 + $0x48] sm:$0xff] }
 0xaa1   :  { %5771 = vmatprep.mubr.msk.f32.mxu0 %vm254_vm4, %v2741_v42  ;;  %v6957_v42 = vpack.c.bf16 %v3298_v55, %v3296_v52 }
 0xaa2   :  { %2810 = vmatmul.mubr.f32.vlgmr.msra.gmra.mrb[30].mxu0 %v2730_v56  ;;  %v3295_v56 = vld [vmem:[%s11665_s2 + $0x40] sm:$0xff] }
 0xaa3   :  { %6900 = vmatpush1.bf16.msra.mxu0 %v6859_v25  ;;  %3073 = vmatprep.mubr.f32.mxu0 %v7556_v3 }
 0xaa4   :  { %v2563_v21 = vpop.f32.mrb[18].mxu1  ;;  %6902 = vmatprep.subr.bf16.mxu0 %v6901_v30  ;;  %v3132_v30 = vld [vmem:[%s11664_s0 + $0x10] sm:$0xff] }
 0xaa5   :  { %v9812_v14 = vadd.f32 %v2563_v21, %v2464_v63  ;;  %v2565_v22 = vpop.f32.mrb[19].mxu1  ;;  %v3297_v21 = vld [vmem:[%s11665_s2 + $0x50] sm:$0xff] }
 0xaa6   :  { %v6959_v22 = vpack.c.bf16 %v3297_v21, %v3295_v56  ;;  %v3140_v56 = vld [vmem:[%s11664_s0 + $0x50] sm:$0xff]  ;;  %v3143_v21 = vld [vmem:[%s11664_s0 + $0x68] sm:$0xff] }
 0xb75   :  { %v2811_v34 = vpop.f32.mrb[30].mxu0 }
 0xb76   :  { %v2815_v50 = vmul.f32 0.0034722222, %v2811_v34  ;;  %v2813_v28 = vpop.f32.mrb[31].mxu0  ;;  %v3300_v34 = vld [vmem:[%s11665_s2 + $0x68] sm:$0xff] }
 0xb78   :  { %5772 = vmatmul.mubr.msk.f32.vlgmr.msra.gmra.mrb[20].mxu1 %vm340_vm5, %v2815_v50  ;;  %v3302_v50 = vld [vmem:[%s11665_s2 + $0x78] sm:$0xff] }
 0xb79   :  { %6863 = vmatpush1.bf16.msra.mxu1 %v9670_v48  ;;  %v6961_v28 = vpack.c.bf16 %v3302_v50, %v3300_v34 }
 0xb7a   :  { %6864 = vmatprep.subr.bf16.mxu1 %v7557_v8 }
 0xb7d   :  { %6866 = vmatpush1.bf16.msra.mxu1 %v9676_v49 }
 0xb7e   :  { %6867 = vmatprep.subr.bf16.mxu1 %v7557_v8 }
 0xb81   :  { %6869 = vmatpush1.bf16.msra.mxu1 %v9687_v33 }
 0xb82   :  { %6870 = vmatprep.subr.bf16.mxu1 %v7557_v8 }
 0xb85   :  { %6872 = vmatpush1.bf16.msra.mxu1 %v9696_v26 }
 0xb86   :  { %6873 = vmatprep.subr.bf16.mxu1 %v7557_v8 }
 0xb89   :  { %6875 = vmatpush1.bf16.msra.mxu1 %v9706_v20 }
 0xb8a   :  { %6876 = vmatprep.subr.bf16.mxu1 %v7557_v8 }
 0xb8d   :  { %6878 = vmatpush1.bf16.msra.mxu1 %v9717_v29 }
 0xb8e   :  { %6879 = vmatprep.subr.bf16.mxu1 %v7557_v8 }
 0xb91   :  { %6881 = vmatpush1.bf16.msra.mxu1 %v9727_v6 }
 0xb92   :  { %6882 = vmatprep.subr.bf16.mxu1 %v7557_v8 }
 0xb95   :  { %6884 = vmatpush1.bf16.msra.mxu1 %v9737_v37 }
 0xb96   :  { %6885 = vmatprep.subr.bf16.mxu1 %v7557_v8 }
 0xb99   :  { %6887 = vmatpush1.bf16.msra.mxu1 %v9747_v9 }
 0xb9a   :  { %6888 = vmatprep.subr.bf16.mxu1 %v7557_v8 }
 0xb9d   :  { %6890 = vmatpush1.bf16.msra.mxu1 %v9757_v43 }
 0xb9e   :  { %6891 = vmatprep.subr.bf16.mxu1 %v7557_v8 }
 0xba1   :  { %6893 = vmatpush1.bf16.msra.mxu1 %v9767_v1 }
 0xba2   :  { %6894 = vmatprep.subr.bf16.mxu1 %v7557_v8 }
 0xba5   :  { %6896 = vmatpush1.bf16.msra.mxu1 %v9776_v54 }
 0xc4b   :  { %v2885_v48 = vpop.f32.mrb[20].mxu1 }
 0xc4c   :  { %v2893_v49 = vrot.slane %v2885_v48, %v7905_v7  ;;  %v2887_v33 = vpop.f32.mrb[21].mxu1  ;;  %v3299_v48 = vld [vmem:[%s11665_s2 + $0x60] sm:$0xff] }
 0xc4d   :  { %v2897_v26 = vrot.slane %v2887_v33, %v7905_v7 }
 0xc4e   :  { %v9840_v20 = vsub.f32 %v2677_v62, %v2893_v49  ;;  %v9843_v29 = vsub.f32 %v9798_v35, %v2893_v49  ;;  %v9845_v6 = vsub.f32 %v2689_v53, %v2893_v49  ;;  %v3301_v49 = vld [vmem:[%s11665_s2 + $0x70] sm:$0xff] }
 0xc4f   :  { %v9848_v37 = vsub.f32 %v9800_v39, %v2897_v26  ;;  %v9851_v9 = vsub.f32 %v9802_v40, %v2897_v26  ;;  %v9853_v43 = vsub.f32 %v2691_v4, %v2897_v26  ;;  %v3288_v4 = vld [vmem:[%s11665_s2 + $0x8] sm:$0xff]  ;;  %v6963_v33 = vpack.c.bf16 %v3301_v49, %v3299_v48  ;;  %v3144_v48 = vld [vmem:[%s11664_s0 + $0x70] sm:$0xff] }
 0xc50   :  { %v2904_v1 = vmul.f32 %v9840_v20, %v9840_v20  ;;  %v2906_v54 = vmul.f32 %v9843_v29, %v9843_v29  ;;  %v2908_v59 = vmul.f32 %v9845_v6, %v9845_v6  ;;  %v6949_v18 = vpack.c.bf16 %v3290_v19, %v3288_v4  ;;  %v3304_v26 = vld [vmem:[%s11665_s2 + $0x88] sm:$0xff]  ;;  %v3130_v4 = vld [vmem:[%s11664_s0] sm:$0xff] }
 0xc51   :  { %v2905_v25 = vmul.f32 %v9848_v37, %v9848_v37  ;;  %v2907_v57 = vmul.f32 %v9851_v9, %v9851_v9  ;;  %v2909_v58 = vmul.f32 %v9853_v43, %v9853_v43  ;;  %v2721_v19 = vld [vmem:[%s11666_s1] sm:$0x1]  ;;  %v3147_v49 = vld [vmem:[%s11664_s0 + $0x88] sm:$0xff] }
 0xc52   :  { %v2910_v27 = vadd.f32 %v2906_v54, %v2904_v1  ;;  %6950 = vmatprep.subr.bf16.mxu1 %v6949_v18  ;;  %v3306_v1 = vld [vmem:[%s11665_s2 + $0x98] sm:$0xff]  ;;  %v3135_v18 = vld [vmem:[%s11664_s0 + $0x28] sm:$0xff] }
 0xc53   :  { %v2918_v60 = vsel %vm254_vm4, %v2905_v25, 0.0  ;;  %v2919_v61 = vsel %vm254_vm4, %v2907_v57, 0.0  ;;  %v2921_v2 = vsel %vm254_vm4, %v2909_v58, 0.0  ;;  %v6965_v54 = vpack.c.bf16 %v3306_v1, %v3304_v26  ;;  %v3303_v25 = vld [vmem:[%s11665_s2 + $0x80] sm:$0xff]  ;;  %v3305_v57 = vld [vmem:[%s11665_s2 + $0x90] sm:$0xff] }
 0xc54   :  { %v2911_v63 = vadd.f32 %v2910_v27, %v2908_v59  ;;  %v2920_v0 = vadd.f32 %v2919_v61, %v2918_v60  ;;  %v6967_v58 = vpack.c.bf16 %v3305_v57, %v3303_v25  ;;  %v3308_v59 = vld [vmem:[%s11665_s2 + $0xa8] sm:$0xff]  ;;  %v3310_v27 = vld [vmem:[%s11665_s2 + $0xb8] sm:$0xff]  ;;  %v3307_v61 = vld [vmem:[%s11665_s2 + $0xa0] sm:$0xff]  ;;  %v6905_v17 = vpack.c.bf16 %v3137_v16, %v3135_v18 }
 0xc55   :  { %v6969_v60 = vpack.c.bf16 %v3310_v27, %v3308_v59  ;;  %v3148_v25 = vld [vmem:[%s11664_s0 + $0x90] sm:$0xff]  ;;  %v3151_v57 = vld [vmem:[%s11664_s0 + $0xa8] sm:$0xff]  ;;  %v3319_v16 = vld [vmem:[%s11665_s2 + $0x100] sm:$0xff] }
 0xc56   :  { %v2912_v11 = vrot.slane %v2911_v63, 4  ;;  %v2922_v12 = vadd.f32 %v2921_v2, %v2920_v0  ;;  %v3312_v2 = vld [vmem:[%s11665_s2 + $0xc8] sm:$0xff] }
 0xc58   :  { %v2913_v10 = vadd.f32 %v2912_v11, %v2911_v63  ;;  %v2923_v24 = vrot.slane %v2922_v12, 4  ;;  %v3309_v63 = vld [vmem:[%s11665_s2 + $0xb0] sm:$0xff]  ;;  %v3314_v11 = vld [vmem:[%s11665_s2 + $0xd8] sm:$0xff] }
 0xc59   :  { %v6971_v0 = vpack.c.bf16 %v3309_v63, %v3307_v61  ;;  %v3152_v61 = vld [vmem:[%s11664_s0 + $0xb0] sm:$0xff]  ;;  %v3155_v63 = vld [vmem:[%s11664_s0 + $0xc8] sm:$0xff] }
 0xc5a   :  { %v2924_v35 = vadd.f32 %v2923_v24, %v2922_v12  ;;  %v2914_v36 = vrot.slane %v2913_v10, 2  ;;  %v6973_v12 = vpack.c.bf16 %v3314_v11, %v3312_v2  ;;  %v3313_v24 = vld [vmem:[%s11665_s2 + $0xd0] sm:$0xff] }
 0xc5c   :  { %v2925_v39 = vrot.slane %v2924_v35, 2  ;;  %v2915_v40 = vadd.f32 %v2914_v36, %v2913_v10  ;;  %v3311_v10 = vld [vmem:[%s11665_s2 + $0xc0] sm:$0xff]  ;;  %v3316_v36 = vld [vmem:[%s11665_s2 + $0xe8] sm:$0xff] }
 0xc5e   :  { %v2926_v62 = vadd.f32 %v2925_v39, %v2924_v35  ;;  %v2916_v44 = vrot.slane %v2915_v40, 1  ;;  %v6975_v35 = vpack.c.bf16 %v3313_v24, %v3311_v10  ;;  %v3318_v39 = vld [vmem:[%s11665_s2 + $0xf8] sm:$0xff]  ;;  %v3156_v10 = vld [vmem:[%s11664_s0 + $0xd0] sm:$0xff]  ;;  %v3159_v24 = vld [vmem:[%s11664_s0 + $0xe8] sm:$0xff] }
 0xc60   :  { %v2927_v47 = vrot.slane %v2926_v62, 1  ;;  %v2917_v53 = vadd.f32 %v2916_v44, %v2915_v40  ;;  %v6977_v40 = vpack.c.bf16 %v3318_v39, %v3316_v36  ;;  %v3317_v44 = vld [vmem:[%s11665_s2 + $0xf0] sm:$0xff] }
 0xc62   :  { %v2928_v46 = vadd.f32 %v2927_v47, %v2926_v62  ;;  %v3315_v62 = vld [vmem:[%s11665_s2 + $0xe0] sm:$0xff] }
 0xc63   :  { %v6979_v47 = vpack.c.bf16 %v3317_v44, %v3315_v62  ;;  %v3160_v62 = vld [vmem:[%s11664_s0 + $0xf0] sm:$0xff] }
 0xc64   :  { %5773 = vmatprep.mubr.msk.f32.mxu1 %vm254_vm4, %v2928_v46 }
 0xc65   :  { %2997 = vmatmul.mubr.f32.vlgmr.msra.gmra.mrb[22].mxu1 %v2917_v53 }
 0xc66   :  { %6952 = vmatpush1.bf16.msra.mxu1 %v6951_v38  ;;  %v6903_v38 = vpack.c.bf16 %v3132_v30, %v3130_v4  ;;  %v3162_v4 = vld [vmem:[%s11664_s0 + $0x100] sm:$0xff]  ;;  %v3164_v30 = vld [vmem:[%s11664_s0 + $0x110] sm:$0xff] }
 0xc67   :  { %6954 = vmatprep.subr.bf16.mxu1 %v6953_v32  ;;  %v3134_v32 = vld [vmem:[%s11664_s0 + $0x20] sm:$0xff]  ;;  %v6935_v18 = vpack.c.bf16 %v3164_v30, %v3162_v4 }
 0xc68   :  { %v6907_v52 = vpack.c.bf16 %v3136_v45, %v3134_v32  ;;  %v3324_v32 = vld [vmem:[%s11665_s2 + $0x128] sm:$0xff] }
 0xc6a   :  { %6956 = vmatpush1.bf16.msra.mxu1 %v6955_v41  ;;  %v3141_v41 = vld [vmem:[%s11664_s0 + $0x58] sm:$0xff] }
 0xc6b   :  { %6958 = vmatprep.subr.bf16.mxu1 %v6957_v42  ;;  %v6909_v55 = vpack.c.bf16 %v3141_v41, %v3139_v51  ;;  %v3138_v42 = vld [vmem:[%s11664_s0 + $0x40] sm:$0xff]  ;;  %v3326_v51 = vld [vmem:[%s11665_s2 + $0x138] sm:$0xff] }
 0xc6c   :  { %v6911_v34 = vpack.c.bf16 %v3140_v56, %v3138_v42  ;;  %v3166_v41 = vld [vmem:[%s11664_s0 + $0x120] sm:$0xff] }
 0xc6d   :  { %v3323_v56 = vld [vmem:[%s11665_s2 + $0x120] sm:$0xff] }
 0xc6e   :  { %6960 = vmatpush1.bf16.msra.mxu1 %v6959_v22  ;;  %v3145_v22 = vld [vmem:[%s11664_s0 + $0x78] sm:$0xff] }
 0xc6f   :  { %6962 = vmatprep.subr.bf16.mxu1 %v6961_v28  ;;  %v6913_v50 = vpack.c.bf16 %v3145_v22, %v3143_v21  ;;  %v3142_v28 = vld [vmem:[%s11664_s0 + $0x60] sm:$0xff]  ;;  %v3325_v21 = vld [vmem:[%s11665_s2 + $0x130] sm:$0xff]  ;;  %v3171_v22 = vld [vmem:[%s11664_s0 + $0x148] sm:$0xff] }
 0xc70   :  { %v6915_v26 = vpack.c.bf16 %v3144_v48, %v3142_v28  ;;  %v3328_v28 = vld [vmem:[%s11665_s2 + $0x148] sm:$0xff]  ;;  %v3330_v48 = vld [vmem:[%s11665_s2 + $0x158] sm:$0xff] }
 0xc72   :  { %6964 = vmatpush1.bf16.msra.mxu1 %v6963_v33  ;;  %v3149_v33 = vld [vmem:[%s11664_s0 + $0x98] sm:$0xff] }
 0xc73   :  { %6966 = vmatprep.subr.bf16.mxu1 %v6965_v54  ;;  %v6917_v1 = vpack.c.bf16 %v3149_v33, %v3147_v49  ;;  %v3146_v54 = vld [vmem:[%s11664_s0 + $0x80] sm:$0xff]  ;;  %v6989_v33 = vpack.c.bf16 %v3330_v48, %v3328_v28  ;;  %v5837_v28 = vld [vmem:[%s11665_s2 + $0x1a8] sm:$0xff]  ;;  %v5839_v48 = vld [vmem:[%s11665_s2 + $0x1b8] sm:$0xff] }
 0xc74   :  { %v6919_v59 = vpack.c.bf16 %v3148_v25, %v3146_v54  ;;  %v3327_v54 = vld [vmem:[%s11665_s2 + $0x140] sm:$0xff] }
 0xc76   :  { %6968 = vmatpush1.bf16.msra.mxu1 %v6967_v58  ;;  %v3153_v58 = vld [vmem:[%s11664_s0 + $0xb8] sm:$0xff] }
 0xc77   :  { %6970 = vmatprep.subr.bf16.mxu1 %v6969_v60  ;;  %v6921_v27 = vpack.c.bf16 %v3153_v58, %v3151_v57  ;;  %v3150_v60 = vld [vmem:[%s11664_s0 + $0xa0] sm:$0xff]  ;;  %v3329_v57 = vld [vmem:[%s11665_s2 + $0x150] sm:$0xff]  ;;  %v3175_v58 = vld [vmem:[%s11664_s0 + $0x168] sm:$0xff] }
 0xc78   :  { %v6923_v2 = vpack.c.bf16 %v3152_v61, %v3150_v60  ;;  %v3332_v61 = vld [vmem:[%s11665_s2 + $0x168] sm:$0xff] }
 0xc7a   :  { %6972 = vmatpush1.bf16.msra.mxu1 %v6971_v0  ;;  %v3157_v0 = vld [vmem:[%s11664_s0 + $0xd8] sm:$0xff] }
 0xc7b   :  { %6974 = vmatprep.subr.bf16.mxu1 %v6973_v12  ;;  %v6925_v11 = vpack.c.bf16 %v3157_v0, %v3155_v63  ;;  %v3154_v12 = vld [vmem:[%s11664_s0 + $0xc0] sm:$0xff]  ;;  %v3334_v63 = vld [vmem:[%s11665_s2 + $0x178] sm:$0xff] }
 0xc7c   :  { %v6927_v36 = vpack.c.bf16 %v3156_v10, %v3154_v12  ;;  %v3174_v0 = vld [vmem:[%s11664_s0 + $0x160] sm:$0xff]  ;;  %v3333_v10 = vld [vmem:[%s11665_s2 + $0x170] sm:$0xff] }
 0xc7d   :  { %v3331_v12 = vld [vmem:[%s11665_s2 + $0x160] sm:$0xff] }
 0xc7e   :  { %6976 = vmatpush1.bf16.msra.mxu1 %v6975_v35  ;;  %v3161_v35 = vld [vmem:[%s11664_s0 + $0xf8] sm:$0xff] }
 0xc7f   :  { %6978 = vmatprep.subr.bf16.mxu1 %v6977_v40  ;;  %v6929_v39 = vpack.c.bf16 %v3161_v35, %v3159_v24  ;;  %v3158_v40 = vld [vmem:[%s11664_s0 + $0xe0] sm:$0xff]  ;;  %v6995_v35 = vpack.c.bf16 %v3333_v10, %v3331_v12  ;;  %v5791_v10 = vld [vmem:[%s11664_s0 + $0x1d0] sm:$0xff] }
 0xc80   :  { %v6931_v44 = vpack.c.bf16 %v3160_v62, %v3158_v40  ;;  %v5833_v40 = vld [vmem:[%s11665_s2 + $0x188] sm:$0xff]  ;;  %v5789_v12 = vld [vmem:[%s11664_s0 + $0x1c0] sm:$0xff] }
 0xc82   :  { %6980 = vmatpush1.bf16.msra.mxu1 %v6979_v47  ;;  %v3163_v47 = vld [vmem:[%s11664_s0 + $0x108] sm:$0xff] }
 0xd38   :  { %v2998_v46 = vpop.f32.mrb[22].mxu1 }
 0xd39   :  { %v3002_v53 = vmul.f32 0.0034722222, %v2998_v46  ;;  %v3000_v15 = vpop.f32.mrb[23].mxu1  ;;  %v3165_v46 = vld [vmem:[%s11664_s0 + $0x118] sm:$0xff] }
 0xd3a   :  { %v6933_v15 = vpack.c.bf16 %v3165_v46, %v3163_v47  ;;  %v2722_v46 = vld [vmem:[%s11667_s7] sm:$0x3] }
 0xd3b   :  { %v3003_v13 = vadd.f32 1e-05, %v3002_v53  ;;  %v3320_v53 = vld [vmem:[%s11665_s2 + $0x108] sm:$0xff] }
 0xd3d   :  { %7538 = vrsqrt.f32 %v3003_v13  ;;  %v3322_v13 = vld [vmem:[%s11665_s2 + $0x118] sm:$0xff] }
 0xd47   :  { %v7539_v31 = vpop.eup %7538 }
 0xd48   :  { %v3005_v23 = vmul.f32 %v7539_v31, %v2721_v19  ;;  %v6981_v19 = vpack.c.bf16 %v3322_v13, %v3320_v53  ;;  %v3321_v31 = vld [vmem:[%s11665_s2 + $0x110] sm:$0xff]  ;;  %v3098_v13 = vrot.slane %v2722_v46, %v7905_v7 }
 0xd4a   :  { %5774 = vmatmul.mubr.msk.f32.vlgmr.msra.gmra.mrb[32].mxu0 %vm340_vm5, %v3005_v23  ;;  %6982 = vmatprep.subr.bf16.mxu1 %v6981_v19  ;;  %v3167_v23 = vld [vmem:[%s11664_s0 + $0x128] sm:$0xff]  ;;  %v3102_v19 = vrot.slane %v2722_v46, %v7900_v5  ;;  %v5847_v46 = vld [vmem:[%s11665_s2 + $0x1f8] sm:$0xff] }
 0xd4b   :  { %6904 = vmatpush1.bf16.msra.mxu0 %v6903_v38  ;;  %v6983_v38 = vpack.c.bf16 %v3321_v31, %v3319_v16 }
 0xd4c   :  { %6906 = vmatprep.subr.bf16.mxu0 %v6905_v17  ;;  %v3169_v17 = vld [vmem:[%s11664_s0 + $0x138] sm:$0xff] }
 0xd4d   :  { %6984 = vmatpush1.bf16.msra.mxu1 %v6983_v38  ;;  %v6937_v45 = vpack.c.bf16 %v3169_v17, %v3167_v23 }
 0xd4f   :  { %6908 = vmatpush1.bf16.msra.mxu0 %v6907_v52  ;;  %v3168_v52 = vld [vmem:[%s11664_s0 + $0x130] sm:$0xff] }
 0xd50   :  { %6910 = vmatprep.subr.bf16.mxu0 %v6909_v55  ;;  %v6985_v55 = vpack.c.bf16 %v3326_v51, %v3324_v32  ;;  %v6939_v42 = vpack.c.bf16 %v3168_v52, %v3166_v41 }
 0xd52   :  { %6986 = vmatprep.subr.bf16.mxu1 %v6985_v55 }
 0xd53   :  { %6912 = vmatpush1.bf16.msra.mxu0 %v6911_v34  ;;  %v6987_v34 = vpack.c.bf16 %v3325_v21, %v3323_v56 }
 0xd54   :  { %6914 = vmatprep.subr.bf16.mxu0 %v6913_v50  ;;  %v3173_v50 = vld [vmem:[%s11664_s0 + $0x158] sm:$0xff] }
 0xd55   :  { %v6941_v49 = vpack.c.bf16 %v3173_v50, %v3171_v22  ;;  %6988 = vmatpush1.bf16.msra.mxu1 %v6987_v34  ;;  %v5786_v34 = vld [vmem:[%s11664_s0 + $0x1a8] sm:$0xff]  ;;  %v5788_v50 = vld [vmem:[%s11664_s0 + $0x1b8] sm:$0xff] }
 0xd56   :  { %6990 = vmatprep.subr.bf16.mxu1 %v6989_v33 }
 0xd57   :  { %6916 = vmatpush1.bf16.msra.mxu0 %v6915_v26  ;;  %v3170_v26 = vld [vmem:[%s11664_s0 + $0x140] sm:$0xff] }
 0xd58   :  { %6918 = vmatprep.subr.bf16.mxu0 %v6917_v1  ;;  %v3172_v1 = vld [vmem:[%s11664_s0 + $0x150] sm:$0xff] }
 0xd59   :  { %v6943_v25 = vpack.c.bf16 %v3172_v1, %v3170_v26  ;;  %v5785_v26 = vld [vmem:[%s11664_s0 + $0x1a0] sm:$0xff]  ;;  %v5787_v1 = vld [vmem:[%s11664_s0 + $0x1b0] sm:$0xff] }
 0xd5b   :  { %6920 = vmatpush1.bf16.msra.mxu0 %v6919_v59  ;;  %v3177_v59 = vld [vmem:[%s11664_s0 + $0x178] sm:$0xff] }
 0xd5c   :  { %6922 = vmatprep.subr.bf16.mxu0 %v6921_v27  ;;  %v6991_v27 = vpack.c.bf16 %v3329_v57, %v3327_v54  ;;  %v6945_v60 = vpack.c.bf16 %v3177_v59, %v3175_v58  ;;  %v5838_v57 = vld [vmem:[%s11665_s2 + $0x1b0] sm:$0xff]  ;;  %v7001_v58 = vpack.c.bf16 %v5788_v50, %v5786_v34  ;;  %v7049_v59 = vpack.c.bf16 %v5839_v48, %v5837_v28  ;;  %v5853_v34 = vld [vmem:[%s11665_s2 + $0x228] sm:$0xff]  ;;  %v5855_v50 = vld [vmem:[%s11665_s2 + $0x238] sm:$0xff] }
 0xd5e   :  { %6992 = vmatpush1.bf16.msra.mxu1 %v6991_v27  ;;  %v5790_v27 = vld [vmem:[%s11664_s0 + $0x1c8] sm:$0xff] }
 0xd5f   :  { %6924 = vmatpush1.bf16.msra.mxu0 %v6923_v2  ;;  %v6993_v2 = vpack.c.bf16 %v3334_v63, %v3332_v61  ;;  %v5841_v61 = vld [vmem:[%s11665_s2 + $0x1c8] sm:$0xff]  ;;  %v5843_v63 = vld [vmem:[%s11665_s2 + $0x1d8] sm:$0xff] }
 0xd60   :  { %6926 = vmatprep.subr.bf16.mxu0 %v6925_v11  ;;  %v3176_v11 = vld [vmem:[%s11664_s0 + $0x170] sm:$0xff] }
 0xd61   :  { %v6947_v24 = vpack.c.bf16 %v3176_v11, %v3174_v0  ;;  %6994 = vmatprep.subr.bf16.mxu1 %v6993_v2  ;;  %v7003_v2 = vpack.c.bf16 %v5787_v1, %v5785_v26  ;;  %v7065_v1 = vpack.c.bf16 %v5855_v50, %v5853_v34  ;;  %v5868_v34 = vld [vmem:[%s11665_s2 + $0x2a0] sm:$0xff]  ;;  %v5870_v50 = vld [vmem:[%s11665_s2 + $0x2b0] sm:$0xff] }
 0xd62   :  { %6996 = vmatpush1.bf16.msra.mxu1 %v6995_v35  ;;  %v5842_v35 = vld [vmem:[%s11665_s2 + $0x1d0] sm:$0xff] }
 0xd63   :  { %6928 = vmatpush1.bf16.msra.mxu0 %v6927_v36  ;;  %v5782_v36 = vld [vmem:[%s11664_s0 + $0x188] sm:$0xff] }
 0xd64   :  { %6930 = vmatprep.subr.bf16.mxu0 %v6929_v39  ;;  %v5784_v39 = vld [vmem:[%s11664_s0 + $0x198] sm:$0xff] }
 0xd65   :  { %v6997_v62 = vpack.c.bf16 %v5784_v39, %v5782_v36 }
 0xd67   :  { %6932 = vmatpush1.bf16.msra.mxu0 %v6931_v44  ;;  %v5835_v44 = vld [vmem:[%s11665_s2 + $0x198] sm:$0xff] }
 0xd68   :  { %6934 = vmatprep.subr.bf16.mxu0 %v6933_v15  ;;  %v7045_v47 = vpack.c.bf16 %v5835_v44, %v5833_v40  ;;  %v7053_v40 = vpack.c.bf16 %v5843_v63, %v5841_v61  ;;  %v5796_v44 = vld [vmem:[%s11664_s0 + $0x1f8] sm:$0xff]  ;;  %v5805_v63 = vld [vmem:[%s11664_s0 + $0x240] sm:$0xff] }
 0xd6a   :  { %7046 = vmatprep.subr.bf16.mxu1 %v7045_v47  ;;  %v5845_v47 = vld [vmem:[%s11665_s2 + $0x1e8] sm:$0xff] }
 0xd6b   :  { %6936 = vmatpush1.bf16.msra.mxu0 %v6935_v18 }
 0xd6c   :  { %6938 = vmatprep.subr.bf16.mxu0 %v6937_v45 }
 0xd6f   :  { %6940 = vmatpush1.bf16.msra.mxu0 %v6939_v42 }
 0xd70   :  { %6942 = vmatprep.subr.bf16.mxu0 %v6941_v49 }
 0xd73   :  { %6944 = vmatpush1.bf16.msra.mxu0 %v6943_v25  ;;  %v5836_v25 = vld [vmem:[%s11665_s2 + $0x1a0] sm:$0xff] }
 0xd74   :  { %6946 = vmatprep.subr.bf16.mxu0 %v6945_v60  ;;  %v5792_v60 = vld [vmem:[%s11664_s0 + $0x1d8] sm:$0xff]  ;;  %v7051_v11 = vpack.c.bf16 %v5838_v57, %v5836_v25  ;;  %v5854_v25 = vld [vmem:[%s11665_s2 + $0x230] sm:$0xff]  ;;  %v5806_v57 = vld [vmem:[%s11664_s0 + $0x248] sm:$0xff] }
 0xd75   :  { %v7005_v39 = vpack.c.bf16 %v5792_v60, %v5790_v27  ;;  %v5859_v27 = vld [vmem:[%s11665_s2 + $0x258] sm:$0xff] }
 0xd77   :  { %6948 = vmatpush1.bf16.msra.mxu0 %v6947_v24  ;;  %v5840_v24 = vld [vmem:[%s11665_s2 + $0x1c0] sm:$0xff] }
 0xd78   :  { %6998 = vmatprep.subr.bf16.mxu0 %v6997_v62  ;;  %v5794_v62 = vld [vmem:[%s11664_s0 + $0x1e8] sm:$0xff] }
 0xe1d   :  { %v3075_v53 = vpop.f32.mrb[32].mxu0 }
 0xe1e   :  { %v3083_v15 = vrot.slane %v3075_v53, %v7905_v7  ;;  %v3077_v4 = vpop.f32.mrb[33].mxu0  ;;  %v5793_v53 = vld [vmem:[%s11664_s0 + $0x1e0] sm:$0xff] }
 0xe1f   :  { %v3087_v30 = vrot.slane %v3077_v4, %v7905_v7  ;;  %v7007_v4 = vpack.c.bf16 %v5791_v10, %v5789_v12  ;;  %v5856_v10 = vld [vmem:[%s11665_s2 + $0x240] sm:$0xff] }
 0xe20   :  { %v3088_v18 = vmul.f32 %v3083_v15, %v9840_v20  ;;  %v3090_v16 = vmul.f32 %v3083_v15, %v9843_v29  ;;  %v3092_v31 = vmul.f32 %v3083_v15, %v9845_v6  ;;  %v5781_v6 = vld [vmem:[%s11664_s0 + $0x180] sm:$0xff] }
 0xe21   :  { %v3089_v38 = vmul.f32 %v3087_v30, %v9848_v37  ;;  %v3091_v23 = vmul.f32 %v3087_v30, %v9851_v9  ;;  %v3093_v17 = vmul.f32 %v3087_v30, %v9853_v43  ;;  %v5783_v37 = vld [vmem:[%s11664_s0 + $0x190] sm:$0xff]  ;;  %v5832_v9 = vld [vmem:[%s11665_s2 + $0x180] sm:$0xff]  ;;  %v7055_v30 = vpack.c.bf16 %v5842_v35, %v5840_v24  ;;  %v5810_v35 = vld [vmem:[%s11664_s0 + $0x268] sm:$0xff] }
 0xe22   :  { %v3105_v32 = vadd.f32 %v3098_v13, %v3088_v18  ;;  %v3107_v45 = vadd.f32 %v3098_v13, %v3090_v16  ;;  %v3109_v51 = vadd.f32 %v3098_v13, %v3092_v31  ;;  %v5834_v43 = vld [vmem:[%s11665_s2 + $0x190] sm:$0xff]  ;;  %v6999_v49 = vpack.c.bf16 %v5783_v37, %v5781_v6  ;;  %v5844_v16 = vld [vmem:[%s11665_s2 + $0x1e0] sm:$0xff] }
 0xe23   :  { %v3106_v41 = vadd.f32 %v3102_v19, %v3089_v38  ;;  %v3108_v52 = vadd.f32 %v3102_v19, %v3091_v23  ;;  %v3110_v55 = vadd.f32 %v3102_v19, %v3093_v17  ;;  %v7047_v33 = vpack.c.bf16 %v5834_v43, %v5832_v9  ;;  %v5795_v18 = vld [vmem:[%s11664_s0 + $0x1f0] sm:$0xff]  ;;  %v5798_v38 = vld [vmem:[%s11664_s0 + $0x208] sm:$0xff]  ;;  %v5800_v23 = vld [vmem:[%s11664_s0 + $0x218] sm:$0xff] }
 0xe24   :  { %v3111_v42 = vmax.f32 %v3105_v32, 0.0  ;;  %v10188_v56 = vmax.f32 %v3107_v45, 0.0  ;;  %v3115_v20 = vmax.f32 %v3109_v51, 0.0  ;;  %v5846_v31 = vld [vmem:[%s11665_s2 + $0x1f0] sm:$0xff]  ;;  %v7009_v32 = vpack.c.bf16 %v5796_v44, %v5794_v62  ;;  %v5849_v51 = vld [vmem:[%s11665_s2 + $0x208] sm:$0xff]  ;;  %v5848_v6 = vld [vmem:[%s11665_s2 + $0x200] sm:$0xff] }
 0xe25   :  { %v3112_v21 = vmax.f32 %v3106_v41, 0.0  ;;  %v3114_v29 = vmax.f32 %v3108_v52, 0.0  ;;  %v3116_v22 = vmax.f32 %v3110_v55, 0.0  ;;  %v7057_v45 = vpack.c.bf16 %v5847_v46, %v5845_v47  ;;  %v5851_v41 = vld [vmem:[%s11665_s2 + $0x218] sm:$0xff]  ;;  %v5850_v37 = vld [vmem:[%s11665_s2 + $0x210] sm:$0xff]  ;;  %v5802_v9 = vld [vmem:[%s11664_s0 + $0x228] sm:$0xff] }
 0xe26   :  { %3117 = vst [vmem:[#allocation2] sm:$0xff] %v3111_v42  ;;  %3121 = vst [vmem:[#allocation2 + $0x20] sm:$0xff] %v3115_v20  ;;  %v7011_v55 = vpack.c.bf16 %v5795_v18, %v5793_v53  ;;  %v5797_v20 = vld [vmem:[%s11664_s0 + $0x200] sm:$0xff]  ;;  %v5804_v43 = vld [vmem:[%s11664_s0 + $0x238] sm:$0xff]  ;;  %v7063_v48 = vpack.c.bf16 %v5850_v37, %v5848_v6 }
 0xe27   :  { %3118 = vst.msk [vmem:[#allocation2 + $0x8] sm:$0xff] %vm254_vm4, %v3112_v21  ;;  %3120 = vst.msk [vmem:[#allocation2 + $0x18] sm:$0xff] %vm254_vm4, %v3114_v29  ;;  %v5799_v21 = vld [vmem:[%s11664_s0 + $0x210] sm:$0xff]  ;;  %v7013_v29 = vpack.c.bf16 %v5800_v23, %v5798_v38  ;;  %v7017_v26 = vpack.c.bf16 %v5804_v43, %v5802_v9  ;;  %v5809_v47 = vld [vmem:[%s11664_s0 + $0x260] sm:$0xff] }
 0xe28   :  { %3122 = vst.msk [vmem:[#allocation2 + $0x28] sm:$0xff] %vm254_vm4, %v3116_v22  ;;  %v7061_v22 = vpack.c.bf16 %v5851_v41, %v5849_v51  ;;  %v7015_v28 = vpack.c.bf16 %v5799_v21, %v5797_v20  ;;  %v5858_v24 = vld [vmem:[%s11665_s2 + $0x250] sm:$0xff]  ;;  %v5816_v18 = vld [vmem:[%s11664_s0 + $0x298] sm:$0xff]  ;;  %v5864_v41 = vld [vmem:[%s11665_s2 + $0x280] sm:$0xff] }
 0xe29   :  { %v7071_v44 = vpack.c.bf16 %v5858_v24, %v5856_v10  ;;  %v5811_v46 = vld [vmem:[%s11664_s0 + $0x270] sm:$0xff]  ;;  %v5869_v20 = vld [vmem:[%s11665_s2 + $0x2a8] sm:$0xff]  ;;  %v5871_v21 = vld [vmem:[%s11665_s2 + $0x2b8] sm:$0xff] }
 0xe2a   :  { %v7027_v38 = vpack.c.bf16 %v5811_v46, %v5809_v47  ;;  %v5817_v6 = vld [vmem:[%s11664_s0 + $0x2a0] sm:$0xff]  ;;  %v5819_v37 = vld [vmem:[%s11664_s0 + $0x2b0] sm:$0xff]  ;;  %v7081_v43 = vpack.c.bf16 %v5871_v21, %v5869_v20  ;;  %v5935_v47 = vld [vmem:[%s11665_s2 + $0x308] sm:$0xff] }
 0xe2b   :  { %v5825_v10 = vld [vmem:[%s11664_s0 + $0x2e0] sm:$0xff]  ;;  %v5827_v24 = vld [vmem:[%s11664_s0 + $0x2f0] sm:$0xff]  ;;  %v5937_v46 = vld [vmem:[%s11665_s2 + $0x318] sm:$0xff] }
 0xe2d   :  { %v3128_v17 = vld [vmem:[#allocation2 + $0x20] sm:$0xf] }
 0xe2e   :  { %v3125_v54 = vld [vmem:[#allocation2 + $0x8] sm:$0xff]  ;;  %v10243_v0 = vld [vmem:[#allocation2 + $0x18] sm:$0xff] }
 0xe2f   :  { %5775 = vmatprep.mubr.msk.f32.mxu0 %vm254_vm4, %v3125_v54  ;;  %5778 = vmatprep.mubr.msk.f32.mxu1 %vm254_vm4, %v3125_v54  ;;  %v3425_v36 = vld [vmem:[#allocation2 + $0x8] sm:$0xfc]  ;;  %v3485_v15 = vrot.slane %v10243_v0, 2  ;;  %v5852_v54 = vld [vmem:[%s11665_s2 + $0x220] sm:$0xff] }
 0xe30   :  { %3252 = vmatmul.mubr.f32.vlgmr.msra.gmra.mrb[34].mxu0 %v3111_v42  ;;  %3400 = vmatmul.mubr.f32.vlgmr.msra.gmra.mrb[24].mxu1 %v3111_v42  ;;  %v3129_v13 = vld [vmem:[#allocation2 + $0x28] sm:$0xf]  ;;  %v3484_v19 = vrot.slane %v3425_v36, 2  ;;  %v7059_v42 = vpack.c.bf16 %v5846_v31, %v5844_v16  ;;  %v7067_v61 = vpack.c.bf16 %v5854_v25, %v5852_v54  ;;  %v5812_v36 = vld [vmem:[%s11664_s0 + $0x278] sm:$0xff]  ;;  %v5821_v54 = vld [vmem:[%s11664_s0 + $0x2c0] sm:$0xff] }
 0xe31   :  { %7000 = vmatpush1.bf16.msra.mxu0 %v6999_v49  ;;  %7048 = vmatpush1.bf16.msra.mxu1 %v7047_v33  ;;  %v5801_v49 = vld [vmem:[%s11664_s0 + $0x220] sm:$0xff]  ;;  %v5803_v33 = vld [vmem:[%s11664_s0 + $0x230] sm:$0xff]  ;;  %v7025_v53 = vpack.c.bf16 %v5812_v36, %v5810_v35  ;;  %v5865_v16 = vld [vmem:[%s11665_s2 + $0x288] sm:$0xff] }
 0xe32   :  { %5776 = vmatprep.mubr.msk.f32.mxu0 %vm254_vm4, %v10243_v0  ;;  %5779 = vmatprep.mubr.msk.f32.mxu1 %vm254_vm4, %v10243_v0  ;;  %v3486_v52 = vsel %vm1007_vm6, %v3484_v19, %v3485_v15  ;;  %v7019_v60 = vpack.c.bf16 %v5803_v33, %v5801_v49  ;;  %v5814_v19 = vld [vmem:[%s11664_s0 + $0x288] sm:$0xff]  ;;  %v5867_v31 = vld [vmem:[%s11665_s2 + $0x298] sm:$0xff]  ;;  %v5823_v25 = vld [vmem:[%s11664_s0 + $0x2d0] sm:$0xff] }
 0xe33   :  { %7002 = vmatprep.subr.bf16.mxu0 %v7001_v58  ;;  %7050 = vmatprep.subr.bf16.mxu1 %v7049_v59  ;;  %v5808_v58 = vld [vmem:[%s11664_s0 + $0x258] sm:$0xff]  ;;  %v5857_v59 = vld [vmem:[%s11665_s2 + $0x248] sm:$0xff]  ;;  %v7077_v51 = vpack.c.bf16 %v5867_v31, %v5865_v16  ;;  %v5883_v16 = vld [vmem:[%s11664_s0 + $0x300] sm:$0xff] }
 0xe34   :  { %3258 = vmatmul.mubr.f32.gmra.mrb[36].mxu0 %v10188_v56  ;;  %3406 = vmatmul.mubr.f32.gmra.mrb[26].mxu1 %v10188_v56  ;;  %v7069_v12 = vpack.c.bf16 %v5859_v27, %v5857_v59  ;;  %v5873_v49 = vld [vmem:[%s11665_s2 + $0x2c8] sm:$0xff]  ;;  %v5875_v33 = vld [vmem:[%s11665_s2 + $0x2d8] sm:$0xff]  ;;  %v5872_v59 = vld [vmem:[%s11665_s2 + $0x2c0] sm:$0xff] }
 0xe35   :  { %7004 = vmatpush1.bf16.msra.mxu0 %v7003_v2  ;;  %7052 = vmatpush1.bf16.msra.mxu1 %v7051_v11  ;;  %v5807_v2 = vld [vmem:[%s11664_s0 + $0x250] sm:$0xff]  ;;  %v7021_v11 = vpack.c.bf16 %v5808_v58, %v5806_v57  ;;  %v7085_v58 = vpack.c.bf16 %v5875_v33, %v5873_v49  ;;  %v5894_v49 = vld [vmem:[%s11664_s0 + $0x358] sm:$0xff]  ;;  %v5943_v33 = vld [vmem:[%s11665_s2 + $0x348] sm:$0xff] }
 0xe36   :  { %5777 = vmatprep.mubr.msk.f32.mxu0 %vm254_vm4, %v3129_v13  ;;  %5780 = vmatprep.mubr.msk.f32.mxu1 %vm254_vm4, %v3129_v13  ;;  %v7023_v62 = vpack.c.bf16 %v5807_v2, %v5805_v63  ;;  %v5874_v27 = vld [vmem:[%s11665_s2 + $0x2d0] sm:$0xff]  ;;  %v5877_v63 = vld [vmem:[%s11665_s2 + $0x2e8] sm:$0xff]  ;;  %v5879_v2 = vld [vmem:[%s11665_s2 + $0x2f8] sm:$0xff] }
 0xe37   :  { %7006 = vmatprep.subr.bf16.mxu0 %v7005_v39  ;;  %7054 = vmatprep.subr.bf16.mxu1 %v7053_v40  ;;  %v5861_v39 = vld [vmem:[%s11665_s2 + $0x268] sm:$0xff]  ;;  %v5863_v40 = vld [vmem:[%s11665_s2 + $0x278] sm:$0xff]  ;;  %v7089_v36 = vpack.c.bf16 %v5879_v2, %v5877_v63  ;;  %v5885_v31 = vld [vmem:[%s11664_s0 + $0x310] sm:$0xff]  ;;  %v3786_v2 = vrot.slane %v10243_v0, 4 }
 0xe38   :  { %3264 = vmatmul.mubr.f32.gmra.mrb[38].mxu0 %v3128_v17  ;;  %3412 = vmatmul.mubr.f32.gmra.mrb[28].mxu1 %v3128_v17  ;;  %v7073_v13 = vpack.c.bf16 %v5863_v40, %v5861_v39  ;;  %v5813_v17 = vld [vmem:[%s11664_s0 + $0x280] sm:$0xff]  ;;  %v5878_v40 = vld [vmem:[%s11665_s2 + $0x2f0] sm:$0xff]  ;;  %v7095_v20 = vpack.c.bf16 %v5885_v31, %v5883_v16  ;;  %v5896_v63 = vld [vmem:[%s11664_s0 + $0x368] sm:$0xff] }
 0xe39   :  { %7008 = vmatpush1.bf16.msra.mxu0 %v7007_v4  ;;  %7056 = vmatpush1.bf16.msra.mxu1 %v7055_v30  ;;  %v5860_v4 = vld [vmem:[%s11665_s2 + $0x260] sm:$0xff]  ;;  %v5862_v30 = vld [vmem:[%s11665_s2 + $0x270] sm:$0xff]  ;;  %v4032_v0 = vld [vmem:[%s11668_s3 + $0x28] sm:$0xff] }
 0xe3a   :  { %5829 = vmatprep.mubr.msk.f32.mxu0 %vm254_vm4, %v3486_v52  ;;  %5880 = vmatprep.mubr.msk.f32.mxu1 %vm254_vm4, %v3486_v52  ;;  %v7075_v23 = vpack.c.bf16 %v5862_v30, %v5860_v4  ;;  %v5866_v52 = vld [vmem:[%s11665_s2 + $0x290] sm:$0xff]  ;;  %v5876_v39 = vld [vmem:[%s11665_s2 + $0x2e0] sm:$0xff]  ;;  %v3427_v30 = vld [vmem:[#allocation2 + $0x28] sm:$0x3f] }
 0xe3b   :  { %7010 = vmatprep.subr.bf16.mxu0 %v7009_v32  ;;  %7058 = vmatprep.subr.bf16.mxu1 %v7057_v45  ;;  %v5815_v32 = vld [vmem:[%s11664_s0 + $0x290] sm:$0xff]  ;;  %v7029_v45 = vpack.c.bf16 %v5816_v18, %v5814_v19  ;;  %v7091_v4 = vpack.c.bf16 %v5878_v40, %v5876_v39  ;;  %v7141_v18 = vpack.c.bf16 %v5937_v46, %v5935_v47  ;;  %v5895_v39 = vld [vmem:[%s11664_s0 + $0x360] sm:$0xff] }
 0xe3c   :  { %v5897_v40 = vld [vmem:[%s11664_s0 + $0x370] sm:$0xff]  ;;  %v5946_v47 = vld [vmem:[%s11665_s2 + $0x360] sm:$0xff] }
 0xe3d   :  { %7012 = vmatpush1.bf16.msra.mxu0 %v7011_v55  ;;  %7060 = vmatpush1.bf16.msra.mxu1 %v7059_v42  ;;  %v5818_v55 = vld [vmem:[%s11664_s0 + $0x2a8] sm:$0xff]  ;;  %v5820_v42 = vld [vmem:[%s11664_s0 + $0x2b8] sm:$0xff]  ;;  %v5948_v46 = vld [vmem:[%s11665_s2 + $0x370] sm:$0xff] }
 0xe3e   :  { %7014 = vmatprep.subr.bf16.mxu0 %v7013_v29  ;;  %7062 = vmatprep.subr.bf16.mxu1 %v7061_v22  ;;  %v7031_v29 = vpack.c.bf16 %v5815_v32, %v5813_v17  ;;  %v7079_v22 = vpack.c.bf16 %v5866_v52, %v5864_v41  ;;  %v7033_v9 = vpack.c.bf16 %v5820_v42, %v5818_v55  ;;  %v5936_v17 = vld [vmem:[%s11665_s2 + $0x310] sm:$0xff]  ;;  %v5888_v32 = vld [vmem:[%s11664_s0 + $0x328] sm:$0xff]  ;;  %v3426_v41 = vld [vmem:[#allocation2 + $0x20] sm:$0x3f]  ;;  %v3482_v42 = vrot.slane %v10188_v56, 2 }
 0xe3f   :  { %v5939_v52 = vld [vmem:[%s11665_s2 + $0x328] sm:$0xff]  ;;  %v5941_v55 = vld [vmem:[%s11665_s2 + $0x338] sm:$0xff]  ;;  %v7155_v16 = vpack.c.bf16 %v5948_v46, %v5946_v47  ;;  %v5899_v31 = vld [vmem:[%s11664_s0 + $0x380] sm:$0xff] }
 0xe40   :  { %v5915_v46 = vld [vmem:[%s11664_s0 + $0x400] sm:$0xff] }
 0xe41   :  { %7016 = vmatpush1.bf16.msra.mxu0 %v7015_v28  ;;  %7064 = vmatpush1.bf16.msra.mxu1 %v7063_v48  ;;  %v5822_v28 = vld [vmem:[%s11664_s0 + $0x2c8] sm:$0xff]  ;;  %v5824_v48 = vld [vmem:[%s11664_s0 + $0x2d8] sm:$0xff] }
 0xe42   :  { %7018 = vmatprep.subr.bf16.mxu0 %v7017_v26  ;;  %7066 = vmatprep.subr.bf16.mxu1 %v7065_v1  ;;  %v7035_v26 = vpack.c.bf16 %v5819_v37, %v5817_v6  ;;  %v7083_v1 = vpack.c.bf16 %v5870_v50, %v5868_v34  ;;  %v7037_v57 = vpack.c.bf16 %v5824_v48, %v5822_v28  ;;  %v3487_v37 = vrot.slane %v3426_v41, 2  ;;  %v5938_v34 = vld [vmem:[%s11665_s2 + $0x320] sm:$0xff]  ;;  %v5940_v50 = vld [vmem:[%s11665_s2 + $0x330] sm:$0xff]  ;;  %v5892_v28 = vld [vmem:[%s11664_s0 + $0x348] sm:$0xff] }
 0xe43   :  { %v5906_v41 = vld [vmem:[%s11664_s0 + $0x3b8] sm:$0xff] }
 0xe45   :  { %7020 = vmatpush1.bf16.msra.mxu0 %v7019_v60  ;;  %7068 = vmatpush1.bf16.msra.mxu1 %v7067_v61  ;;  %v5826_v60 = vld [vmem:[%s11664_s0 + $0x2e8] sm:$0xff]  ;;  %v5828_v61 = vld [vmem:[%s11664_s0 + $0x2f8] sm:$0xff] }
 0xe46   :  { %7022 = vmatprep.subr.bf16.mxu0 %v7021_v11  ;;  %7070 = vmatprep.subr.bf16.mxu1 %v7069_v12  ;;  %v7039_v11 = vpack.c.bf16 %v5823_v25, %v5821_v54  ;;  %v7087_v12 = vpack.c.bf16 %v5874_v27, %v5872_v59  ;;  %v7041_v35 = vpack.c.bf16 %v5828_v61, %v5826_v60  ;;  %v5891_v25 = vld [vmem:[%s11664_s0 + $0x340] sm:$0xff]  ;;  %v5944_v61 = vld [vmem:[%s11665_s2 + $0x350] sm:$0xff] }
 0xe47   :  { %v7147_v54 = vpack.c.bf16 %v5940_v50, %v5938_v34  ;;  %v7101_v59 = vpack.c.bf16 %v5894_v49, %v5892_v28  ;;  %v5942_v60 = vld [vmem:[%s11665_s2 + $0x340] sm:$0xff]  ;;  %v5910_v34 = vld [vmem:[%s11664_s0 + $0x3d8] sm:$0xff]  ;;  %v5959_v50 = vld [vmem:[%s11665_s2 + $0x3c8] sm:$0xff] }
 0xe48   :  { %v5961_v28 = vld [vmem:[%s11665_s2 + $0x3d8] sm:$0xff] }
 0xe49   :  { %7024 = vmatpush1.bf16.msra.mxu0 %v7023_v62  ;;  %7072 = vmatpush1.bf16.msra.mxu1 %v7071_v44  ;;  %v5884_v62 = vld [vmem:[%s11664_s0 + $0x308] sm:$0xff]  ;;  %v5886_v44 = vld [vmem:[%s11664_s0 + $0x318] sm:$0xff] }
 0xe4a   :  { %7026 = vmatprep.subr.bf16.mxu0 %v7025_v53  ;;  %7074 = vmatprep.subr.bf16.mxu1 %v7073_v13  ;;  %v3424_v53 = vld [vmem:[#allocation2] sm:$0xfc]  ;;  %v7043_v13 = vpack.c.bf16 %v5827_v24, %v5825_v10  ;;  %v7093_v19 = vpack.c.bf16 %v5886_v44, %v5884_v62  ;;  %v5947_v10 = vld [vmem:[%s11665_s2 + $0x368] sm:$0xff]  ;;  %v5949_v24 = vld [vmem:[%s11665_s2 + $0x378] sm:$0xff] }
 0xe4b   :  { %v7153_v44 = vpack.c.bf16 %v5949_v24, %v5947_v10  ;;  %v5962_v24 = vld [vmem:[%s11665_s2 + $0x3e0] sm:$0xff] }
 0xe4d   :  { %7028 = vmatpush1.bf16.msra.mxu0 %v7027_v38  ;;  %7076 = vmatpush1.bf16.msra.mxu1 %v7075_v23  ;;  %v5934_v38 = vld [vmem:[%s11665_s2 + $0x300] sm:$0xff]  ;;  %v3481_v23 = vrot.slane %v3424_v53, 2  ;;  %v5900_v53 = vld [vmem:[%s11664_s0 + $0x388] sm:$0xff] }
 0xe4e   :  { %7030 = vmatprep.subr.bf16.mxu0 %v7029_v45  ;;  %7078 = vmatprep.subr.bf16.mxu1 %v7077_v51  ;;  %v5890_v45 = vld [vmem:[%s11664_s0 + $0x338] sm:$0xff]  ;;  %v3489_v51 = vrot.slane %v3427_v30, 2  ;;  %v7143_v21 = vpack.c.bf16 %v5936_v17, %v5934_v38  ;;  %v5951_v30 = vld [vmem:[%s11665_s2 + $0x388] sm:$0xff]  ;;  %v5901_v38 = vld [vmem:[%s11664_s0 + $0x390] sm:$0xff] }
 0xe4f   :  { %v3483_v6 = vsel %vm1007_vm6, %v3481_v23, %v3482_v42 }
 0xe50   :  { %v3490_v48 = vsel %vm1007_vm6, %v3485_v15, %v3489_v51 }
 0xe51   :  { %7032 = vmatpush1.bf16.msra.mxu0 %v7031_v29  ;;  %7080 = vmatpush1.bf16.msra.mxu1 %v7079_v22  ;;  %v5887_v29 = vld [vmem:[%s11664_s0 + $0x320] sm:$0xff]  ;;  %v5889_v22 = vld [vmem:[%s11664_s0 + $0x330] sm:$0xff] }
 0xe52   :  { %7034 = vmatprep.subr.bf16.mxu0 %v7033_v9  ;;  %7082 = vmatprep.subr.bf16.mxu1 %v7081_v43  ;;  %v7097_v9 = vpack.c.bf16 %v5890_v45, %v5888_v32  ;;  %v7145_v43 = vpack.c.bf16 %v5941_v55, %v5939_v52  ;;  %v7099_v15 = vpack.c.bf16 %v5889_v22, %v5887_v29  ;;  %v5950_v32 = vld [vmem:[%s11665_s2 + $0x380] sm:$0xff]  ;;  %v5952_v45 = vld [vmem:[%s11665_s2 + $0x390] sm:$0xff]  ;;  %v5955_v52 = vld [vmem:[%s11665_s2 + $0x3a8] sm:$0xff] }
 0xe53   :  { %v5957_v55 = vld [vmem:[%s11665_s2 + $0x3b8] sm:$0xff]  ;;  %v5905_v29 = vld [vmem:[%s11664_s0 + $0x3b0] sm:$0xff] }
 0xe55   :  { %7036 = vmatpush1.bf16.msra.mxu0 %v7035_v26  ;;  %7084 = vmatpush1.bf16.msra.mxu1 %v7083_v1  ;;  %v5945_v26 = vld [vmem:[%s11665_s2 + $0x358] sm:$0xff]  ;;  %v3727_v1 = vld [vmem:[#allocation2 + $0x8] sm:$0xf0] }
 0xe56   :  { %7038 = vmatprep.subr.bf16.mxu0 %v7037_v57  ;;  %7086 = vmatprep.subr.bf16.mxu1 %v7085_v58  ;;  %v5893_v57 = vld [vmem:[%s11664_s0 + $0x350] sm:$0xff]  ;;  %v3488_v58 = vsel %vm1007_vm6, %v3482_v42, %v3487_v37  ;;  %v7149_v27 = vpack.c.bf16 %v5945_v26, %v5943_v33  ;;  %v7111_v42 = vpack.c.bf16 %v5901_v38, %v5899_v31  ;;  %v5907_v33 = vld [vmem:[%s11664_s0 + $0x3c0] sm:$0xff]  ;;  %v5971_v31 = vld [vmem:[%s11665_s2 + $0x428] sm:$0xff] }
 0xe57   :  { %v5909_v26 = vld [vmem:[%s11664_s0 + $0x3d0] sm:$0xff]  ;;  %v5973_v38 = vld [vmem:[%s11665_s2 + $0x438] sm:$0xff] }
 0xe59   :  { %7040 = vmatpush1.bf16.msra.mxu0 %v7039_v11  ;;  %7088 = vmatpush1.bf16.msra.mxu1 %v7087_v12  ;;  %v3785_v11 = vrot.slane %v3727_v1, 4  ;;  %v5898_v12 = vld [vmem:[%s11664_s0 + $0x378] sm:$0xff] }
 0xe5a   :  { %7042 = vmatprep.subr.bf16.mxu0 %v7041_v35  ;;  %7090 = vmatprep.subr.bf16.mxu1 %v7089_v36  ;;  %v7103_v35 = vpack.c.bf16 %v5893_v57, %v5891_v25  ;;  %v7151_v36 = vpack.c.bf16 %v5944_v61, %v5942_v60  ;;  %v7105_v62 = vpack.c.bf16 %v5898_v12, %v5896_v63  ;;  %v5960_v25 = vld [vmem:[%s11665_s2 + $0x3d0] sm:$0xff]  ;;  %v5912_v57 = vld [vmem:[%s11664_s0 + $0x3e8] sm:$0xff]  ;;  %v5911_v63 = vld [vmem:[%s11664_s0 + $0x3e0] sm:$0xff] }
 0xe5b   :  { %v7119_v60 = vpack.c.bf16 %v5909_v26, %v5907_v33  ;;  %v5979_v33 = vld [vmem:[%s11665_s2 + $0x468] sm:$0xff]  ;;  %v5981_v26 = vld [vmem:[%s11665_s2 + $0x478] sm:$0xff] }
 0xe5d   :  { %7044 = vmatpush1.bf16.msra.mxu0 %v7043_v13  ;;  %7092 = vmatpush1.bf16.msra.mxu1 %v7091_v4  ;;  %v3787_v13 = vsel %vm1311_vm7, %v3785_v11, %v3786_v2  ;;  %v5902_v4 = vld [vmem:[%s11664_s0 + $0x398] sm:$0xff]  ;;  %v5913_v11 = vld [vmem:[%s11664_s0 + $0x3f0] sm:$0xff] }
 0xe5e   :  { %7094 = vmatprep.subr.bf16.mxu0 %v7093_v19  ;;  %7142 = vmatprep.subr.bf16.mxu1 %v7141_v18  ;;  %v5953_v19 = vld [vmem:[%s11665_s2 + $0x398] sm:$0xff]  ;;  %v7107_v18 = vpack.c.bf16 %v5897_v40, %v5895_v39  ;;  %v7109_v23 = vpack.c.bf16 %v5902_v4, %v5900_v53  ;;  %v5967_v40 = vld [vmem:[%s11665_s2 + $0x408] sm:$0xff]  ;;  %v5917_v53 = vld [vmem:[%s11664_s0 + $0x410] sm:$0xff] }
 0xe5f   :  { %v7157_v17 = vpack.c.bf16 %v5953_v19, %v5951_v30  ;;  %v5918_v39 = vld [vmem:[%s11664_s0 + $0x418] sm:$0xff]  ;;  %v5966_v30 = vld [vmem:[%s11665_s2 + $0x400] sm:$0xff]  ;;  %v5968_v19 = vld [vmem:[%s11665_s2 + $0x410] sm:$0xff] }
 0xe60   :  { %3565 = vmatmul.mubr.f32.vlgmr.msra.gmra.mrb[34].mxu0 %v3483_v6  ;;  %3702 = vmatmul.mubr.f32.vlgmr.msra.gmra.mrb[24].mxu1 %v3483_v6  ;;  %v7161_v6 = vpack.c.bf16 %v5957_v55, %v5955_v52  ;;  %v5970_v52 = vld [vmem:[%s11665_s2 + $0x420] sm:$0xff]  ;;  %v5972_v55 = vld [vmem:[%s11665_s2 + $0x430] sm:$0xff] }
 0xe61   :  { %5830 = vmatprep.mubr.msk.f32.mxu0 %vm254_vm4, %v3490_v48  ;;  %5881 = vmatprep.mubr.msk.f32.mxu1 %vm254_vm4, %v3490_v48 }
 0xe62   :  { %7096 = vmatpush1.bf16.msra.mxu0 %v7095_v20  ;;  %7144 = vmatpush1.bf16.msra.mxu1 %v7143_v21  ;;  %v7159_v20 = vpack.c.bf16 %v5952_v45, %v5950_v32  ;;  %v5903_v21 = vld [vmem:[%s11664_s0 + $0x3a0] sm:$0xff]  ;;  %v5921_v45 = vld [vmem:[%s11664_s0 + $0x430] sm:$0xff] }
 0xe63   :  { %7098 = vmatprep.subr.bf16.mxu0 %v7097_v9  ;;  %7146 = vmatprep.subr.bf16.mxu1 %v7145_v43  ;;  %v5956_v9 = vld [vmem:[%s11665_s2 + $0x3b0] sm:$0xff]  ;;  %v5908_v43 = vld [vmem:[%s11664_s0 + $0x3c8] sm:$0xff]  ;;  %v7115_v48 = vpack.c.bf16 %v5905_v29, %v5903_v21  ;;  %v5919_v32 = vld [vmem:[%s11664_s0 + $0x420] sm:$0xff] }
 0xe64   :  { %3571 = vmatmul.mubr.f32.gmra.mrb[36].mxu0 %v3488_v58  ;;  %3708 = vmatmul.mubr.f32.gmra.mrb[26].mxu1 %v3488_v58  ;;  %v7117_v1 = vpack.c.bf16 %v5910_v34, %v5908_v43  ;;  %v5914_v58 = vld [vmem:[%s11664_s0 + $0x3f8] sm:$0xff]  ;;  %v5975_v21 = vld [vmem:[%s11665_s2 + $0x448] sm:$0xff] }
 0xe65   :  { %5831 = vmatprep.mubr.msk.f32.mxu0 %vm254_vm4, %v3489_v51  ;;  %5882 = vmatprep.mubr.msk.f32.mxu1 %vm254_vm4, %v3489_v51  ;;  %v5904_v51 = vld [vmem:[%s11664_s0 + $0x3a8] sm:$0xff]  ;;  %v7121_v12 = vpack.c.bf16 %v5914_v58, %v5912_v57  ;;  %v5977_v29 = vld [vmem:[%s11665_s2 + $0x458] sm:$0xff]  ;;  %v7185_v57 = vpack.c.bf16 %v5981_v26, %v5979_v33  ;;  %v5929_v58 = vld [vmem:[%s11664_s0 + $0x470] sm:$0xff] }
 0xe66   :  { %7100 = vmatpush1.bf16.msra.mxu0 %v7099_v15  ;;  %7148 = vmatpush1.bf16.msra.mxu1 %v7147_v54  ;;  %v7113_v22 = vpack.c.bf16 %v5906_v41, %v5904_v51  ;;  %v7165_v15 = vpack.c.bf16 %v5961_v28, %v5959_v50  ;;  %v5958_v54 = vld [vmem:[%s11665_s2 + $0x3c0] sm:$0xff]  ;;  %v7177_v41 = vpack.c.bf16 %v5973_v38, %v5971_v31  ;;  %v5976_v28 = vld [vmem:[%s11665_s2 + $0x450] sm:$0xff]  ;;  %v4036_v31 = vld [vmem:[%s11668_s3 + $0x48] sm:$0xff] }
 0xe67   :  { %7102 = vmatprep.subr.bf16.mxu0 %v7101_v59  ;;  %7150 = vmatprep.subr.bf16.mxu1 %v7149_v27  ;;  %v5963_v59 = vld [vmem:[%s11665_s2 + $0x3e8] sm:$0xff]  ;;  %v5965_v27 = vld [vmem:[%s11665_s2 + $0x3f8] sm:$0xff]  ;;  %v7167_v61 = vpack.c.bf16 %v5960_v25, %v5958_v54  ;;  %v7181_v34 = vpack.c.bf16 %v5977_v29, %v5975_v21  ;;  %v5974_v50 = vld [vmem:[%s11665_s2 + $0x440] sm:$0xff] }
 0xe68   :  { %3577 = vmatmul.mubr.f32.gmra.mrb[38].mxu0 %v3487_v37  ;;  %3714 = vmatmul.mubr.f32.gmra.mrb[28].mxu1 %v3487_v37  ;;  %v5954_v37 = vld [vmem:[%s11665_s2 + $0x3a0] sm:$0xff]  ;;  %v7169_v10 = vpack.c.bf16 %v5965_v27, %v5963_v59  ;;  %v5980_v27 = vld [vmem:[%s11665_s2 + $0x470] sm:$0xff]  ;;  %v4044_v21 = vld [vmem:[%s11668_s3 + $0x88] sm:$0xff] }
 0xe69   :  { %5931 = vmatprep.mubr.msk.f32.mxu0 %vm254_vm4, %v3787_v13  ;;  %5982 = vmatprep.mubr.msk.f32.mxu1 %vm254_vm4, %v3787_v13  ;;  %v7163_v49 = vpack.c.bf16 %v5956_v9, %v5954_v37  ;;  %v5923_v37 = vld [vmem:[%s11664_s0 + $0x440] sm:$0xff]  ;;  %v5925_v9 = vld [vmem:[%s11664_s0 + $0x450] sm:$0xff] }
 0xe6a   :  { %7104 = vmatpush1.bf16.msra.mxu0 %v7103_v35  ;;  %7152 = vmatpush1.bf16.msra.mxu1 %v7151_v36  ;;  %v5964_v35 = vld [vmem:[%s11665_s2 + $0x3f0] sm:$0xff]  ;;  %v5916_v36 = vld [vmem:[%s11664_s0 + $0x408] sm:$0xff]  ;;  %v5927_v54 = vld [vmem:[%s11664_s0 + $0x460] sm:$0xff] }
 0xe6b   :  { %7106 = vmatprep.subr.bf16.mxu0 %v7105_v62  ;;  %7154 = vmatprep.subr.bf16.mxu1 %v7153_v44  ;;  %v5969_v62 = vld [vmem:[%s11665_s2 + $0x418] sm:$0xff]  ;;  %v7123_v44 = vpack.c.bf16 %v5913_v11, %v5911_v63  ;;  %v7171_v47 = vpack.c.bf16 %v5964_v35, %v5962_v24  ;;  %v7125_v13 = vpack.c.bf16 %v5918_v39, %v5916_v36  ;;  %v5978_v59 = vld [vmem:[%s11665_s2 + $0x460] sm:$0xff]  ;;  %v3729_v11 = vld [vmem:[#allocation2 + $0x28] sm:$0xff]  ;;  %v3783_v39 = vrot.slane %v10188_v56, 4 }
 0xe6c   :  { %v7173_v4 = vpack.c.bf16 %v5969_v62, %v5967_v40  ;;  %v7187_v63 = vpack.c.bf16 %v5980_v27, %v5978_v59  ;;  %v4028_v24 = vld [vmem:[%s11668_s3 + $0x8] sm:$0xff]  ;;  %v3790_v35 = vrot.slane %v3729_v11, 4  ;;  %v3728_v36 = vld [vmem:[#allocation2 + $0x20] sm:$0xff] }
 0xe6e   :  { %7108 = vmatpush1.bf16.msra.mxu0 %v7107_v18  ;;  %7156 = vmatpush1.bf16.msra.mxu1 %v7155_v16  ;;  %v5920_v18 = vld [vmem:[%s11664_s0 + $0x428] sm:$0xff]  ;;  %v5922_v16 = vld [vmem:[%s11664_s0 + $0x438] sm:$0xff]  ;;  %v3791_v56 = vsel %vm1311_vm7, %v3786_v2, %v3790_v35 }
 0xe6f   :  { %7110 = vmatprep.subr.bf16.mxu0 %v7109_v23  ;;  %7158 = vmatprep.subr.bf16.mxu1 %v7157_v17  ;;  %v7127_v23 = vpack.c.bf16 %v5917_v53, %v5915_v46  ;;  %v7175_v17 = vpack.c.bf16 %v5968_v19, %v5966_v30  ;;  %v7129_v51 = vpack.c.bf16 %v5922_v16, %v5920_v18  ;;  %v4030_v46 = vld [vmem:[%s11668_s3 + $0x18] sm:$0xff]  ;;  %v4033_v30 = vld [vmem:[%s11668_s3 + $0x30] sm:$0xff]  ;;  %v4035_v16 = vld [vmem:[%s11668_s3 + $0x40] sm:$0xff] }
 0xe70   :  { %v4034_v19 = vld [vmem:[%s11668_s3 + $0x38] sm:$0xff]  ;;  %v7202_v38 = vpack.c.bf16 %v4036_v31, %v4035_v16 }
 0xe71   :  { %v7199_v18 = vpack.c.bf16 %v4034_v19, %v4033_v30 }
 0xe72   :  { %7112 = vmatpush1.bf16.msra.mxu0 %v7111_v42  ;;  %7160 = vmatpush1.bf16.msra.mxu1 %v7159_v20  ;;  %v5924_v42 = vld [vmem:[%s11664_s0 + $0x448] sm:$0xff]  ;;  %v5926_v20 = vld [vmem:[%s11664_s0 + $0x458] sm:$0xff] }
 0xe73   :  { %7114 = vmatprep.subr.bf16.mxu0 %v7113_v22  ;;  %7162 = vmatprep.subr.bf16.mxu1 %v7161_v6  ;;  %v7131_v22 = vpack.c.bf16 %v5921_v45, %v5919_v32  ;;  %v7179_v6 = vpack.c.bf16 %v5972_v55, %v5970_v52  ;;  %v7133_v43 = vpack.c.bf16 %v5926_v20, %v5924_v42  ;;  %v4039_v45 = vld [vmem:[%s11668_s3 + $0x60] sm:$0xff]  ;;  %v4041_v52 = vld [vmem:[%s11668_s3 + $0x70] sm:$0xff]  ;;  %v4042_v55 = vld [vmem:[%s11668_s3 + $0x78] sm:$0xff] }
 0xe74   :  { %v7211_v42 = vpack.c.bf16 %v4042_v55, %v4041_v52  ;;  %v4043_v20 = vld [vmem:[%s11668_s3 + $0x80] sm:$0xff] }
 0xe75   :  { %v7214_v29 = vpack.c.bf16 %v4044_v21, %v4043_v20 }
 0xe76   :  { %7116 = vmatpush1.bf16.msra.mxu0 %v7115_v48  ;;  %7164 = vmatpush1.bf16.msra.mxu1 %v7163_v49  ;;  %v5928_v48 = vld [vmem:[%s11664_s0 + $0x468] sm:$0xff]  ;;  %v5930_v49 = vld [vmem:[%s11664_s0 + $0x478] sm:$0xff] }
 0xe77   :  { %7118 = vmatprep.subr.bf16.mxu0 %v7117_v1  ;;  %7166 = vmatprep.subr.bf16.mxu1 %v7165_v15  ;;  %v7135_v1 = vpack.c.bf16 %v5925_v9, %v5923_v37  ;;  %v7183_v15 = vpack.c.bf16 %v5976_v28, %v5974_v50  ;;  %v7137_v25 = vpack.c.bf16 %v5930_v49, %v5928_v48  ;;  %v4048_v9 = vld [vmem:[%s11669_s6 + $0x8] sm:$0xff]  ;;  %v3123_v50 = vld [vmem:[%s11670_s25] sm:$0x3]  ;;  %s11673_s25 = sld [smem:[#allocation17_spill]] }
 0xe78   :  { %v3278_v49 = vrot.slane %v3123_v50, %v7900_v5 }
 0xe7a   :  { %7120 = vmatpush1.bf16.msra.mxu0 %v7119_v60  ;;  %7168 = vmatpush1.bf16.msra.mxu1 %v7167_v61  ;;  %v3726_v60 = vld [vmem:[#allocation2] sm:$0xf0]  ;;  %v7139_v61 = vpack.c.bf16 %v5929_v58, %v5927_v54 }
 0xe7b   :  { %7122 = vmatprep.subr.bf16.mxu0 %v7121_v12  ;;  %7170 = vmatprep.subr.bf16.mxu1 %v7169_v10  ;;  %v3782_v12 = vrot.slane %v3726_v60, 4  ;;  %v4027_v10 = vld [vmem:[%s11668_s3] sm:$0xff] }
 0xe7c   :  { %v7190_v40 = vpack.c.bf16 %v4028_v24, %v4027_v10 }
 0xe7d   :  { %v3784_v62 = vsel %vm1311_vm7, %v3782_v12, %v3783_v39 }
 0xe7e   :  { %7124 = vmatpush1.bf16.msra.mxu0 %v7123_v44  ;;  %7172 = vmatpush1.bf16.msra.mxu1 %v7171_v47  ;;  %v3788_v44 = vrot.slane %v3728_v36, 4  ;;  %v4029_v47 = vld [vmem:[%s11668_s3 + $0x10] sm:$0xff] }
 0xe7f   :  { %7126 = vmatprep.subr.bf16.mxu0 %v7125_v13  ;;  %7174 = vmatprep.subr.bf16.mxu1 %v7173_v4  ;;  %v7193_v53 = vpack.c.bf16 %v4030_v46, %v4029_v47  ;;  %v4031_v4 = vld [vmem:[%s11668_s3 + $0x20] sm:$0xff] }
 0xe80   :  { %v3789_v13 = vsel %vm1311_vm7, %v3783_v39, %v3788_v44  ;;  %v7196_v2 = vpack.c.bf16 %v4032_v0, %v4031_v4 }
 0xe82   :  { %7128 = vmatpush1.bf16.msra.mxu0 %v7127_v23  ;;  %7176 = vmatpush1.bf16.msra.mxu1 %v7175_v17  ;;  %v4037_v23 = vld [vmem:[%s11668_s3 + $0x50] sm:$0xff]  ;;  %v4038_v17 = vld [vmem:[%s11668_s3 + $0x58] sm:$0xff] }
 0xe83   :  { %7130 = vmatprep.subr.bf16.mxu0 %v7129_v51  ;;  %7178 = vmatprep.subr.bf16.mxu1 %v7177_v41  ;;  %v7205_v32 = vpack.c.bf16 %v4038_v17, %v4037_v23  ;;  %v4040_v51 = vld [vmem:[%s11668_s3 + $0x68] sm:$0xff] }
 0xe84   :  { %v7208_v41 = vpack.c.bf16 %v4040_v51, %v4039_v45 }
 0xe86   :  { %7132 = vmatpush1.bf16.msra.mxu0 %v7131_v22  ;;  %7180 = vmatpush1.bf16.msra.mxu1 %v7179_v6  ;;  %v4045_v22 = vld [vmem:[%s11668_s3 + $0x90] sm:$0xff]  ;;  %v4046_v6 = vld [vmem:[%s11668_s3 + $0x98] sm:$0xff] }
 0xe87   :  { %7134 = vmatprep.subr.bf16.mxu0 %v7133_v43  ;;  %7182 = vmatprep.subr.bf16.mxu1 %v7181_v34  ;;  %v7217_v37 = vpack.c.bf16 %v4046_v6, %v4045_v22  ;;  %v4050_v43 = vld [vmem:[%s11669_s6 + $0x18] sm:$0xff] }
 0xe88   :  { %v10887_v34 = vpack.c.bf16 %v4050_v43, %v4048_v9 }
 0xe8a   :  { %7136 = vmatpush1.bf16.msra.mxu0 %v7135_v1  ;;  %7184 = vmatpush1.bf16.msra.mxu1 %v7183_v15  ;;  %v3274_v1 = vrot.slane %v3123_v50, %v7905_v7 }
 0xe8b   :  { %7138 = vmatprep.subr.bf16.mxu0 %v7137_v25  ;;  %7186 = vmatprep.subr.bf16.mxu1 %v7185_v57 }
 0xe8e   :  { %7140 = vmatpush1.bf16.msra.mxu0 %v7139_v61  ;;  %7188 = vmatpush1.bf16.msra.mxu1 %v7187_v63 }
 0xe8f   :  { %7189 = vmatprep.subr.bf16.mxu0 %v7557_v8  ;;  %7227 = vmatprep.subr.bf16.mxu1 %v7557_v8 }
 0xe91   :  { %3866 = vmatmul.mubr.f32.vlgmr.msra.gmra.mrb[34].mxu0 %v3784_v62  ;;  %4003 = vmatmul.mubr.f32.vlgmr.msra.gmra.mrb[24].mxu1 %v3784_v62 }
 0xe92   :  { %5932 = vmatprep.mubr.msk.f32.mxu0 %vm254_vm4, %v3791_v56  ;;  %5983 = vmatprep.mubr.msk.f32.mxu1 %vm254_vm4, %v3791_v56 }
 0xe93   :  { %7191 = vmatpush1.bf16.msra.mxu0 %v7190_v40  ;;  %7229 = vmatpush1.bf16.msra.mxu1 %v7190_v40 }
 0xe94   :  { %7192 = vmatprep.subr.bf16.mxu0 %v7557_v8  ;;  %7230 = vmatprep.subr.bf16.mxu1 %v7557_v8 }
 0xe95   :  { %3872 = vmatmul.mubr.f32.gmra.mrb[36].mxu0 %v3789_v13  ;;  %4009 = vmatmul.mubr.f32.gmra.mrb[26].mxu1 %v3789_v13 }
 0xe96   :  { %5933 = vmatprep.mubr.msk.f32.mxu0 %vm254_vm4, %v3790_v35  ;;  %5984 = vmatprep.mubr.msk.f32.mxu1 %vm254_vm4, %v3790_v35 }
 0xe97   :  { %7194 = vmatpush1.bf16.msra.mxu0 %v7193_v53  ;;  %7232 = vmatpush1.bf16.msra.mxu1 %v7193_v53 }
 0xe98   :  { %7195 = vmatprep.subr.bf16.mxu0 %v7557_v8  ;;  %7233 = vmatprep.subr.bf16.mxu1 %v7557_v8 }
 0xe99   :  { %3878 = vmatmul.mubr.f32.gmra.mrb[38].mxu0 %v3788_v44  ;;  %4015 = vmatmul.mubr.f32.gmra.mrb[28].mxu1 %v3788_v44 }
 0xe9b   :  { %7197 = vmatpush1.bf16.msra.mxu0 %v7196_v2  ;;  %7235 = vmatpush1.bf16.msra.mxu1 %v7196_v2 }
 0xe9c   :  { %7198 = vmatprep.subr.bf16.mxu0 %v7557_v8  ;;  %7236 = vmatprep.subr.bf16.mxu1 %v7557_v8 }
 0xe9f   :  { %7200 = vmatpush1.bf16.msra.mxu0 %v7199_v18  ;;  %7238 = vmatpush1.bf16.msra.mxu1 %v7199_v18 }
 0xea0   :  { %7201 = vmatprep.subr.bf16.mxu0 %v7557_v8  ;;  %7239 = vmatprep.subr.bf16.mxu1 %v7557_v8 }
 0xea3   :  { %7203 = vmatpush1.bf16.msra.mxu0 %v7202_v38  ;;  %7241 = vmatpush1.bf16.msra.mxu1 %v7202_v38 }
 0xea4   :  { %7204 = vmatprep.subr.bf16.mxu0 %v7557_v8  ;;  %7242 = vmatprep.subr.bf16.mxu1 %v7557_v8 }
 0xea7   :  { %7206 = vmatpush1.bf16.msra.mxu0 %v7205_v32  ;;  %7244 = vmatpush1.bf16.msra.mxu1 %v7205_v32 }
 0xea8   :  { %7207 = vmatprep.subr.bf16.mxu0 %v7557_v8  ;;  %7245 = vmatprep.subr.bf16.mxu1 %v7557_v8 }
 0xeab   :  { %7209 = vmatpush1.bf16.msra.mxu0 %v7208_v41  ;;  %7247 = vmatpush1.bf16.msra.mxu1 %v7208_v41 }
 0xeac   :  { %7210 = vmatprep.subr.bf16.mxu0 %v7557_v8  ;;  %7248 = vmatprep.subr.bf16.mxu1 %v7557_v8 }
 0xeaf   :  { %7212 = vmatpush1.bf16.msra.mxu0 %v7211_v42  ;;  %7250 = vmatpush1.bf16.msra.mxu1 %v7211_v42 }
 0xeb0   :  { %7213 = vmatprep.subr.bf16.mxu0 %v7557_v8  ;;  %7251 = vmatprep.subr.bf16.mxu1 %v7557_v8 }
 0xeb3   :  { %7215 = vmatpush1.bf16.msra.mxu0 %v7214_v29  ;;  %7253 = vmatpush1.bf16.msra.mxu1 %v7214_v29 }
 0xeb4   :  { %7216 = vmatprep.subr.bf16.mxu0 %v7557_v8  ;;  %7254 = vmatprep.subr.bf16.mxu1 %v7557_v8 }
 0xeb7   :  { %7218 = vmatpush1.bf16.msra.mxu0 %v7217_v37  ;;  %7256 = vmatpush1.bf16.msra.mxu1 %v7217_v37 }
 0xeb8   :  { %7295 = vmatprep.subr.bf16.mxu1 %v7557_v8  ;;  %7220 = vmatprep.subr.bf16.mxu0 %v10887_v34 }
 0xf64   :  { %v3867_v28 = vpop.f32.mrb[34].mxu0  ;;  %v4004_v48 = vpop.f32.mrb[24].mxu1 }
 0xf65   :  { %v3869_v33 = vpop.f32.mrb[35].mxu0  ;;  %v4006_v26 = vpop.f32.mrb[25].mxu1  ;;  %v10908_v11 = vadd.f32 %v3867_v28, %v3274_v1  ;;  %v10910_v12 = vadd.f32 %v4004_v48, %v3274_v1 }
 0xf66   :  { %v10896_v25 = vadd.f32 %v3869_v33, %v3278_v49  ;;  %v10898_v57 = vadd.f32 %v4006_v26, %v3278_v49 }
 0xf68   :  { %v3873_v15 = vpop.f32.mrb[36].mxu0  ;;  %v4010_v54 = vpop.f32.mrb[26].mxu1  ;;  %v4066_v39 = vsel %vm1597_vm8, %v10896_v25, 0.0  ;;  %v4086_v40 = vsel %vm1597_vm8, %v10898_v57, 0.0 }
 0xf69   :  { %v3875_v58 = vpop.f32.mrb[37].mxu0  ;;  %v4012_v59 = vpop.f32.mrb[27].mxu1  ;;  %v10900_v27 = vadd.f32 %v3873_v15, %v3274_v1  ;;  %v10902_v60 = vadd.f32 %v4010_v54, %v3274_v1  ;;  %v4047_v15 = vld [vmem:[%s11669_s6] sm:$0xff]  ;;  %v4049_v54 = vld [vmem:[%s11669_s6 + $0x10] sm:$0xff] }
 0xf6a   :  { %v10904_v61 = vadd.f32 %v3875_v58, %v3278_v49  ;;  %v10906_v63 = vadd.f32 %v4012_v59, %v3278_v49 }
 0xf6b   :  { %v4057_v56 = vadd.f32 %v10900_v27, %v10908_v11  ;;  %v4077_v53 = vadd.f32 %v10902_v60, %v10910_v12 }
 0xf6c   :  { %v4067_v10 = vsel %vm1597_vm8, %v10904_v61, 0.0  ;;  %v4087_v24 = vsel %vm1597_vm8, %v10906_v63, 0.0  ;;  %v3879_v35 = vpop.f32.mrb[38].mxu0  ;;  %v4016_v36 = vpop.f32.mrb[28].mxu1 }
 0xf6d   :  { %v10920_v62 = vadd.f32 %v3879_v35, %v3274_v1  ;;  %v10922_v44 = vadd.f32 %v4016_v36, %v3274_v1  ;;  %v3881_v47 = vpop.f32.mrb[39].mxu0  ;;  %v4018_v46 = vpop.f32.mrb[29].mxu1  ;;  %v4068_v0 = vadd.f32 %v4067_v10, %v4066_v39  ;;  %v4088_v2 = vadd.f32 %v4087_v24, %v4086_v40  ;;  %v4052_v10 = vld [vmem:[%s11669_s6 + $0x28] sm:$0xff]  ;;  %v4054_v24 = vld [vmem:[%s11669_s6 + $0x38] sm:$0xff] }
 0xf6e   :  { %v10928_v13 = vadd.f32 %v3881_v47, %v3278_v49  ;;  %v10930_v4 = vadd.f32 %v4018_v46, %v3278_v49  ;;  %v7221_v36 = vpack.c.bf16 %v4049_v54, %v4047_v15  ;;  %v7223_v40 = vpack.c.bf16 %v4054_v24, %v4052_v10  ;;  %v4051_v47 = vld [vmem:[%s11669_s6 + $0x20] sm:$0xff]  ;;  %v4053_v46 = vld [vmem:[%s11669_s6 + $0x30] sm:$0xff]  ;;  %s7560_s6 = smov 127  }
 0xf6f   :  { %v4058_v30 = vsel %vm1311_vm7, %v10920_v62, 0.0  ;;  %v4078_v19 = vsel %vm1311_vm7, %v10922_v44, 0.0 }
 0xf70   :  { %v4059_v18 = vadd.f32 %v4058_v30, %v4057_v56  ;;  %v4079_v16 = vadd.f32 %v4078_v19, %v4077_v53  ;;  %v4069_v31 = vsel %vm1601_vm9, %v10928_v13, 0.0  ;;  %v4089_v38 = vsel %vm1601_vm9, %v10930_v4, 0.0 }
 0xf71   :  { %v4070_v23 = vadd.f32 %v4069_v31, %v4068_v0  ;;  %v4090_v17 = vadd.f32 %v4089_v38, %v4088_v2  ;;  %v7225_v56 = vpack.c.bf16 %v4053_v46, %v4051_v47 }
 0xf72   :  { %v4060_v32 = vrot.slane %v4059_v18, 4  ;;  %v4080_v45 = vrot.slane %v4079_v16, 4 }
 0xf73   :  { %v4071_v51 = vrot.slane %v4070_v23, 4  ;;  %v4091_v41 = vrot.slane %v4090_v17, 4 }
 0xf74   :  { %v4061_v52 = vadd.f32 %v4060_v32, %v4059_v18  ;;  %v4081_v55 = vadd.f32 %v4080_v45, %v4079_v16 }
 0xf75   :  { %v4072_v42 = vadd.f32 %v4071_v51, %v4070_v23  ;;  %v4092_v20 = vadd.f32 %v4091_v41, %v4090_v17 }
 0xf76   :  { %v4062_v21 = vrot.slane %v4061_v52, 2  ;;  %v4082_v29 = vrot.slane %v4081_v55, 2 }
 0xf77   :  { %v4073_v22 = vrot.slane %v4072_v42, 2  ;;  %v4093_v6 = vrot.slane %v4092_v20, 2 }
 0xf78   :  { %v4063_v37 = vadd.f32 %v4062_v21, %v4061_v52  ;;  %v4083_v9 = vadd.f32 %v4082_v29, %v4081_v55 }
 0xf79   :  { %v4074_v43 = vadd.f32 %v4073_v22, %v4072_v42  ;;  %v4094_v50 = vadd.f32 %v4093_v6, %v4092_v20 }
 0xf7a   :  { %v4064_v28 = vrot.slane %v4063_v37, 1  ;;  %v4084_v48 = vrot.slane %v4083_v9, 1 }
 0xf7b   :  { %v4075_v49 = vrot.slane %v4074_v43, 1  ;;  %v4095_v33 = vrot.slane %v4094_v50, 1 }
 0xf7c   :  { %v4065_v26 = vadd.f32 %v4064_v28, %v4063_v37  ;;  %v4085_v1 = vadd.f32 %v4084_v48, %v4083_v9 }
 0xf7d   :  { %v4076_v58 = vadd.f32 %v4075_v49, %v4074_v43  ;;  %v4096_v59 = vadd.f32 %v4095_v33, %v4094_v50 }
 0xf7e   :  { %v4097_v39 = vadd.f32 %v4085_v1, %v4065_v26 }
 0xf7f   :  { %v4098_v35 = vadd.f32 %v4096_v59, %v4076_v58 }
 0xf81   :  { %5985 = vmatprep.mubr.msk.f32.mxu0 %vm1597_vm8, %v4098_v35 }
 0xf82   :  { %4167 = vmatmul.mubr.f32.vlgmr.msra.gmra.mrb[40].mxu0 %v4097_v39 }
 0xf83   :  { %7222 = vmatpush1.bf16.msra.mxu0 %v7221_v36  ;;  %4240 = vmatprep.mubr.f32.mxu0 %v7556_v3 }
 0xf84   :  { %7224 = vmatprep.subr.bf16.mxu0 %v7223_v40 }
 0xf87   :  { %7226 = vmatpush1.bf16.msra.mxu0 %v7225_v56 }
 0xf88   :  { %7258 = vmatprep.subr.bf16.mxu0 %v10887_v34 }
0x1055   :  { %v4168_v53 = vpop.f32.mrb[40].mxu0 }
0x1056   :  { %v4172_v0 = vmul.f32 0.005, %v4168_v53  ;;  %v4170_v2 = vpop.f32.mrb[41].mxu0 }
0x1058   :  { %5986 = vmatmul.mubr.msk.f32.vlgmr.msra.gmra.mrb[42].mxu0 %vm1597_vm8, %v4172_v0 }
0x1059   :  { %7260 = vmatpush1.bf16.msra.mxu0 %v7221_v36  ;;  %4465 = vmatprep.mubr.f32.mxu0 %v7556_v3 }
0x105a   :  { %7262 = vmatprep.subr.bf16.mxu0 %v7223_v40 }
0x105d   :  { %7264 = vmatpush1.bf16.msra.mxu0 %v7225_v56 }
0x105e   :  { %7265 = vmatprep.subr.bf16.mxu0 %v7557_v8 }
0x112b   :  { %v4242_v30 = vpop.f32.mrb[42].mxu0 }
0x112c   :  { %v4250_v19 = vrot.slane %v4242_v30, %v7905_v7  ;;  %v4244_v18 = vpop.f32.mrb[43].mxu0 }
0x112d   :  { %v4254_v16 = vrot.slane %v4244_v18, %v7905_v7 }
0x112e   :  { %v10967_v34 = vsub.f32 %v10908_v11, %v4250_v19  ;;  %v10970_v31 = vsub.f32 %v10900_v27, %v4250_v19  ;;  %v10973_v38 = vsub.f32 %v10920_v62, %v4250_v19  ;;  %v10976_v23 = vsub.f32 %v10910_v12, %v4250_v19 }
0x112f   :  { %v10979_v17 = vsub.f32 %v10902_v60, %v4250_v19  ;;  %v10982_v32 = vsub.f32 %v10922_v44, %v4250_v19  ;;  %v10985_v45 = vsub.f32 %v10896_v25, %v4254_v16  ;;  %v10988_v11 = vsub.f32 %v10904_v61, %v4254_v16 }
0x1130   :  { %v4267_v27 = vmul.f32 %v10967_v34, %v10967_v34  ;;  %v4269_v62 = vmul.f32 %v10970_v31, %v10970_v31  ;;  %v4271_v12 = vmul.f32 %v10973_v38, %v10973_v38  ;;  %v4293_v60 = vmul.f32 %v10976_v23, %v10976_v23 }
0x1131   :  { %v4295_v44 = vmul.f32 %v10979_v17, %v10979_v17  ;;  %v4297_v25 = vmul.f32 %v10982_v32, %v10982_v32  ;;  %v11003_v61 = vsub.f32 %v10928_v13, %v4254_v16  ;;  %v11006_v51 = vsub.f32 %v10898_v57, %v4254_v16 }
0x1132   :  { %v11009_v41 = vsub.f32 %v10906_v63, %v4254_v16  ;;  %v11012_v52 = vsub.f32 %v10930_v4, %v4254_v16  ;;  %v4268_v55 = vmul.f32 %v10985_v45, %v10985_v45  ;;  %v4270_v42 = vmul.f32 %v10988_v11, %v10988_v11 }
0x1133   :  { %v4272_v20 = vmul.f32 %v11003_v61, %v11003_v61  ;;  %v4294_v13 = vmul.f32 %v11006_v51, %v11006_v51  ;;  %v4273_v57 = vadd.f32 %v4269_v62, %v4267_v27  ;;  %v4274_v21 = vsel %vm1311_vm7, %v4271_v12, 0.0 }
0x1134   :  { %v4282_v63 = vsel %vm1597_vm8, %v4268_v55, 0.0  ;;  %v4283_v4 = vsel %vm1597_vm8, %v4270_v42, 0.0  ;;  %v4296_v29 = vmul.f32 %v11009_v41, %v11009_v41  ;;  %v4298_v22 = vmul.f32 %v11012_v52, %v11012_v52  ;;  %v6010_v42 = vld [vmem:[%s11671_s26 + $0x3c0] sm:$0xff] }
0x1135   :  { %v4284_v6 = vadd.f32 %v4283_v4, %v4282_v63  ;;  %v4308_v37 = vsel %vm1597_vm8, %v4294_v13, 0.0  ;;  %v4275_v9 = vadd.f32 %v4274_v21, %v4273_v57  ;;  %v4285_v43 = vsel %vm1601_vm9, %v4272_v20, 0.0  ;;  %v6011_v20 = vld [vmem:[%s11671_s26 + $0x3c8] sm:$0xff]  ;;  %v6012_v57 = vld [vmem:[%s11671_s26 + $0x3d0] sm:$0xff]  ;;  %v6013_v21 = vld [vmem:[%s11671_s26 + $0x3d8] sm:$0xff] }
0x1136   :  { %v4309_v50 = vsel %vm1597_vm8, %v4296_v29, 0.0  ;;  %v4299_v28 = vadd.f32 %v4295_v44, %v4293_v60  ;;  %v4300_v48 = vsel %vm1311_vm7, %v4297_v25, 0.0  ;;  %v4311_v1 = vsel %vm1601_vm9, %v4298_v22, 0.0  ;;  %v6014_v4 = vld [vmem:[%s11671_s26 + $0x3e0] sm:$0xff]  ;;  %v6015_v29 = vld [vmem:[%s11671_s26 + $0x3e8] sm:$0xff] }
0x1137   :  { %v4286_v49 = vadd.f32 %v4285_v43, %v4284_v6  ;;  %v4310_v33 = vadd.f32 %v4309_v50, %v4308_v37  ;;  %v4276_v26 = vrot.slane %v4275_v9, 4  ;;  %v7296_v13 = vpack.c.bf16 %v6011_v20, %v6010_v42  ;;  %v6016_v6 = vld [vmem:[%s11671_s26 + $0x3f0] sm:$0xff]  ;;  %v6017_v37 = vld [vmem:[%s11671_s26 + $0x3f8] sm:$0xff]  ;;  %v6018_v43 = vld [vmem:[%s11671_s26 + $0x400] sm:$0xff] }
0x1138   :  { %v4301_v15 = vadd.f32 %v4300_v48, %v4299_v28  ;;  %v7299_v63 = vpack.c.bf16 %v6013_v21, %v6012_v57  ;;  %v7302_v22 = vpack.c.bf16 %v6015_v29, %v6014_v4  ;;  %v6019_v50 = vld [vmem:[%s11671_s26 + $0x408] sm:$0xff]  ;;  %v6020_v48 = vld [vmem:[%s11671_s26 + $0x410] sm:$0xff]  ;;  %v6004_v57 = vld [vmem:[%s11671_s26 + $0x398] sm:$0xff] }
0x1139   :  { %v4287_v54 = vrot.slane %v4286_v49, 4  ;;  %v4312_v58 = vadd.f32 %v4311_v1, %v4310_v33  ;;  %v4277_v59 = vadd.f32 %v4276_v26, %v4275_v9  ;;  %v7305_v9 = vpack.c.bf16 %v6017_v37, %v6016_v6  ;;  %v6023_v42 = vld [vmem:[%s11671_s26 + $0x428] sm:$0xff]  ;;  %v6024_v21 = vld [vmem:[%s11671_s26 + $0x430] sm:$0xff]  ;;  %v6025_v4 = vld [vmem:[%s11671_s26 + $0x438] sm:$0xff] }
0x113a   :  { %v4302_v10 = vrot.slane %v4301_v15, 4  ;;  %v7308_v28 = vpack.c.bf16 %v6019_v50, %v6018_v43  ;;  %v6005_v29 = vld [vmem:[%s11671_s26 + $0x3a0] sm:$0xff]  ;;  %v7317_v6 = vpack.c.bf16 %v6025_v4, %v6024_v21  ;;  %v6007_v50 = vld [vmem:[%s11671_s26 + $0x3b0] sm:$0xff] }
0x113b   :  { %v4288_v24 = vadd.f32 %v4287_v54, %v4286_v49  ;;  %v4313_v35 = vrot.slane %v4312_v58, 4  ;;  %v4278_v36 = vrot.slane %v4277_v59, 2  ;;  %v6021_v49 = vld [vmem:[%s11671_s26 + $0x418] sm:$0xff]  ;;  %v6026_v37 = vld [vmem:[%s11671_s26 + $0x440] sm:$0xff] }
0x113c   :  { %v4303_v39 = vadd.f32 %v4302_v10, %v4301_v15  ;;  %v7311_v33 = vpack.c.bf16 %v6021_v49, %v6020_v48  ;;  %v4055_v10 = vld [vmem:[%s11605_s10] sm:$0x1]  ;;  %v6028_v49 = vld [vmem:[%s11671_s26 + $0x450] sm:$0xff]  ;;  %s11674_s10 = sld [smem:[#allocation18_spill]] }
0x113d   :  { %v4289_v40 = vrot.slane %v4288_v24, 2  ;;  %v4314_v47 = vadd.f32 %v4313_v35, %v4312_v58  ;;  %v4279_v46 = vadd.f32 %v4278_v36, %v4277_v59  ;;  %v5989_v58 = vld [vmem:[%s11671_s26 + $0x320] sm:$0xff]  ;;  %v5990_v59 = vld [vmem:[%s11671_s26 + $0x328] sm:$0xff] }
0x113e   :  { %v4304_v56 = vrot.slane %v4303_v39, 2  ;;  %v7266_v35 = vpack.c.bf16 %v5990_v59, %v5989_v58 }
0x113f   :  { %v4290_v53 = vadd.f32 %v4289_v40, %v4288_v24  ;;  %v4315_v0 = vrot.slane %v4314_v47, 2  ;;  %v4280_v2 = vrot.slane %v4279_v46, 1  ;;  %v5992_v40 = vld [vmem:[%s11671_s26 + $0x338] sm:$0xff] }
0x1140   :  { %v4305_v30 = vadd.f32 %v4304_v56, %v4303_v39  ;;  %v5991_v39 = vld [vmem:[%s11671_s26 + $0x330] sm:$0xff]  ;;  %v5994_v56 = vld [vmem:[%s11671_s26 + $0x348] sm:$0xff] }
0x1141   :  { %v4291_v19 = vrot.slane %v4290_v53, 1  ;;  %v4316_v18 = vadd.f32 %v4315_v0, %v4314_v47  ;;  %v4281_v12 = vadd.f32 %v4280_v2, %v4279_v46  ;;  %v7269_v47 = vpack.c.bf16 %v5992_v40, %v5991_v39  ;;  %v5993_v46 = vld [vmem:[%s11671_s26 + $0x340] sm:$0xff]  ;;  %v5995_v0 = vld [vmem:[%s11671_s26 + $0x350] sm:$0xff]  ;;  %v5996_v2 = vld [vmem:[%s11671_s26 + $0x358] sm:$0xff] }
0x1142   :  { %v4306_v16 = vrot.slane %v4305_v30, 1 }
0x1143   :  { %v4292_v27 = vadd.f32 %v4291_v19, %v4290_v53  ;;  %v4317_v62 = vrot.slane %v4316_v18, 1  ;;  %v7272_v53 = vpack.c.bf16 %v5994_v56, %v5993_v46  ;;  %v5997_v19 = vld [vmem:[%s11671_s26 + $0x360] sm:$0xff] }
0x1144   :  { %v4307_v60 = vadd.f32 %v4306_v16, %v4305_v30  ;;  %v7275_v30 = vpack.c.bf16 %v5996_v2, %v5995_v0 }
0x1145   :  { %v4318_v44 = vadd.f32 %v4317_v62, %v4316_v18  ;;  %v5998_v18 = vld [vmem:[%s11671_s26 + $0x368] sm:$0xff]  ;;  %v6000_v62 = vld [vmem:[%s11671_s26 + $0x378] sm:$0xff] }
0x1146   :  { %v4319_v55 = vadd.f32 %v4307_v60, %v4281_v12  ;;  %v7278_v16 = vpack.c.bf16 %v5998_v18, %v5997_v19  ;;  %v6001_v60 = vld [vmem:[%s11671_s26 + $0x380] sm:$0xff] }
0x1147   :  { %v4320_v25 = vadd.f32 %v4318_v44, %v4292_v27  ;;  %v5999_v27 = vld [vmem:[%s11671_s26 + $0x370] sm:$0xff]  ;;  %v6002_v44 = vld [vmem:[%s11671_s26 + $0x388] sm:$0xff] }
0x1148   :  { %v7281_v12 = vpack.c.bf16 %v6000_v62, %v5999_v27 }
0x1149   :  { %5987 = vmatprep.mubr.msk.f32.mxu1 %vm1597_vm8, %v4320_v25  ;;  %v7284_v25 = vpack.c.bf16 %v6002_v44, %v6001_v60  ;;  %v6031_v44 = vld [vmem:[%s11671_s26 + $0x460] sm:$0xff] }
0x114a   :  { %4389 = vmatmul.mubr.f32.vlgmr.msra.gmra.mrb[30].mxu1 %v4319_v55  ;;  %v6022_v55 = vld [vmem:[%s11671_s26 + $0x420] sm:$0xff] }
0x114b   :  { %7297 = vmatpush1.bf16.msra.mxu1 %v7296_v13  ;;  %v7314_v20 = vpack.c.bf16 %v6023_v42, %v6022_v55  ;;  %v6003_v13 = vld [vmem:[%s11671_s26 + $0x390] sm:$0xff] }
0x114c   :  { %7298 = vmatprep.subr.bf16.mxu1 %v7557_v8 }
0x114f   :  { %7300 = vmatpush1.bf16.msra.mxu1 %v7299_v63  ;;  %v7287_v63 = vpack.c.bf16 %v6004_v57, %v6003_v13 }
0x1150   :  { %7301 = vmatprep.subr.bf16.mxu1 %v7557_v8 }
0x1153   :  { %7303 = vmatpush1.bf16.msra.mxu1 %v7302_v22  ;;  %v6006_v22 = vld [vmem:[%s11671_s26 + $0x3a8] sm:$0xff] }
0x1154   :  { %7304 = vmatprep.subr.bf16.mxu1 %v7557_v8  ;;  %v7290_v43 = vpack.c.bf16 %v6006_v22, %v6005_v29 }
0x1157   :  { %7306 = vmatpush1.bf16.msra.mxu1 %v7305_v9  ;;  %v6027_v9 = vld [vmem:[%s11671_s26 + $0x448] sm:$0xff] }
0x1158   :  { %7307 = vmatprep.subr.bf16.mxu1 %v7557_v8  ;;  %v7320_v48 = vpack.c.bf16 %v6027_v9, %v6026_v37  ;;  %v6034_v37 = vld [vmem:[%s11671_s26 + $0x478] sm:$0xff] }
0x115b   :  { %7309 = vmatpush1.bf16.msra.mxu1 %v7308_v28  ;;  %v6008_v28 = vld [vmem:[%s11671_s26 + $0x3b8] sm:$0xff] }
0x115c   :  { %7310 = vmatprep.subr.bf16.mxu1 %v7557_v8 }
0x115f   :  { %7312 = vmatpush1.bf16.msra.mxu1 %v7311_v33  ;;  %v6029_v33 = vld [vmem:[%s11671_s26 + $0x458] sm:$0xff] }
0x1160   :  { %7313 = vmatprep.subr.bf16.mxu1 %v7557_v8 }
0x1163   :  { %7315 = vmatpush1.bf16.msra.mxu1 %v7314_v20 }
0x1164   :  { %7316 = vmatprep.subr.bf16.mxu1 %v7557_v8 }
0x1167   :  { %7318 = vmatpush1.bf16.msra.mxu1 %v7317_v6  ;;  %v6033_v6 = vld [vmem:[%s11671_s26 + $0x470] sm:$0xff] }
0x1168   :  { %7319 = vmatprep.subr.bf16.mxu1 %v7557_v8 }
0x116b   :  { %7321 = vmatpush1.bf16.msra.mxu1 %v7320_v48  ;;  %v6054_v48 = vld [vmem:[%s11671_s26 + $0x510] sm:$0xff] }
0x116c   :  { %7322 = vmatprep.subr.bf16.mxu1 %v7557_v8 }
0x121d   :  { %v4390_v26 = vpop.f32.mrb[30].mxu1 }
0x121e   :  { %v4394_v1 = vmul.f32 0.005, %v4390_v26  ;;  %v4392_v15 = vpop.f32.mrb[31].mxu1  ;;  %v7293_v26 = vpack.c.bf16 %v6008_v28, %v6007_v50 }
0x121f   :  { %v4056_v15 = vld [vmem:[%s11606_s11] sm:$0x3] }
0x1220   :  { %v4395_v54 = vadd.f32 1e-05, %v4394_v1  ;;  %v7323_v1 = vpack.c.bf16 %v6029_v33, %v6028_v49  ;;  %v6055_v49 = vld [vmem:[%s11671_s26 + $0x518] sm:$0xff]  ;;  %v7329_v33 = vpack.c.bf16 %v6034_v37, %v6033_v6  ;;  %v6068_v37 = vld [vmem:[%s11671_s26 + $0x580] sm:$0xff] }
0x1222   :  { %7540 = vrsqrt.f32 %v4395_v54  ;;  %7324 = vmatpush1.bf16.msra.mxu1 %v7323_v1  ;;  %v6035_v1 = vld [vmem:[%s11671_s26 + $0x480] sm:$0xff] }
0x1223   :  { %7355 = vmatprep.subr.bf16.mxu1 %v7557_v8 }
0x122c   :  { %v7541_v24 = vpop.eup %7540 }
0x122d   :  { %v4397_v36 = vmul.f32 %v7541_v24, %v4055_v10  ;;  %v11186_v10 = vrot.slane %v4056_v15, %v7905_v7 }
0x122f   :  { %5988 = vmatmul.mubr.msk.f32.vlgmr.msra.gmra.mrb[44].mxu0 %vm1597_vm8, %v4397_v36 }
0x1230   :  { %7267 = vmatpush1.bf16.msra.mxu0 %v7266_v35  ;;  %v11192_v35 = vrot.slane %v4056_v15, %v7900_v5  ;;  %v6036_v15 = vld [vmem:[%s11671_s26 + $0x488] sm:$0xff] }
0x1231   :  { %7268 = vmatprep.subr.bf16.mxu0 %v7557_v8 }
0x1234   :  { %7270 = vmatpush1.bf16.msra.mxu0 %v7269_v47 }
0x1235   :  { %7271 = vmatprep.subr.bf16.mxu0 %v7557_v8 }
0x1238   :  { %7273 = vmatpush1.bf16.msra.mxu0 %v7272_v53 }
0x1239   :  { %7274 = vmatprep.subr.bf16.mxu0 %v7557_v8 }
0x123c   :  { %7276 = vmatpush1.bf16.msra.mxu0 %v7275_v30 }
0x123d   :  { %7277 = vmatprep.subr.bf16.mxu0 %v7557_v8 }
0x1240   :  { %7279 = vmatpush1.bf16.msra.mxu0 %v7278_v16 }
0x1241   :  { %7280 = vmatprep.subr.bf16.mxu0 %v7557_v8 }
0x1244   :  { %7282 = vmatpush1.bf16.msra.mxu0 %v7281_v12 }
0x1245   :  { %7283 = vmatprep.subr.bf16.mxu0 %v7557_v8 }
0x1248   :  { %7285 = vmatpush1.bf16.msra.mxu0 %v7284_v25  ;;  %v6032_v25 = vld [vmem:[%s11671_s26 + $0x468] sm:$0xff] }
0x1249   :  { %7286 = vmatprep.subr.bf16.mxu0 %v7557_v8 }
0x124c   :  { %7288 = vmatpush1.bf16.msra.mxu0 %v7287_v63  ;;  %v7326_v63 = vpack.c.bf16 %v6032_v25, %v6031_v44  ;;  %v6065_v25 = vld [vmem:[%s11671_s26 + $0x568] sm:$0xff] }
0x124d   :  { %7289 = vmatprep.subr.bf16.mxu0 %v7557_v8 }
0x1250   :  { %7291 = vmatpush1.bf16.msra.mxu0 %v7290_v43 }
0x1251   :  { %7292 = vmatprep.subr.bf16.mxu0 %v7557_v8 }
0x1254   :  { %7294 = vmatpush1.bf16.msra.mxu0 %v7293_v26 }
0x1255   :  { %7325 = vmatprep.subr.bf16.mxu0 %v7557_v8 }
0x1302   :  { %v4467_v54 = vpop.f32.mrb[44].mxu0 }
0x1303   :  { %v11183_v58 = vrot.slane %v4467_v54, %v7905_v7  ;;  %v4469_v59 = vpop.f32.mrb[45].mxu0  ;;  %v7359_v54 = vpack.c.bf16 %v6055_v49, %v6054_v48  ;;  %v6049_v48 = vld [vmem:[%s11671_s26 + $0x4f0] sm:$0xff]  ;;  %v6050_v49 = vld [vmem:[%s11671_s26 + $0x4f8] sm:$0xff] }
0x1304   :  { %v11189_v24 = vrot.slane %v4469_v59, %v7905_v7  ;;  %v6056_v59 = vld [vmem:[%s11671_s26 + $0x520] sm:$0xff] }
0x1305   :  { %v4480_v36 = vmul.f32 %v11183_v58, %v10967_v34  ;;  %v4509_v39 = vmul.f32 %v11183_v58, %v10976_v23  ;;  %v4484_v62 = vmul.f32 %v11183_v58, %v10973_v38  ;;  %v4513_v12 = vmul.f32 %v11183_v58, %v10982_v32  ;;  %v6052_v38 = vld [vmem:[%s11671_s26 + $0x500] sm:$0xff]  ;;  %v6053_v32 = vld [vmem:[%s11671_s26 + $0x508] sm:$0xff] }
0x1306   :  { %v4481_v40 = vmul.f32 %v11189_v24, %v10985_v45  ;;  %v4510_v47 = vmul.f32 %v11189_v24, %v11006_v51  ;;  %v4483_v46 = vmul.f32 %v11189_v24, %v10988_v11  ;;  %v4512_v56 = vmul.f32 %v11189_v24, %v11009_v41 }
0x1307   :  { %v4497_v5 = vadd.f32 %v11186_v10, %v4480_v36  ;;  %v4515_v53 = vadd.f32 %v4509_v39, %v11186_v10  ;;  %v4501_v20 = vadd.f32 %v11186_v10, %v4484_v62  ;;  %v4519_v13 = vadd.f32 %v4513_v12, %v11186_v10  ;;  %v6057_v36 = vld [vmem:[%s11671_s26 + $0x528] sm:$0xff]  ;;  %v6043_v12 = vld [vmem:[%s11671_s26 + $0x4c0] sm:$0xff] }
0x1308   :  { %v4498_v34 = vadd.f32 %v11192_v35, %v4481_v40  ;;  %v4516_v23 = vadd.f32 %v4510_v47, %v11192_v35  ;;  %v4500_v0 = vadd.f32 %v11192_v35, %v4483_v46  ;;  %v4518_v45 = vadd.f32 %v4512_v56, %v11192_v35  ;;  %v6037_v40 = vld [vmem:[%s11671_s26 + $0x490] sm:$0xff]  ;;  %v6038_v47 = vld [vmem:[%s11671_s26 + $0x498] sm:$0xff] }
0x1309   :  { %v4503_v2 = vmax.f32 %v4497_v5, 0.0  ;;  %v4521_v51 = vmax.f32 %v4515_v53, 0.0  ;;  %v4507_v4 = vmax.f32 %v4501_v20, 0.0  ;;  %v4525_v29 = vmax.f32 %v4519_v13, 0.0  ;;  %v6058_v56 = vld [vmem:[%s11671_s26 + $0x530] sm:$0xff]  ;;  %v6059_v5 = vld [vmem:[%s11671_s26 + $0x538] sm:$0xff] }
0x130a   :  { %v4504_v30 = vmax.f32 %v4498_v34, 0.0  ;;  %v4522_v19 = vmax.f32 %v4516_v23, 0.0  ;;  %v4506_v11 = vmax.f32 %v4500_v0, 0.0  ;;  %v4524_v18 = vmax.f32 %v4518_v45, 0.0  ;;  %v6039_v34 = vld [vmem:[%s11671_s26 + $0x4a0] sm:$0xff]  ;;  %v6040_v23 = vld [vmem:[%s11671_s26 + $0x4a8] sm:$0xff] }
0x130b   :  { %v4527_v16 = vmax.f32 %v4503_v2, %v4521_v51  ;;  %v7356_v43 = vpack.c.bf16 %v6053_v32, %v6052_v38  ;;  %v11237_v50 = vmax.f32 %v4507_v4, %v4525_v29  ;;  %v7332_v39 = vpack.c.bf16 %v6036_v15, %v6035_v1  ;;  %v6060_v45 = vld [vmem:[%s11671_s26 + $0x540] sm:$0xff]  ;;  %v6061_v2 = vld [vmem:[%s11671_s26 + $0x548] sm:$0xff]  ;;  %v6067_v38 = vld [vmem:[%s11671_s26 + $0x578] sm:$0xff] }
0x130c   :  { %v4528_v41 = vmax.f32 %v4504_v30, %v4522_v19  ;;  %v4530_v27 = vmax.f32 %v4506_v11, %v4524_v18  ;;  %v7362_v46 = vpack.c.bf16 %v6057_v36, %v6056_v59  ;;  %v7335_v53 = vpack.c.bf16 %v6038_v47, %v6037_v40  ;;  %v6041_v30 = vld [vmem:[%s11671_s26 + $0x4b0] sm:$0xff]  ;;  %v6042_v19 = vld [vmem:[%s11671_s26 + $0x4b8] sm:$0xff]  ;;  %v6048_v4 = vld [vmem:[%s11671_s26 + $0x4e8] sm:$0xff] }
0x130d   :  { %v4535_v60 = vrot.slane %v4527_v16, 2  ;;  %v7365_v0 = vpack.c.bf16 %v6059_v5, %v6058_v56  ;;  %v7338_v51 = vpack.c.bf16 %v6040_v23, %v6039_v34  ;;  %v7368_v11 = vpack.c.bf16 %v6061_v2, %v6060_v45  ;;  %v6062_v18 = vld [vmem:[%s11671_s26 + $0x550] sm:$0xff]  ;;  %v6071_v15 = vld [vmem:[%s11671_s26 + $0x598] sm:$0xff]  ;;  %v6073_v36 = vld [vmem:[%s11671_s26 + $0x5a0] sm:$0xff] }
0x130e   :  { %v4536_v55 = vrot.slane %v4528_v41, 2  ;;  %v4737_v42 = vrot.slane %v4530_v27, 2  ;;  %v7341_v62 = vpack.c.bf16 %v6042_v19, %v6041_v30  ;;  %v6070_v1 = vld [vmem:[%s11671_s26 + $0x590] sm:$0xff]  ;;  %v7353_v59 = vpack.c.bf16 %v6050_v49, %v6049_v48  ;;  %v6077_v45 = vld [vmem:[%s11671_s26 + $0x5c0] sm:$0xff]  ;;  %v6078_v2 = vld [vmem:[%s11671_s26 + $0x5c8] sm:$0xff] }
0x130f   :  { %v4539_v57 = vmax.f32 %v4527_v16, %v4535_v60  ;;  %v6063_v16 = vld [vmem:[%s11671_s26 + $0x558] sm:$0xff]  ;;  %v6044_v60 = vld [vmem:[%s11671_s26 + $0x4c8] sm:$0xff]  ;;  %v7383_v40 = vpack.c.bf16 %v6071_v15, %v6070_v1  ;;  %v6075_v5 = vld [vmem:[%s11671_s26 + $0x5b0] sm:$0xff] }
0x1310   :  { %v4540_v21 = vmax.f32 %v4528_v41, %v4536_v55  ;;  %v4741_v22 = vmax.f32 %v4530_v27, %v4737_v42  ;;  %v4482_v41 = vmul.f32 %v11183_v58, %v10970_v31  ;;  %v4511_v27 = vmul.f32 %v11183_v58, %v10979_v17  ;;  %v6064_v58 = vld [vmem:[%s11671_s26 + $0x560] sm:$0xff]  ;;  %v6079_v30 = vld [vmem:[%s11671_s26 + $0x5d0] sm:$0xff]  ;;  %v6080_v19 = vld [vmem:[%s11671_s26 + $0x5d8] sm:$0xff] }
0x1311   :  { %v4658_v28 = vrot.slane %v4539_v57, 4  ;;  %v7371_v44 = vpack.c.bf16 %v6063_v16, %v6062_v18  ;;  %v4485_v31 = vmul.f32 %v11189_v24, %v11003_v61  ;;  %v4514_v17 = vmul.f32 %v11189_v24, %v11012_v52  ;;  %v6045_v61 = vld [vmem:[%s11671_s26 + $0x4d0] sm:$0xff]  ;;  %v6046_v52 = vld [vmem:[%s11671_s26 + $0x4d8] sm:$0xff]  ;;  %v6081_v18 = vld [vmem:[%s11671_s26 + $0x5e0] sm:$0xff] }
0x1312   :  { %6009 = vmatprep.mubr.msk.f32.mxu0 %vm1597_vm8, %v4540_v21  ;;  %v4659_v9 = vrot.slane %v4540_v21, 4  ;;  %v4860_v26 = vrot.slane %v4741_v22, 4  ;;  %v4499_v55 = vadd.f32 %v11186_v10, %v4482_v41  ;;  %v4517_v42 = vadd.f32 %v4511_v27, %v11186_v10  ;;  %v6066_v10 = vld [vmem:[%s11671_s26 + $0x570] sm:$0xff]  ;;  %v6082_v16 = vld [vmem:[%s11671_s26 + $0x5e8] sm:$0xff] }
0x1313   :  { %4630 = vmatmul.mubr.f32.vlgmr.msra.gmra.mrb[46].mxu0 %v4539_v57  ;;  %v7344_v20 = vpack.c.bf16 %v6044_v60, %v6043_v12  ;;  %v7374_v24 = vpack.c.bf16 %v6065_v25, %v6064_v58  ;;  %v4502_v13 = vadd.f32 %v11192_v35, %v4485_v31  ;;  %v4520_v57 = vadd.f32 %v4514_v17, %v11192_v35  ;;  %v6047_v35 = vld [vmem:[%s11671_s26 + $0x4e0] sm:$0xff]  ;;  %v6083_v27 = vld [vmem:[%s11671_s26 + $0x5f0] sm:$0xff]  ;;  %v6088_v58 = vld [vmem:[%s11671_s26 + $0x618] sm:$0xff] }
0x1314   :  { %7327 = vmatpush1.bf16.msra.mxu0 %v7326_v63  ;;  %6030 = vmatprep.mubr.msk.f32.mxu1 %vm1597_vm8, %v4659_v9  ;;  %v4505_v32 = vmax.f32 %v4499_v55, 0.0  ;;  %v4523_v21 = vmax.f32 %v4517_v42, 0.0  ;;  %v7347_v63 = vpack.c.bf16 %v6046_v52, %v6045_v61  ;;  %v7377_v29 = vpack.c.bf16 %v6067_v38, %v6066_v10  ;;  %v6069_v9 = vld [vmem:[%s11671_s26 + $0x588] sm:$0xff]  ;;  %v6085_v60 = vld [vmem:[%s11671_s26 + $0x600] sm:$0xff]  ;;  %v6087_v17 = vld [vmem:[%s11671_s26 + $0x610] sm:$0xff] }
0x1315   :  { %6051 = vmatprep.mubr.msk.f32.mxu0 %vm1597_vm8, %v4741_v22  ;;  %4728 = vmatmul.mubr.f32.vlgmr.msra.gmra.mrb[32].mxu1 %v4658_v28  ;;  %v4508_v22 = vmax.f32 %v4502_v13, 0.0  ;;  %v4526_v6 = vmax.f32 %v4520_v57, 0.0  ;;  %v7350_v28 = vpack.c.bf16 %v6048_v4, %v6047_v35  ;;  %v7398_v41 = vpack.c.bf16 %v6082_v16, %v6081_v18  ;;  %v6089_v55 = vld [vmem:[%s11671_s26 + $0x620] sm:$0xff]  ;;  %v6090_v42 = vld [vmem:[%s11671_s26 + $0x628] sm:$0xff]  ;;  %v6091_v61 = vld [vmem:[%s11671_s26 + $0x630] sm:$0xff] }
0x1316   :  { %7357 = vmatpush1.bf16.msra.mxu1 %v7356_v43  ;;  %7328 = vmatprep.subr.bf16.mxu0 %v7557_v8  ;;  %v4529_v43 = vmax.f32 %v4505_v32, %v4523_v21  ;;  %v7407_v25 = vpack.c.bf16 %v6088_v58, %v6087_v17  ;;  %v6092_v52 = vld [vmem:[%s11671_s26 + $0x638] sm:$0xff]  ;;  %v4937_v13 = vrot.slane %v11237_v50, 2  ;;  %v5085_v4 = vld [vmem:[%s11607_s18] sm:$0xff]  ;;  %v5209_v58 = vld [vmem:[%s11611_s22 + $0x8] sm:$0xff] }
0x1317   :  { %6072 = vmatprep.mubr.msk.f32.mxu1 %vm1597_vm8, %v4860_v26  ;;  %7358 = vmatprep.subr.bf16.mxu1 %v7557_v8  ;;  %v4532_v26 = vmax.f32 %v4508_v22, %v4526_v6  ;;  %v5046_v16 = vld [vmem:[%s11609_s16] sm:$0x1] }
0x1318   :  { %7330 = vmatpush1.bf16.msra.mxu0 %v7329_v33  ;;  %v7380_v33 = vpack.c.bf16 %v6069_v9, %v6068_v37  ;;  %v4941_v57 = vmax.f32 %v11237_v50, %v4937_v13  ;;  %v5087_v50 = vld [vmem:[%s11607_s18 + $0x10] sm:$0xff]  ;;  %v5208_v17 = vld [vmem:[%s11611_s22] sm:$0xff] }
0x1319   :  { %7331 = vmatprep.subr.bf16.mxu0 %v7557_v8  ;;  %v4938_v47 = vrot.slane %v4532_v26, 2  ;;  %v5214_v13 = vld [vmem:[%s11611_s22 + $0x30] sm:$0xff] }
0x131a   :  { %7360 = vmatpush1.bf16.msra.mxu1 %v7359_v54  ;;  %v4736_v54 = vrot.slane %v4529_v43, 2 }
0x131b   :  { %7361 = vmatprep.subr.bf16.mxu1 %v7557_v8  ;;  %v4942_v34 = vmax.f32 %v4532_v26, %v4938_v47  ;;  %v6094_v26 = vld [vmem:[%s11608_s15] ss:$0 sm:$0xff]  ;;  %s11675_s15 = sld [smem:[#allocation19_spill]] }
0x131c   :  { %7333 = vmatpush1.bf16.msra.mxu0 %v7332_v39  ;;  %v6074_v39 = vld [vmem:[%s11671_s26 + $0x5a8] sm:$0xff] }
0x131d   :  { %7334 = vmatprep.subr.bf16.mxu0 %v7557_v8  ;;  %v7386_v56 = vpack.c.bf16 %v6074_v39, %v6073_v36 }
0x131e   :  { %7363 = vmatpush1.bf16.msra.mxu1 %v7362_v46  ;;  %v4740_v46 = vmax.f32 %v4529_v43, %v4736_v54 }
0x131f   :  { %7364 = vmatprep.subr.bf16.mxu1 %v7557_v8 }
0x1320   :  { %7336 = vmatpush1.bf16.msra.mxu0 %v7335_v53  ;;  %v6076_v53 = vld [vmem:[%s11671_s26 + $0x5b8] sm:$0xff]  ;;  %v4859_v23 = vrot.slane %v4740_v46, 4 }
0x1321   :  { %7337 = vmatprep.subr.bf16.mxu0 %v7557_v8 }
0x1322   :  { %7366 = vmatpush1.bf16.msra.mxu1 %v7365_v0  ;;  %v7389_v0 = vpack.c.bf16 %v6076_v53, %v6075_v5 }
0x1323   :  { %7367 = vmatprep.subr.bf16.mxu1 %v7557_v8 }
0x1324   :  { %7339 = vmatpush1.bf16.msra.mxu0 %v7338_v51  ;;  %v7392_v51 = vpack.c.bf16 %v6078_v2, %v6077_v45 }
0x1325   :  { %7340 = vmatprep.subr.bf16.mxu0 %v7557_v8 }
0x1326   :  { %7369 = vmatpush1.bf16.msra.mxu1 %v7368_v11  ;;  %v7395_v11 = vpack.c.bf16 %v6080_v19, %v6079_v30 }
0x1327   :  { %7370 = vmatprep.subr.bf16.mxu1 %v7557_v8 }
0x1328   :  { %7342 = vmatpush1.bf16.msra.mxu0 %v7341_v62  ;;  %v6084_v62 = vld [vmem:[%s11671_s26 + $0x5f8] sm:$0xff] }
0x1329   :  { %7343 = vmatprep.subr.bf16.mxu0 %v7557_v8  ;;  %v7401_v12 = vpack.c.bf16 %v6084_v62, %v6083_v27 }
0x132a   :  { %7372 = vmatpush1.bf16.msra.mxu1 %v7371_v44  ;;  %v6086_v44 = vld [vmem:[%s11671_s26 + $0x608] sm:$0xff]  ;;  %s11672_s26 = sld [smem:[#allocation16_spill]] }
0x132b   :  { %7373 = vmatprep.subr.bf16.mxu1 %v7557_v8  ;;  %v7404_v31 = vpack.c.bf16 %v6086_v44, %v6085_v60 }
0x132c   :  { %7345 = vmatpush1.bf16.msra.mxu0 %v7344_v20  ;;  %v7410_v20 = vpack.c.bf16 %v6090_v42, %v6089_v55  ;;  %v5210_v55 = vld [vmem:[%s11611_s22 + $0x10] sm:$0xff]  ;;  %v5211_v42 = vld [vmem:[%s11611_s22 + $0x18] sm:$0xff] }
0x132d   :  { %7346 = vmatprep.subr.bf16.mxu0 %v7557_v8 }
0x132e   :  { %7375 = vmatpush1.bf16.msra.mxu1 %v7374_v24  ;;  %v7413_v24 = vpack.c.bf16 %v6092_v52, %v6091_v61  ;;  %v5212_v61 = vld [vmem:[%s11611_s22 + $0x20] sm:$0xff]  ;;  %v5213_v52 = vld [vmem:[%s11611_s22 + $0x28] sm:$0xff] }
0x132f   :  { %7376 = vmatprep.subr.bf16.mxu1 %v7557_v8 }
0x1330   :  { %7348 = vmatpush1.bf16.msra.mxu0 %v7347_v63 }
0x1331   :  { %7349 = vmatprep.subr.bf16.mxu0 %v7557_v8 }
0x1332   :  { %7378 = vmatpush1.bf16.msra.mxu1 %v7377_v29  ;;  %v5086_v29 = vld [vmem:[%s11607_s18 + $0x8] sm:$0xff] }
0x1333   :  { %7379 = vmatprep.subr.bf16.mxu1 %v7557_v8  ;;  %v7416_v22 = vpack.c.bf16 %v5086_v29, %v5085_v4 }
0x1334   :  { %7351 = vmatpush1.bf16.msra.mxu0 %v7350_v28 }
0x1335   :  { %7352 = vmatprep.subr.bf16.mxu0 %v7557_v8 }
0x1336   :  { %7381 = vmatpush1.bf16.msra.mxu1 %v7380_v33 }
0x1337   :  { %7382 = vmatprep.subr.bf16.mxu1 %v7557_v8 }
0x1338   :  { %7354 = vmatpush1.bf16.msra.mxu0 %v7353_v59 }
0x1339   :  { %7385 = vmatprep.subr.bf16.mxu0 %v7557_v8 }
0x133a   :  { %7384 = vmatpush1.bf16.msra.mxu1 %v7383_v40 }
0x133b   :  { %4831 = vmatmul.mubr.f32.vlgmr.msra.gmra.mrb[48].mxu0 %v4740_v46  ;;  %7415 = vmatprep.subr.bf16.mxu1 %v7557_v8 }
0x133c   :  { %7387 = vmatpush1.bf16.msra.mxu0 %v7386_v56  ;;  %6093 = vmatprep.mubr.msk.f32.mxu0 %vm1597_vm8, %v4942_v34 }
0x133d   :  { %4929 = vmatmul.mubr.f32.vlgmr.msra.gmra.mrb[34].mxu1 %v4859_v23  ;;  %7388 = vmatprep.subr.bf16.mxu0 %v7557_v8 }
0x133e   :  { %7417 = vmatpush3.bf16.msra.mxu1 %v7416_v22  ;;  %6142 = vmatprep.mubr.msk.f32.mxu1 %vm7559_vm10, %v7556_v3 }
0x133f   :  { %7418 = vmatprep.subr.bf16.mxu1 %v7557_v8 }
0x1340   :  { %7390 = vmatpush1.bf16.msra.mxu0 %v7389_v0 }
0x1341   :  { %7391 = vmatprep.subr.bf16.mxu0 %v7557_v8 }
0x1344   :  { %7393 = vmatpush1.bf16.msra.mxu0 %v7392_v51 }
0x1345   :  { %7394 = vmatprep.subr.bf16.mxu0 %v7557_v8 }
0x1348   :  { %7396 = vmatpush1.bf16.msra.mxu0 %v7395_v11 }
0x1349   :  { %7397 = vmatprep.subr.bf16.mxu0 %v7557_v8 }
0x134c   :  { %7399 = vmatpush1.bf16.msra.mxu0 %v7398_v41 }
0x134d   :  { %7400 = vmatprep.subr.bf16.mxu0 %v7557_v8 }
0x1350   :  { %7402 = vmatpush1.bf16.msra.mxu0 %v7401_v12  ;;  %v6095_v12 = vld [vmem:[%s11610_s17] ss:$0 sm:$0xff]  ;;  %s11678_s17 = sld [smem:[#allocation22_spill]] }
0x1351   :  { %7403 = vmatprep.subr.bf16.mxu0 %v7557_v8 }
0x1354   :  { %7405 = vmatpush1.bf16.msra.mxu0 %v7404_v31 }
0x1355   :  { %7406 = vmatprep.subr.bf16.mxu0 %v7557_v8 }
0x1358   :  { %7408 = vmatpush1.bf16.msra.mxu0 %v7407_v25  ;;  %v7422_v25 = vpack.c.bf16 %v5209_v58, %v5208_v17  ;;  %v5347_v17 = vld [vmem:[%s11675_s15 + $0x68] sm:$0xff] }
0x1359   :  { %7409 = vmatprep.subr.bf16.mxu0 %v7557_v8 }
0x135c   :  { %7411 = vmatpush1.bf16.msra.mxu0 %v7410_v20  ;;  %v7425_v20 = vpack.c.bf16 %v5211_v42, %v5210_v55  ;;  %v5349_v55 = vld [vmem:[%s11675_s15 + $0x78] sm:$0xff] }
0x135d   :  { %7412 = vmatprep.subr.bf16.mxu0 %v7557_v8 }
0x1360   :  { %7414 = vmatpush1.bf16.msra.mxu0 %v7413_v24  ;;  %v7428_v24 = vpack.c.bf16 %v5213_v52, %v5212_v61 }
0x1363   :  { %5032 = vmatmul.mubr.f32.vlgmr.msra.gmra.mrb[50].mxu0 %v4941_v57  ;;  %v5215_v57 = vld [vmem:[%s11611_s22 + $0x38] sm:$0xff] }
0x13e6   :  { %v4631_v10 = vpop.f32.mrb[46].mxu0 }
0x13e7   :  { %v4635_v38 = vadd.f32 %v4631_v10, %v9812_v14  ;;  %v4633_v32 = vpop.f32.mrb[47].mxu0  ;;  %v5088_v14 = vld [vmem:[%s11607_s18 + $0x18] sm:$0xff]  ;;  %v7431_v10 = vpack.c.bf16 %v5215_v57, %v5214_v13 }
0x13e8   :  { %v4729_v21 = vpop.f32.mrb[32].mxu1  ;;  %v7419_v6 = vpack.c.bf16 %v5088_v14, %v5087_v50 }
0x13e9   :  { %v4733_v63 = vadd.f32 %v4729_v21, %v4635_v38  ;;  %v4731_v35 = vpop.f32.mrb[33].mxu1  ;;  %v6096_v38 = vld [vmem:[%s11672_s26] ss:$0 sm:$0xff] }
0x13ea   :  { %7420 = vmatpush3.bf16.msra.mxu1 %v7419_v6 }
0x13eb   :  { %7421 = vmatprep.subr.bf16.mxu1 %v7557_v8 }
0x140e   :  { %v4832_v37 = vpop.f32.mrb[48].mxu0 }
0x140f   :  { %v4836_v9 = vadd.f32 %v4832_v37, %v4733_v63  ;;  %v4834_v43 = vpop.f32.mrb[49].mxu0 }
0x1410   :  { %v4930_v28 = vpop.f32.mrb[34].mxu1 }
0x1411   :  { %v4934_v48 = vadd.f32 %v4930_v28, %v4836_v9  ;;  %v4932_v49 = vpop.f32.mrb[35].mxu1 }
0x1436   :  { %v5033_v33 = vpop.f32.mrb[50].mxu0 }
0x1437   :  { %v5037_v1 = vadd.f32 %v5033_v33, %v4934_v48  ;;  %v5035_v15 = vpop.f32.mrb[51].mxu0 }
0x1439   :  { %v5045_v54 = vadd.f32 %v6094_v26, %v5037_v1 }
0x143b   :  { %v5049_v59 = vsel %vm5048_vm11, %v5045_v54, 0.0 }
0x143c   :  { %v5050_v36 = vrot.slane %v5049_v59, 4 }
0x143e   :  { %v5051_v39 = vadd.f32 %v5050_v36, %v5049_v59  ;;  %v5169_v36 = vld [vmem:[%s11673_s25] sm:$0x1] }
0x1440   :  { %v5052_v40 = vrot.slane %v5051_v39, 2 }
0x1442   :  { %v5053_v47 = vadd.f32 %v5052_v40, %v5051_v39 }
0x1444   :  { %v5054_v46 = vrot.slane %v5053_v47, 1 }
0x1446   :  { %v5055_v56 = vadd.f32 %v5054_v46, %v5053_v47  ;;  %v6098_v46 = vld [vmem:[%s11674_s10] ss:$0 sm:$0xff] }
0x1448   :  { %v5056_v5 = vmul.f32 0.5, %v5055_v56 }
0x144a   :  { %v5057_v53 = vsub.f32 %v5045_v54, %v5056_v5 }
0x144c   :  { %v5058_v34 = vmul.f32 %v5057_v53, %v5057_v53 }
0x144e   :  { %v5059_v23 = vsel %vm5048_vm11, %v5058_v34, 0.0  ;;  %v5334_v34 = vld [vmem:[%s11675_s15] sm:$0xff] }
0x144f   :  { %v5060_v0 = vrot.slane %v5059_v23, 4 }
0x1451   :  { %v5061_v45 = vadd.f32 %v5060_v0, %v5059_v23  ;;  %v5335_v23 = vld [vmem:[%s11675_s15 + $0x8] sm:$0xff] }
0x1452   :  { %v7434_v0 = vpack.c.bf16 %v5335_v23, %v5334_v34 }
0x1453   :  { %v5062_v2 = vrot.slane %v5061_v45, 2 }
0x1455   :  { %v5063_v51 = vadd.f32 %v5062_v2, %v5061_v45  ;;  %v5336_v45 = vld [vmem:[%s11675_s15 + $0x10] sm:$0xff] }
0x1457   :  { %v5064_v30 = vrot.slane %v5063_v51, 1 }
0x1459   :  { %v5065_v19 = vadd.f32 %v5064_v30, %v5063_v51  ;;  %v5338_v51 = vld [vmem:[%s11675_s15 + $0x20] sm:$0xff]  ;;  %v5339_v30 = vld [vmem:[%s11675_s15 + $0x28] sm:$0xff] }
0x145b   :  { %v5066_v11 = vmul.f32 0.5, %v5065_v19  ;;  %v7440_v19 = vpack.c.bf16 %v5339_v30, %v5338_v51 }
0x145d   :  { %v5067_v18 = vadd.f32 1e-05, %v5066_v11  ;;  %v5340_v11 = vld [vmem:[%s11675_s15 + $0x30] sm:$0xff] }
0x145f   :  { %7542 = vrsqrt.f32 %v5067_v18  ;;  %v5341_v18 = vld [vmem:[%s11675_s15 + $0x38] sm:$0xff] }
0x1469   :  { %v7543_v41 = vpop.eup %7542 }
0x146a   :  { %v5069_v27 = vmul.f32 %v7543_v41, %v5046_v16  ;;  %v7443_v16 = vpack.c.bf16 %v5341_v18, %v5340_v11  ;;  %v5342_v41 = vld [vmem:[%s11675_s15 + $0x40] sm:$0xff] }
0x146c   :  { %v5074_v62 = vrot.slane %v5069_v27, %v7905_v7  ;;  %v5343_v27 = vld [vmem:[%s11675_s15 + $0x48] sm:$0xff] }
0x146e   :  { %v5076_v60 = vmul.f32 %v5074_v62, %v5057_v53  ;;  %v7446_v62 = vpack.c.bf16 %v5343_v27, %v5342_v41 }
0x1470   :  { %v5083_v44 = vadd.f32 %v6095_v12, %v5076_v60  ;;  %v5344_v12 = vld [vmem:[%s11675_s15 + $0x50] sm:$0xff]  ;;  %v5345_v60 = vld [vmem:[%s11675_s15 + $0x58] sm:$0xff] }
0x1472   :  { %v5084_v31 = vmax.f32 %v5083_v44, 0.0  ;;  %v7449_v44 = vpack.c.bf16 %v5345_v60, %v5344_v12 }
0x1474   :  { %6143 = vmatmul.mubr.msk.f32.vlgmr.msra.gmra.mrb[36].mxu1 %vm1597_vm8, %v5084_v31  ;;  %v5346_v31 = vld [vmem:[%s11675_s15 + $0x60] sm:$0xff] }
0x1475   :  { %6161 = vmatprep.mubr.msk.f32.mxu1 %vm7559_vm10, %v7556_v3  ;;  %7423 = vmatpush3.bf16.msra.mxu1 %v7422_v25  ;;  %v7452_v58 = vpack.c.bf16 %v5347_v17, %v5346_v31  ;;  %v5348_v25 = vld [vmem:[%s11675_s15 + $0x70] sm:$0xff] }
0x1476   :  { %7424 = vmatprep.subr.bf16.mxu1 %v7557_v8  ;;  %v7455_v42 = vpack.c.bf16 %v5349_v55, %v5348_v25 }
0x1479   :  { %7426 = vmatpush3.bf16.msra.mxu1 %v7425_v20  ;;  %v6099_v20 = vld [vmem:[%s11676_s8] ss:$0 sm:$0xff] }
0x147a   :  { %7427 = vmatprep.subr.bf16.mxu1 %v7557_v8 }
0x147d   :  { %7429 = vmatpush3.bf16.msra.mxu1 %v7428_v24 }
0x147e   :  { %7430 = vmatprep.subr.bf16.mxu1 %v7557_v8 }
0x1481   :  { %7432 = vmatpush3.bf16.msra.mxu1 %v7431_v10 }
0x1482   :  { %7433 = vmatprep.subr.bf16.mxu1 %v7557_v8 }
0x1547   :  { %v5165_v32 = vpop.f32.mrb[36].mxu1 }
0x1548   :  { %v5166_v21 = vadd.f32 %v6096_v38, %v5165_v32  ;;  %v6144_v63 = vpop.f32.mrb[37].mxu1 }
0x154a   :  { %v5172_v35 = vsel %vm5171_vm12, %v5166_v21, 0.0 }
0x154b   :  { %v5173_v4 = vrot.slane %v5172_v35, 4 }
0x154d   :  { %v5174_v29 = vadd.f32 %v5173_v4, %v5172_v35 }
0x154f   :  { %v5175_v22 = vrot.slane %v5174_v29, 2 }
0x1551   :  { %v5176_v50 = vadd.f32 %v5175_v22, %v5174_v29 }
0x1553   :  { %v5177_v14 = vrot.slane %v5176_v50, 1 }
0x1555   :  { %v5178_v6 = vadd.f32 %v5177_v14, %v5176_v50 }
0x1557   :  { %v5179_v37 = vmul.f32 0.5, %v5178_v6 }
0x1559   :  { %v5180_v9 = vsub.f32 %v5166_v21, %v5179_v37 }
0x155b   :  { %v5181_v43 = vmul.f32 %v5180_v9, %v5180_v9 }
0x155d   :  { %v5182_v28 = vsel %vm5171_vm12, %v5181_v43, 0.0 }
0x155e   :  { %v5183_v48 = vrot.slane %v5182_v28, 4 }
0x1560   :  { %v5184_v49 = vadd.f32 %v5183_v48, %v5182_v28  ;;  %v5296_v48 = vld [vmem:[%s11677_s29] sm:$0x1] }
0x1562   :  { %v5185_v33 = vrot.slane %v5184_v49, 2 }
0x1564   :  { %v5186_v26 = vadd.f32 %v5185_v33, %v5184_v49 }
0x1566   :  { %v5187_v1 = vrot.slane %v5186_v26, 1 }
0x1568   :  { %v5188_v15 = vadd.f32 %v5187_v1, %v5186_v26  ;;  %v6101_v1 = vld [vmem:[%s11678_s17] ss:$0 sm:$0xff] }
0x156a   :  { %v5189_v54 = vmul.f32 0.5, %v5188_v15 }
0x156c   :  { %v5190_v59 = vadd.f32 1e-05, %v5189_v54 }
0x156e   :  { %7544 = vrsqrt.f32 %v5190_v59 }
0x1578   :  { %v7545_v39 = vpop.eup %7544 }
0x1579   :  { %v5192_v40 = vmul.f32 %v7545_v39, %v5169_v36  ;;  %v6102_v36 = vld [vmem:[%s11679_s5] ss:$0 sm:$0xff] }
0x157b   :  { %v5197_v47 = vrot.slane %v5192_v40, %v7905_v7 }
0x157d   :  { %v5199_v56 = vmul.f32 %v5197_v47, %v5180_v9 }
0x157f   :  { %v5206_v5 = vadd.f32 %v6098_v46, %v5199_v56 }
0x1581   :  { %v5207_v53 = vmax.f32 %v5206_v5, 0.0 }
0x1583   :  { %6162 = vmatmul.mubr.msk.f32.vlgmr.msra.gmra.mrb[38].mxu1 %vm254_vm4, %v5207_v53 }
0x1584   :  { %6196 = vmatprep.mubr.msk.f32.mxu1 %vm7559_vm10, %v7556_v3  ;;  %7435 = vmatpush3.bf16.msra.mxu1 %v7434_v0  ;;  %v5337_v3 = vld [vmem:[%s11675_s15 + $0x18] sm:$0xff] }
0x1585   :  { %7436 = vmatprep.subr.bf16.mxu1 %v7557_v8  ;;  %v7437_v2 = vpack.c.bf16 %v5337_v3, %v5336_v45 }
0x1588   :  { %7438 = vmatpush3.bf16.msra.mxu1 %v7437_v2 }
0x1589   :  { %7439 = vmatprep.subr.bf16.mxu1 %v7557_v8 }
0x158c   :  { %7441 = vmatpush3.bf16.msra.mxu1 %v7440_v19 }
0x158d   :  { %7442 = vmatprep.subr.bf16.mxu1 %v7557_v8 }
0x1590   :  { %7444 = vmatpush3.bf16.msra.mxu1 %v7443_v16 }
0x1591   :  { %7445 = vmatprep.subr.bf16.mxu1 %v7557_v8 }
0x1594   :  { %7447 = vmatpush3.bf16.msra.mxu1 %v7446_v62 }
0x1595   :  { %7448 = vmatprep.subr.bf16.mxu1 %v7557_v8 }
0x1598   :  { %7450 = vmatpush3.bf16.msra.mxu1 %v7449_v44 }
0x1599   :  { %7451 = vmatprep.subr.bf16.mxu1 %v7557_v8 }
0x159c   :  { %7453 = vmatpush3.bf16.msra.mxu1 %v7452_v58 }
0x159d   :  { %7454 = vmatprep.subr.bf16.mxu1 %v7557_v8 }
0x15a0   :  { %7456 = vmatpush3.bf16.msra.mxu1 %v7455_v42 }
0x1656   :  { %v5292_v61 = vpop.f32.mrb[38].mxu1 }
0x1657   :  { %v5293_v52 = vadd.f32 %v6099_v20, %v5292_v61  ;;  %v6163_v24 = vpop.f32.mrb[39].mxu1 }
0x1659   :  { %v5298_v13 = vsel %vm126_vm0, %v5293_v52, 0.0 }
0x165a   :  { %v5299_v57 = vrot.slane %v5298_v13, 4 }
0x165c   :  { %v5300_v10 = vadd.f32 %v5299_v57, %v5298_v13 }
0x165e   :  { %v5301_v38 = vrot.slane %v5300_v10, 2 }
0x1660   :  { %v5302_v32 = vadd.f32 %v5301_v38, %v5300_v10 }
0x1662   :  { %v5303_v21 = vrot.slane %v5302_v32, 1 }
0x1664   :  { %v5304_v63 = vadd.f32 %v5303_v21, %v5302_v32 }
0x1666   :  { %v5305_v35 = vmul.f32 0.5, %v5304_v63 }
0x1668   :  { %v5306_v4 = vsub.f32 %v5293_v52, %v5305_v35 }
0x166a   :  { %v5307_v29 = vmul.f32 %v5306_v4, %v5306_v4 }
0x166c   :  { %v5308_v8 = vsel %vm126_vm0, %v5307_v29, 0.0  ;;  %vm5452_vm0 = vcmask 82944  }
0x166d   :  { %v5309_v22 = vrot.slane %v5308_v8, 4 }
0x166f   :  { %v5310_v50 = vadd.f32 %v5309_v22, %v5308_v8 }
0x1671   :  { %v5311_v14 = vrot.slane %v5310_v50, 2 }
0x1673   :  { %v5312_v6 = vadd.f32 %v5311_v14, %v5310_v50 }
0x1675   :  { %v5313_v37 = vrot.slane %v5312_v6, 1 }
0x1677   :  { %v5314_v9 = vadd.f32 %v5313_v37, %v5312_v6 }
0x1679   :  { %v5315_v43 = vmul.f32 0.5, %v5314_v9 }
0x167b   :  { %v5316_v28 = vadd.f32 1e-05, %v5315_v43 }
0x167d   :  { %7546 = vrsqrt.f32 %v5316_v28 }
0x1687   :  { %v7547_v49 = vpop.eup %7546 }
0x1688   :  { %v5318_v33 = vmul.f32 %v7547_v49, %v5296_v48 }
0x168a   :  { %v5323_v26 = vrot.slane %v5318_v33, %v7905_v7 }
0x168c   :  { %v5325_v15 = vmul.f32 %v5323_v26, %v5306_v4 }
0x168e   :  { %v5332_v54 = vadd.f32 %v6101_v1, %v5325_v15 }
0x1690   :  { %v5333_v59 = vmax.f32 %v5332_v54, 0.0 }
0x1692   :  { %6197 = vmatmul.mubr.f32.vlgmr.msra.gmra.mrb[40].mxu1 %v5333_v59 }
0x1765   :  { %v5423_v39 = vpop.f32.mrb[40].mxu1 }
0x1766   :  { %v5424_v40 = vadd.f32 %v6102_v36, %v5423_v39  ;;  %v6198_v47 = vpop.f32.mrb[41].mxu1 }
0x1768   :  { %v5433_v46 = vsel %vm5432_vm13, %v5424_v40, -inf  ;;  %v5427_v0 = vsub.f32 0.0, %v5424_v40 }
0x1769   :  { %5434 = vmax.xlane.f32.xlu0 %v5433_v46 }
0x176a   :  { %v5428_v45 = vmul.f32 1.442695, %v5427_v0 }
0x17f6   :  { %v5435_v56 = vpop.xlane.xlu0 %5434 }
0x17f7   :  { %v5436_v7 = vsub.f32 %v5424_v40, %v5435_v56 }
0x17f9   :  { %v5437_v5 = vmul.f32 1.442695, %v5436_v7 }
0x17fb   :  { %7548 = vpow2.f32 %v5437_v5 }
0x17fc   :  { %7550 = vpow2.f32 %v5428_v45 }
0x1805   :  { %v7549_v53 = vpop.eup %7548 }
0x1806   :  { %5440 = vrot.lane.b32.xlu0 %v7549_v53, %s7560_s6  ;;  %v7551_v3 = vpop.eup %7550 }
0x1807   :  { %v5430_v51 = vadd.f32 1.0, %v7551_v3 }
0x1878   :  { %v5441_v34 = vpop.permute.xlu0 %5440 }
0x1879   :  { %v5444_v23 = vsel %vm5443_vm14, %v5441_v34, 0.0 }
0x187a   :  { %5445 = vadd.xlane.f32.xlu1 %v5444_v23 }
0x1907   :  { %v5446_v2 = vpop.xlane.xlu1 %5445 }
0x1908   :  { %7552 = vlog2.f32 %v5446_v2 }
0x1909   :  { %7554 = vrcp.f32 %v5430_v51 }
0x1912   :  { %v7553_v30 = vpop.eup %7552 }
0x1913   :  { %v5448_v19 = vmul.f32 0.6931472, %v7553_v30  ;;  %v7555_v18 = vpop.eup %7554 }
0x1915   :  { %v5449_v11 = vsub.f32 %v5436_v7, %v5448_v19 }
0x1917   :  { %v5451_v16 = vsel %vm5450_vm15, %v7555_v18, %v5449_v11 }
0x1918   :  { %5453 = vst.msk [vmem:[%s11680_s30] sm:$0x3] %vm5452_vm0, %v5451_v16 }

</bundles_post_ra>
